<compile_context>
chip_gen: v7x
topology: tpu7x:2x2x1
jax: 0.10.0
libtpu: 0.0.40
codegen_flags: <defaults>
</compile_context>

<pallas_src>
import functools

import jax
import jax.numpy as jnp
from jax.experimental import pallas as pl
from jax.experimental.pallas import tpu as pltpu

_SQRT_HALF = 0.7071067811865476


def _erf(x):
    """erf via the Numerical-Recipes erfc approximation (|err| < 1.2e-7).

    Built only from exp / mul / add / div so it always lowers in Mosaic;
    numerically indistinguishable from exact erf at the f32 tolerances used.
    """
    a = jnp.abs(x)
    t = 1.0 / (1.0 + 0.5 * a)
    poly = -1.26551223 + t * (1.00002368 + t * (0.37409196 + t * (0.09678418 +
           t * (-0.18628806 + t * (0.27886807 + t * (-1.13520398 + t * (
           1.48851587 + t * (-0.82215223 + t * 0.17087277))))))))
    erfc = t * jnp.exp(-a * a + poly)
    return jnp.where(x >= 0.0, 1.0 - erfc, erfc - 1.0)


def _gelu(x, approximate):
    if approximate:
        # tanh formulation -> transcendental runs in the (otherwise idle) EUP slot.
        return jax.nn.gelu(x, approximate=True)
    return 0.5 * x * (1.0 + _erf(x * _SQRT_HALF))


def _pfn_kernel(*refs, mode, last_vfe, has_ad, approx_gelu, M, U):
    """refs = (x, w_bd, shift_row, [ad, expand], [num_voxels], out).

    Lane-dense layouts (S = U if last layer else 2*U):
      x         (tn, M*Cin)   points-per-voxel flattened onto the lane axis
      w_bd      (M*Cin, M*S)  block-diagonal folded (linear + BN-scale) weight
      shift_row (1,  M*S)     folded BN shift (zero at the pooled slots)
      ad        (tn, M)       optional per-point distance weights
      expand    (M,  M*S)     0/1 matrix broadcasting ad onto the y slots (MXU)
      nv        (tn, 1)       optional points-per-voxel (avg mode)
      out       (tn, U) if last_vfe else (tn, M*S)  [per point: y_m | pooled]
    """
    S = U if last_vfe else 2 * U
    idx = 0
    x_ref = refs[idx]; idx += 1
    w_ref = refs[idx]; idx += 1
    shift_ref = refs[idx]; idx += 1
    ad_ref = exp_ref = None
    if has_ad:
        ad_ref = refs[idx]; idx += 1
        exp_ref = refs[idx]; idx += 1
    nv_ref = None
    if mode == "avg":
        nv_ref = refs[idx]; idx += 1
    out_ref = refs[idx]

    width = M * S
    hi = jax.lax.Precision.HIGHEST

    # Linear + folded BN scale in one lane-dense MXU matmul.  When not the last
    # layer, the pooled slots (columns m*S+U .. m*S+2U-1) hit all-zero weight
    # columns and a zero shift, so they stay exactly 0 through the GELU.
    y = jnp.dot(x_ref[...], w_ref[...],
                preferred_element_type=jnp.float32, precision=hi)
    y = _gelu(y + shift_ref[...], approx_gelu)

    if has_ad:
        # Broadcast ad (tn, M) -> (tn, M*S) on the idle MXU instead of a
        # lane<->sublane relayout (0 at the pooled slots, harmless: 0 * 0).
        ad_exp = jnp.dot(ad_ref[...], exp_ref[...],
                         preferred_element_type=jnp.float32, precision=hi)
        y = y * ad_exp

    # All-reduce (max / sum) over the M point groups with lane rolls (XLU slot).
    # Rolls are multiples of S, so y slots only combine with y slots and the
    # zero pooled slots stay exactly zero.
    if mode == "max":
        red = y
        shift_amt = S
        while shift_amt < width:            # ceil(log2(M)) rounds, any M
            red = jnp.maximum(red, pltpu.roll(red, shift=shift_amt, axis=1))
            shift_amt *= 2
    else:
        if M & (M - 1) == 0:                # power-of-two M: doubling rounds
            red = y
            shift_amt = S
            while shift_amt < width:
                red = red + pltpu.roll(red, shift=shift_amt, axis=1)
                shift_amt *= 2
        else:
            # TODO(synk): linear roll chain for non-power-of-two M; fine for
            # small M, pad to pow2 groups if M is ever large.
            red = y
            for m in range(1, M):
                red = red + pltpu.roll(y, shift=m * S, axis=1)

    if last_vfe:
        pooled = red[:, :U]
        if mode == "avg":
            pooled = pooled * (1.0 / nv_ref[...])   # exact divide (torch parity)
        out_ref[...] = pooled.astype(out_ref.dtype)
    else:
        # After the all-reduce every group holds the identical pooled value, so
        # rolling by U drops it into the pooled half of each 2U group and puts
        # exact zeros into the y half (direction-independent).
        pooled_slots = pltpu.roll(red, shift=U, axis=1)
        if mode == "avg":
            inv = 1.0 / nv_ref[...]
            lane = jax.lax.broadcasted_iota(jnp.int32, (1, width), 1)
            is_pooled = (lane % S) >= U
            # where() keeps num_voxels==0 -> inf/NaN confined to the pooled
            # half (torch parity) without contaminating the y half.
            pooled_slots = jnp.where(is_pooled, pooled_slots * inv, 0.0)
        out_ref[...] = (y + pooled_slots).astype(out_ref.dtype)


def _fold_bn(params, eps=1e-3):
    """Fold eval-mode BatchNorm into a per-channel scale (into W) and shift."""
    inv_std = 1.0 / jnp.sqrt(params["running_var"].astype(jnp.float32) + eps)
    scale = params["gamma"].astype(jnp.float32) * inv_std
    shift = (params["beta"].astype(jnp.float32)
             - params["running_mean"].astype(jnp.float32) * scale)
    w_folded = params["w"].astype(jnp.float32) * scale[None, :]
    return w_folded, shift


def _build_lane_dense_params(w_folded, shift, M, U, last_vfe, has_ad):
    """Block-diagonal weight, tiled shift, and ad-broadcast matrix (host side)."""
    S = U if last_vfe else 2 * U
    Cin = w_folded.shape[0]
    eye = jnp.eye(M, dtype=jnp.float32)
    w_blk = jnp.einsum("mn,cu->mcnu", eye, w_folded)                 # (M,Cin,M,U)
    sh_blk = shift.reshape(1, U)
    ad_blk = jnp.einsum("mn,u->mnu", eye, jnp.ones((U,), jnp.float32))  # (M,M,U)
    if S != U:
        w_blk = jnp.pad(w_blk, ((0, 0), (0, 0), (0, 0), (0, S - U)))
        sh_blk = jnp.pad(sh_blk, ((0, 0), (0, S - U)))
        ad_blk = jnp.pad(ad_blk, ((0, 0), (0, 0), (0, S - U)))
    w_bd = w_blk.reshape(M * Cin, M * S)
    shift_row = jnp.tile(sh_blk, (1, M))                              # (1, M*S)
    expand = ad_blk.reshape(M, M * S) if has_ad else None
    return w_bd, shift_row, expand


def _choose_tn(n, tn=None, min_grid_steps=1):
    """Voxel tile: large (2048) to amortize the ~0.35us per-grid-step overhead.

    Small N runs as a single grid step (v5e/v6e have one TensorCore; splitting
    small problems only adds step overhead).  v7x megacore users who want the
    voxel axis sharded across both TensorCores can pass min_grid_steps=2.
    """
    if tn is None:
        tn = 2048
    n_pad8 = max(8, (n + 7) // 8 * 8)
    tn = min(int(tn), n_pad8)
    if min_grid_steps > 1:
        cap = max(8, ((n + min_grid_steps - 1) // min_grid_steps + 7) // 8 * 8)
        tn = min(tn, cap)
    return max(8, (tn + 7) // 8 * 8)


def pfn_layer_forward(inputs, params, *, last_vfe, mode,
                      num_voxels=None, aligned_distance=None,
                      tn=None, min_grid_steps=1, approximate_gelu=False,
                      vmem_limit_bytes=32 * 1024 * 1024):
    """Pallas implementation of PFNLayer.forward (eval-mode BatchNorm).

    inputs: (N, M, Cin); params: 'w' (Cin, U), 'gamma','beta','running_mean',
    'running_var' (U,).  Returns (N, 1, U) if last_vfe else (N, M, 2*U).
    approximate_gelu=True (tanh GELU on the EUP slot) is recommended on
    v6e/v7x; the default stays exact-erf for torch parity.
    """
    assert mode in ("max", "avg")
    if mode == "avg":
        assert num_voxels is not None, "avg mode requires num_voxels"

    N, M, Cin = inputs.shape
    U = params["w"].shape[1]
    S = U if last_vfe else 2 * U
    has_ad = aligned_distance is not None

    w_folded, shift = _fold_bn(params)
    w_bd, shift_row, expand = _build_lane_dense_params(
        w_folded, shift, M, U, last_vfe, has_ad)

    tn = _choose_tn(N, tn, min_grid_steps)
    n_blocks = pl.cdiv(N, tn)
    n_pad = n_blocks * tn

    x = inputs.reshape(N, M * Cin)                       # free row-major reshape
    ad = (jnp.reshape(aligned_distance, (N, M)).astype(jnp.float32)
          if has_ad else None)
    nv = (num_voxels.astype(jnp.float32).reshape(N, 1)
          if mode == "avg" else None)

    if n_pad != N:
        pad = n_pad - N
        x = jnp.pad(x, ((0, pad), (0, 0)))
        if ad is not None:
            ad = jnp.pad(ad, ((0, pad), (0, 0)))
        if nv is not None:
            nv = jnp.pad(nv, ((0, pad), (0, 0)), constant_values=1.0)  # no 1/0

    in_specs = [
        pl.BlockSpec((tn, M * Cin), lambda i: (i, 0)),
        pl.BlockSpec((M * Cin, M * S), lambda i: (0, 0)),
        pl.BlockSpec((1, M * S), lambda i: (0, 0)),
    ]
    args = [x, w_bd, shift_row]
    if has_ad:
        in_specs += [pl.BlockSpec((tn, M), lambda i: (i, 0)),
                     pl.BlockSpec((M, M * S), lambda i: (0, 0))]
        args += [ad, expand]
    if mode == "avg":
        in_specs.append(pl.BlockSpec((tn, 1), lambda i: (i, 0)))
        args.append(nv)

    if last_vfe:
        out_shape = jax.ShapeDtypeStruct((n_pad, U), inputs.dtype)
        out_spec = pl.BlockSpec((tn, U), lambda i: (i, 0))
    else:
        out_shape = jax.ShapeDtypeStruct((n_pad, M * S), inputs.dtype)
        out_spec = pl.BlockSpec((tn, M * S), lambda i: (i, 0))

    kernel = functools.partial(_pfn_kernel, mode=mode, last_vfe=last_vfe,
                               has_ad=has_ad, approx_gelu=approximate_gelu,
                               M=M, U=U)

    out = pl.pallas_call(
        kernel,
        out_shape=out_shape,
        grid_spec=pltpu.PrefetchScalarGridSpec(
            num_scalar_prefetch=0,
            grid=(n_blocks,),
            in_specs=in_specs,
            out_specs=out_spec,
        ),
        compiler_params=pltpu.CompilerParams(
            dimension_semantics=("parallel",),
            vmem_limit_bytes=vmem_limit_bytes,
        ),
    )(*args)

    out = out[:N]
    if last_vfe:
        return out[:, None, :]            # (N, 1, U), free metadata reshape
    return out.reshape(N, M, 2 * U)       # (N, M, 2U), free row-major reshape


def pfn_layer_reference(inputs, params, *, last_vfe, mode,
                        num_voxels=None, aligned_distance=None):
    """Pure-JAX reference mirroring the PyTorch forward (eval-mode BN)."""
    eps = 1e-3
    x = jnp.einsum("nmc,cu->nmu", inputs, params["w"],
                   precision=jax.lax.Precision.HIGHEST)
    x = (x - params["running_mean"]) / jnp.sqrt(params["running_var"] + eps)
    x = x * params["gamma"] + params["beta"]
    x = jax.nn.gelu(x, approximate=False)
    if aligned_distance is not None:
        x = x * aligned_distance[..., None]
    if mode == "max":
        pooled = jnp.max(x, axis=1, keepdims=True)
    else:
        pooled = (jnp.sum(x, axis=1, keepdims=True)
                  / num_voxels.astype(x.dtype).reshape(-1, 1, 1))
    if last_vfe:
        return pooled
    return jnp.concatenate([x, jnp.broadcast_to(pooled, x.shape)], axis=-1)


if __name__ == "__main__":
    in_channels, out_channels = 10, 64
    N, M = 100, 8                      # N deliberately NOT a multiple of 8

    key = jax.random.PRNGKey(0)
    k_x, k_p32, k_p64, k_ad, k_nv, k_x2, k_nv2 = jax.random.split(key, 7)

    inputs = jax.random.normal(k_x, (N, M, in_channels), dtype=jnp.float32)

    def make_params(units, k):
        kw, kg, kb, km, kv = jax.random.split(k, 5)
        return {
            "w": 0.1 * jax.random.normal(kw, (in_channels, units), jnp.float32),
            "gamma": 1.0 + 0.1 * jax.random.normal(kg, (units,), jnp.float32),
            "beta": 0.1 * jax.random.normal(kb, (units,), jnp.float32),
            "running_mean": 0.1 * jax.random.normal(km, (units,), jnp.float32),
            "running_var": 0.5 + jnp.abs(jax.random.normal(kv, (units,), jnp.float32)),
        }

    # --- Config 1: PFNLayer(10, 64, last_layer=False, mode='max') -> units=32 ---
    params32 = make_params(out_channels // 2, k_p32)
    out = jax.block_until_ready(
        pfn_layer_forward(inputs, params32, last_vfe=False, mode="max"))
    ref = pfn_layer_reference(inputs, params32, last_vfe=False, mode="max")
    assert out.shape == (N, M, out_channels), out.shape
    assert jnp.allclose(out, ref, atol=2e-3, rtol=2e-3), "max/concat mismatch"

    # Perf-recommended v6e/v7x variant: tanh GELU routed through the EUP slot.
    out_fast = jax.block_until_ready(
        pfn_layer_forward(inputs, params32, last_vfe=False, mode="max",
                          approximate_gelu=True))
    assert out_fast.shape == (N, M, out_channels), out_fast.shape
    assert jnp.allclose(out_fast, ref, atol=2e-2, rtol=2e-2), "tanh-gelu mismatch"

    # --- Config 2: PFNLayer(10, 64, last_layer=True, mode='avg') with extras ---
    params64 = make_params(out_channels, k_p64)
    ad = jax.random.uniform(k_ad, (N, M), jnp.float32, 0.1, 1.0)
    nv = jax.random.randint(k_nv, (N,), 1, M + 1)
    out2 = jax.block_until_ready(
        pfn_layer_forward(inputs, params64, last_vfe=True, mode="avg",
                          num_voxels=nv, aligned_distance=ad))
    ref2 = pfn_layer_reference(inputs, params64, last_vfe=True, mode="avg",
                               num_voxels=nv, aligned_distance=ad)
    assert out2.shape == (N, 1, out_channels), out2.shape
    assert jnp.allclose(out2, ref2, atol=5e-3, rtol=5e-3), "avg/last mismatch"

    # --- Config 3: non-power-of-two M, avg pooling, concat output ---
    N3, M3 = 37, 6
    inputs3 = jax.random.normal(k_x2, (N3, M3, in_channels), dtype=jnp.float32)
    nv3 = jax.random.randint(k_nv2, (N3,), 1, M3 + 1)
    out3 = jax.block_until_ready(
        pfn_layer_forward(inputs3, params32, last_vfe=False, mode="avg",
                          num_voxels=nv3))
    ref3 = pfn_layer_reference(inputs3, params32, last_vfe=False, mode="avg",
                               num_voxels=nv3)
    assert out3.shape == (N3, M3, out_channels), out3.shape
    assert jnp.allclose(out3, ref3, atol=5e-3, rtol=5e-3), "avg/concat mismatch"

    print("KERNEL_OK")
</pallas_src>

<mosaic_0001>
module attributes {stable_mosaic.version = 11 : i64} {
  func.func @_pfn_kernel(%arg0: i32, %arg1: memref<104x80xf32, #tpu.memory_space<vmem>>, %arg2: memref<80x512xf32, #tpu.memory_space<vmem>>, %arg3: memref<1x512xf32, #tpu.memory_space<vmem>>, %arg4: memref<104x512xf32, #tpu.memory_space<vmem>>) attributes {dimension_semantics = [#tpu.dimension_semantics<parallel>], iteration_bounds = array<i64: 1>, scalar_prefetch = 0 : i64, scratch_operands = 0 : i64, tpu.core_type = #tpu.core_type<tc>, window_params = [{transform_indices = @transform_0, window_bounds = array<i64: 104, 80>}, {pipeline_mode = #tpu.pipeline_mode<synchronous>, transform_indices = @transform_1, window_bounds = array<i64: 80, 512>}, {pipeline_mode = #tpu.pipeline_mode<synchronous>, transform_indices = @transform_2, window_bounds = array<i64: 1, 512>}, {transform_indices = @transform_3, window_bounds = array<i64: 104, 512>}]} {
    %c0 = arith.constant 0 : index
    %c0_0 = arith.constant 0 : index
    %0 = vector.load %arg1[%c0, %c0_0] : memref<104x80xf32, #tpu.memory_space<vmem>>, vector<104x80xf32>
    %c0_1 = arith.constant 0 : index
    %c0_2 = arith.constant 0 : index
    %1 = vector.load %arg2[%c0_1, %c0_2] : memref<80x512xf32, #tpu.memory_space<vmem>>, vector<80x512xf32>
    %cst = arith.constant dense<0.000000e+00> : vector<104x512xf32>
    %2 = tpu.matmul %0, %1, %cst {dimension_numbers = #tpu.dot_dimension_numbers<[1], [0], [0], [1], [0, 0, 1, 1], [], []>, precision = #tpu.contract_precision<fp32>} : vector<104x80xf32>, vector<80x512xf32>, vector<104x512xf32> -> vector<104x512xf32>
    %c0_3 = arith.constant 0 : index
    %c0_4 = arith.constant 0 : index
    %3 = vector.load %arg3[%c0_3, %c0_4] : memref<1x512xf32, #tpu.memory_space<vmem>>, vector<1x512xf32>
    %4 = vector.broadcast %3 : vector<1x512xf32> to vector<104x512xf32>
    %5 = arith.addf %2, %4 : vector<104x512xf32>
    %cst_5 = arith.constant 5.000000e-01 : f32
    %6 = vector.broadcast %cst_5 : f32 to vector<104x512xf32>
    %7 = arith.mulf %6, %5 : vector<104x512xf32>
    %cst_6 = arith.constant 0.707106769 : f32
    %8 = vector.broadcast %cst_6 : f32 to vector<104x512xf32>
    %9 = arith.mulf %5, %8 : vector<104x512xf32>
    %10 = math.absf %9 : vector<104x512xf32>
    %cst_7 = arith.constant 5.000000e-01 : f32
    %11 = vector.broadcast %cst_7 : f32 to vector<104x512xf32>
    %12 = arith.mulf %11, %10 : vector<104x512xf32>
    %cst_8 = arith.constant 1.000000e+00 : f32
    %13 = vector.broadcast %cst_8 : f32 to vector<104x512xf32>
    %14 = arith.addf %13, %12 : vector<104x512xf32>
    %cst_9 = arith.constant 1.000000e+00 : f32
    %15 = vector.broadcast %cst_9 : f32 to vector<104x512xf32>
    %16 = arith.divf %15, %14 : vector<104x512xf32>
    %cst_10 = arith.constant 0.170872763 : f32
    %17 = vector.broadcast %cst_10 : f32 to vector<104x512xf32>
    %18 = arith.mulf %16, %17 : vector<104x512xf32>
    %cst_11 = arith.constant -0.822152256 : f32
    %19 = vector.broadcast %cst_11 : f32 to vector<104x512xf32>
    %20 = arith.addf %19, %18 : vector<104x512xf32>
    %21 = arith.mulf %16, %20 : vector<104x512xf32>
    %cst_12 = arith.constant 1.48851585 : f32
    %22 = vector.broadcast %cst_12 : f32 to vector<104x512xf32>
    %23 = arith.addf %22, %21 : vector<104x512xf32>
    %24 = arith.mulf %16, %23 : vector<104x512xf32>
    %cst_13 = arith.constant -1.13520396 : f32
    %25 = vector.broadcast %cst_13 : f32 to vector<104x512xf32>
    %26 = arith.addf %25, %24 : vector<104x512xf32>
    %27 = arith.mulf %16, %26 : vector<104x512xf32>
    %cst_14 = arith.constant 0.278868079 : f32
    %28 = vector.broadcast %cst_14 : f32 to vector<104x512xf32>
    %29 = arith.addf %28, %27 : vector<104x512xf32>
    %30 = arith.mulf %16, %29 : vector<104x512xf32>
    %cst_15 = arith.constant -0.186288059 : f32
    %31 = vector.broadcast %cst_15 : f32 to vector<104x512xf32>
    %32 = arith.addf %31, %30 : vector<104x512xf32>
    %33 = arith.mulf %16, %32 : vector<104x512xf32>
    %cst_16 = arith.constant 0.0967841818 : f32
    %34 = vector.broadcast %cst_16 : f32 to vector<104x512xf32>
    %35 = arith.addf %34, %33 : vector<104x512xf32>
    %36 = arith.mulf %16, %35 : vector<104x512xf32>
    %cst_17 = arith.constant 0.374091953 : f32
    %37 = vector.broadcast %cst_17 : f32 to vector<104x512xf32>
    %38 = arith.addf %37, %36 : vector<104x512xf32>
    %39 = arith.mulf %16, %38 : vector<104x512xf32>
    %cst_18 = arith.constant 1.00002372 : f32
    %40 = vector.broadcast %cst_18 : f32 to vector<104x512xf32>
    %41 = arith.addf %40, %39 : vector<104x512xf32>
    %42 = arith.mulf %16, %41 : vector<104x512xf32>
    %cst_19 = arith.constant -1.26551223 : f32
    %43 = vector.broadcast %cst_19 : f32 to vector<104x512xf32>
    %44 = arith.addf %43, %42 : vector<104x512xf32>
    %cst_20 = arith.constant 0.000000e+00 : f32
    %45 = vector.broadcast %cst_20 : f32 to vector<104x512xf32>
    %46 = arith.subf %45, %10 : vector<104x512xf32>
    %47 = arith.mulf %46, %10 : vector<104x512xf32>
    %48 = arith.addf %47, %44 : vector<104x512xf32>
    %49 = math.exp %48 : vector<104x512xf32>
    %50 = arith.mulf %16, %49 : vector<104x512xf32>
    %cst_21 = arith.constant 0.000000e+00 : f32
    %51 = vector.broadcast %cst_21 : f32 to vector<104x512xf32>
    %52 = arith.cmpf oge, %9, %51 : vector<104x512xf32>
    %cst_22 = arith.constant 1.000000e+00 : f32
    %53 = vector.broadcast %cst_22 : f32 to vector<104x512xf32>
    %54 = arith.subf %53, %50 : vector<104x512xf32>
    %cst_23 = arith.constant 1.000000e+00 : f32
    %55 = vector.broadcast %cst_23 : f32 to vector<104x512xf32>
    %56 = arith.subf %50, %55 : vector<104x512xf32>
    %57 = arith.select %52, %54, %56 : vector<104x512xi1>, vector<104x512xf32>
    %cst_24 = arith.constant 1.000000e+00 : f32
    %58 = vector.broadcast %cst_24 : f32 to vector<104x512xf32>
    %59 = arith.addf %58, %57 : vector<104x512xf32>
    %60 = arith.mulf %7, %59 : vector<104x512xf32>
    %c64_i32 = arith.constant 64 : i32
    %61 = tpu.dynamic_rotate %60 by %c64_i32 dim 1 : vector<104x512xf32>, i32 -> vector<104x512xf32>
    %62 = arith.maximumf %60, %61 : vector<104x512xf32>
    %c128_i32 = arith.constant 128 : i32
    %63 = tpu.dynamic_rotate %62 by %c128_i32 dim 1 : vector<104x512xf32>, i32 -> vector<104x512xf32>
    %64 = arith.maximumf %62, %63 : vector<104x512xf32>
    %c256_i32 = arith.constant 256 : i32
    %65 = tpu.dynamic_rotate %64 by %c256_i32 dim 1 : vector<104x512xf32>, i32 -> vector<104x512xf32>
    %66 = arith.maximumf %64, %65 : vector<104x512xf32>
    %c32_i32 = arith.constant 32 : i32
    %67 = tpu.dynamic_rotate %66 by %c32_i32 dim 1 : vector<104x512xf32>, i32 -> vector<104x512xf32>
    %68 = arith.addf %60, %67 : vector<104x512xf32>
    %c0_25 = arith.constant 0 : index
    %c0_26 = arith.constant 0 : index
    %69 = vector.load %arg4[%c0_25, %c0_26] : memref<104x512xf32, #tpu.memory_space<vmem>>, vector<104x512xf32>
    tpu.vector_store %arg4[%c0_25, %c0_26], %68 {strides = array<i32>} : memref<104x512xf32, #tpu.memory_space<vmem>>, vector<104x512xf32>,
    return
  }
  func.func @transform_0(%arg0: i32) -> (i32, i32) {
    %c0_i32 = arith.constant 0 : i32
    %c0_i32_0 = arith.constant 0 : i32
    return %arg0, %c0_i32 : i32, i32
  }
  func.func @transform_1(%arg0: i32) -> (i32, i32) {
    %c0_i32 = arith.constant 0 : i32
    %c0_i32_0 = arith.constant 0 : i32
    %c0_i32_1 = arith.constant 0 : i32
    return %c0_i32, %c0_i32_0 : i32, i32
  }
  func.func @transform_2(%arg0: i32) -> (i32, i32) {
    %c0_i32 = arith.constant 0 : i32
    %c0_i32_0 = arith.constant 0 : i32
    %c0_i32_1 = arith.constant 0 : i32
    return %c0_i32, %c0_i32_0 : i32, i32
  }
  func.func @transform_3(%arg0: i32) -> (i32, i32) {
    %c0_i32 = arith.constant 0 : i32
    %c0_i32_0 = arith.constant 0 : i32
    return %arg0, %c0_i32 : i32, i32
  }
}

</mosaic_0001>

<bundles_post_ra>
// kernel: tpu_custom_call.1
= control target key start
LH: loop header
LB: loop body
LE: loop exit
PB: predicated region body
PF: predicated region fallthrough
CT: control target
= control target key end

     0   :  { %8 = vsyncpa [#allocation3], 0  ;;  %s9516_s0 = inlined_call_operand.vmem [shape: f32[104,80], index: 0, kind: input, shape index: {}]   ;;  %s9517_s1 = inlined_call_operand.hbm [shape: f32[80,512], index: 1, kind: input, shape index: {}]   ;;  %s9518_s2 = inlined_call_operand.vmem [shape: f32[1,512], index: 2, kind: input, shape index: {}]   ;;  %s9519_s3 = inlined_call_operand.hbm [shape: f32[104,512], index: 3, kind: output, shape index: {}]  }
   0x1   :  { %9 = vsyncpa [#allocation4], 0  ;;  %s5997_s12 = smov [#allocation2]   ;;  %s5949_s16 = scalar_lea.hbm %s9517_s1, 5120 }
   0x2   :  { %s17_s13 = sshll.u32 %s5997_s12, 4  ;;  %p5950_p0 = scmp.ne.s32.totalorder %s9517_s1, %s5949_s16  ;;  %s18_s13 = int_to_ptr.vmem [resolvable:$true] %s17_s13 }
   0x3   :  { %p5953_p1 = scmp.lt.u32.totalorder %s5949_s16, %s9517_s1 }
   0x5   :  { %p5955_p2 = pnand %p5953_p1, %p5950_p0 }
   0x7   :  { %5958 = shalt.err (!%p5955_p2)
}
   0x8   :  { %s5959_s21 = scalar_lea.vmem %s18_s13, 5120  ;;  %p5964_p4 = scmp.lt.s32.totalorder %s18_s13, %s18_s13 }
   0x9   :  { %p5960_p3 = scmp.ne.s32.totalorder %s18_s13, %s5959_s21  ;;  %p5965_p5 = scmp.lt.s32.totalorder %s5959_s21, %s5959_s21 }
   0xb   :  { %p5966_p6 = por %p5965_p5, %p5964_p4 }
   0xd   :  { %p5967_p7 = pnand %p5966_p6, %p5960_p3 }
   0xf   :  { %5970 = shalt.err (!%p5967_p7)
}
  0x10   :  { %s5998_s22 = smov 512   ;;  %s5999_s23 = smov 32  }
  0x11   :  { %23 = dma.hbm_to_vmem [thread:$0]  %s9517_s1, 5120, %s18_s13, [#allocation3], %s5998_s22, %s5998_s22, %s5999_s23  }
  0x12   :  { %5993 = dma.done.wait [#allocation3], 5120  }
  0x13   :  { %5994 = vsyncadd [#allocation3], 4294962176  ;;  %v9520_v0 = vmov 0.0   ;;  %v43_v1 = vld [vmem:[#allocation2 + $0x8] sm:$0xff]  ;;  %v45_v3 = vld [vmem:[#allocation2 + $0x18] sm:$0xff]  ;;  %vm104_vm0 = vcmask 654336  }
  0x14   :  { %228 = vmatprep.mubr.f32.mxu0 %v9520_v0  ;;  %1515 = vmatprep.mubr.f32.mxu1 %v9520_v0  ;;  %v47_v2 = vld [vmem:[#allocation2 + $0x28] sm:$0xff]  ;;  %v144_v4 = vand.u32 4294901760, %v43_v1  ;;  %v49_v6 = vld [vmem:[#allocation2 + $0x38] sm:$0xff]  ;;  %v1431_v7 = vand.u32 4294901760, %v45_v3  ;;  %v42_v8 = vld [vmem:[#allocation2] sm:$0xff]  ;;  %s6002_s26 = smov [#allocation5]  }
  0x15   :  { %v148_v5 = vand.u32 4294901760, %v47_v2  ;;  %v46_v9 = vld [vmem:[#allocation2 + $0x20] sm:$0xff]  ;;  %v1435_v10 = vand.u32 4294901760, %v49_v6  ;;  %v146_v11 = vand.u32 4294901760, %v42_v8  ;;  %v44_v13 = vld [vmem:[#allocation2 + $0x10] sm:$0xff]  ;;  %v51_v15 = vld [vmem:[#allocation2 + $0x48] sm:$0xff] }
  0x16   :  { %v150_v12 = vand.u32 4294901760, %v46_v9  ;;  %v48_v14 = vld [vmem:[#allocation2 + $0x30] sm:$0xff]  ;;  %v6042_v17 = vsub.f32 %v43_v1, %v144_v4  ;;  %v6046_v19 = vsub.f32 %v45_v3, %v1431_v7  ;;  %v55_v20 = vld [vmem:[#allocation2 + $0x68] sm:$0xff]  ;;  %v53_v21 = vld [vmem:[#allocation2 + $0x58] sm:$0xff]  ;;  %v1433_v29 = vand.u32 4294901760, %v44_v13  ;;  %s5119_s27 = sshll.u32 %s6002_s26, 4  ;;  %s5120_s27 = int_to_ptr.vmem [resolvable:$true] %s5119_s27 }
  0x17   :  { %v6040_v16 = vpack.c.bf16 %v148_v5, %v144_v4  ;;  %v6044_v18 = vsub.f32 %v47_v2, %v148_v5  ;;  %v57_v22 = vld [vmem:[#allocation2 + $0x78] sm:$0xff]  ;;  %v6048_v23 = vpack.c.bf16 %v1435_v10, %v1431_v7  ;;  %v6050_v24 = vsub.f32 %v49_v6, %v1435_v10  ;;  %v50_v27 = vld [vmem:[#allocation2 + $0x40] sm:$0xff]  ;;  %v52_v37 = vld [vmem:[#allocation2 + $0x50] sm:$0xff]  ;;  %s5971_s28 = scalar_lea.vmem %s5120_s27, 6656  ;;  %p5976_p9 = scmp.lt.s32.totalorder %s5120_s27, %s5120_s27 }
  0x18   :  { %v6052_v25 = vpack.c.bf16 %v150_v12, %v146_v11  ;;  %v6054_v26 = vsub.f32 %v42_v8, %v146_v11  ;;  %v6057_v28 = vsub.f32 %v46_v9, %v150_v12  ;;  %v1437_v30 = vand.u32 4294901760, %v48_v14  ;;  %v54_v32 = vld [vmem:[#allocation2 + $0x60] sm:$0xff]  ;;  %v56_v38 = vld [vmem:[#allocation2 + $0x70] sm:$0xff]  ;;  %v59_v43 = vld [vmem:[#allocation2 + $0x88] sm:$0xff]  ;;  %p5972_p8 = scmp.ne.s32.totalorder %s5120_s27, %s5971_s28  ;;  %p5977_p10 = scmp.lt.s32.totalorder %s5971_s28, %s5971_s28 }
  0x19   :  { %9843 = vst [vmem:[#allocation8_spill] sm:$0xff] %v6040_v16  ;;  %9844 = vst [vmem:[#allocation9_spill] sm:$0xff] %v6048_v23  ;;  %5184 = vmatprep.subr.bf16.mxu0 %v6040_v16  ;;  %v152_v31 = vand.u32 4294901760, %v51_v15  ;;  %5304 = vmatprep.subr.bf16.mxu1 %v6048_v23  ;;  %v156_v33 = vand.u32 4294901760, %v55_v20  ;;  %v1439_v34 = vand.u32 4294901760, %v53_v21  ;;  %v1443_v35 = vand.u32 4294901760, %v57_v22 }
  0x1a   :  { %9845 = vst [vmem:[#allocation10_spill] sm:$0xff] %v6052_v25  ;;  %5186 = vmatpush1.bf16.msra.mxu0 %v6052_v25  ;;  %v154_v36 = vand.u32 4294901760, %v50_v27  ;;  %v6061_v39 = vpack.c.bf16 %v1437_v30, %v1433_v29  ;;  %v6063_v40 = vsub.f32 %v44_v13, %v1433_v29  ;;  %v6065_v41 = vsub.f32 %v48_v14, %v1437_v30  ;;  %v63_v44 = vld [vmem:[#allocation2 + $0xa8] sm:$0xff]  ;;  %v61_v45 = vld [vmem:[#allocation2 + $0x98] sm:$0xff]  ;;  %v58_v59 = vld [vmem:[#allocation2 + $0x80] sm:$0xff]  ;;  %p5978_p11 = por %p5977_p10, %p5976_p9 }
  0x1b   :  { %v6067_v42 = vsub.f32 %v51_v15, %v152_v31  ;;  %v6069_v46 = vpack.c.bf16 %v156_v33, %v152_v31  ;;  %v6071_v47 = vsub.f32 %v55_v20, %v156_v33  ;;  %v6073_v48 = vpack.c.bf16 %v1443_v35, %v1439_v34  ;;  %v65_v50 = vld [vmem:[#allocation2 + $0xb8] sm:$0xff]  ;;  %v62_v60 = vld [vmem:[#allocation2 + $0xa0] sm:$0xff]  ;;  %v60_v2 = vld [vmem:[#allocation2 + $0x90] sm:$0xff] }
  0x1c   :  { %9846 = vst [vmem:[#allocation11_spill] sm:$0xff] %v6061_v39  ;;  %v6075_v49 = vsub.f32 %v53_v21, %v1439_v34  ;;  %5306 = vmatpush1.bf16.msra.mxu1 %v6061_v39  ;;  %v6078_v51 = vsub.f32 %v57_v22, %v1443_v35  ;;  %v158_v52 = vand.u32 4294901760, %v54_v32  ;;  %v6080_v53 = vsub.f32 %v50_v27, %v154_v36  ;;  %v64_v3 = vld [vmem:[#allocation2 + $0xb0] sm:$0xff]  ;;  %v67_v4 = vld [vmem:[#allocation2 + $0xc8] sm:$0xff]  ;;  %v69_v10 = vld [vmem:[#allocation2 + $0xd8] sm:$0xff]  ;;  %p5979_p12 = pnand %p5978_p11, %p5972_p8 }
  0x1d   :  { %9847 = vst [vmem:[#allocation12_spill] sm:$0xff] %v6069_v46  ;;  %9848 = vst [vmem:[#allocation13_spill] sm:$0xff] %v6073_v48  ;;  %v1441_v54 = vand.u32 4294901760, %v52_v37  ;;  %5188 = vmatprep.subr.bf16.mxu0 %v6069_v46  ;;  %5308 = vmatprep.subr.bf16.mxu1 %v6073_v48  ;;  %v1445_v55 = vand.u32 4294901760, %v56_v38  ;;  %v160_v56 = vand.u32 4294901760, %v59_v43  ;;  %v164_v57 = vand.u32 4294901760, %v63_v44 }
  0x1e   :  { %v1447_v58 = vand.u32 4294901760, %v61_v45  ;;  %v6084_v61 = vpack.c.bf16 %v158_v52, %v154_v36  ;;  %v6086_v62 = vsub.f32 %v54_v32, %v158_v52  ;;  %v1451_v1 = vand.u32 4294901760, %v65_v50  ;;  %v71_v9 = vld [vmem:[#allocation2 + $0xe8] sm:$0xff]  ;;  %v73_v11 = vld [vmem:[#allocation2 + $0xf8] sm:$0xff]  ;;  %v66_v33 = vld [vmem:[#allocation2 + $0xc0] sm:$0xff] }
  0x1f   :  { %v6088_v63 = vsub.f32 %v52_v37, %v1441_v54  ;;  %v6090_v5 = vpack.c.bf16 %v1445_v55, %v1441_v54  ;;  %v6092_v6 = vsub.f32 %v56_v38, %v1445_v55  ;;  %v6094_v7 = vpack.c.bf16 %v164_v57, %v160_v56  ;;  %v70_v38 = vld [vmem:[#allocation2 + $0xe0] sm:$0xff]  ;;  %v75_v55 = vld [vmem:[#allocation2 + $0x108] sm:$0xff]  ;;  %v32_v25 = vld [vmem:[%s9516_s0 + $0x18] sm:$0xff] }
  0x20   :  { %9849 = vst [vmem:[#allocation14_spill] sm:$0xff] %v6084_v61  ;;  %v6096_v8 = vsub.f32 %v59_v43, %v160_v56  ;;  %5190 = vmatpush1.bf16.msra.mxu0 %v6084_v61  ;;  %v6099_v12 = vsub.f32 %v63_v44, %v164_v57  ;;  %v6101_v13 = vpack.c.bf16 %v1451_v1, %v1447_v58  ;;  %v162_v20 = vand.u32 4294901760, %v58_v59  ;;  %v68_v43 = vld [vmem:[#allocation2 + $0xd0] sm:$0xff]  ;;  %v79_v56 = vld [vmem:[#allocation2 + $0x128] sm:$0xff]  ;;  %v77_v57 = vld [vmem:[#allocation2 + $0x118] sm:$0xff] }
  0x21   :  { %9850 = vst [vmem:[#allocation15_spill] sm:$0xff] %v6090_v5  ;;  %9851 = vst [vmem:[#allocation16_spill] sm:$0xff] %v6094_v7  ;;  %v6103_v14 = vsub.f32 %v61_v45, %v1447_v58  ;;  %v6105_v15 = vsub.f32 %v65_v50, %v1451_v1  ;;  %5310 = vmatpush1.bf16.msra.mxu1 %v6090_v5  ;;  %5192 = vmatprep.subr.bf16.mxu0 %v6094_v7  ;;  %v166_v21 = vand.u32 4294901760, %v62_v60  ;;  %v72_v44 = vld [vmem:[#allocation2 + $0xf0] sm:$0xff]  ;;  %v78_v0 = vld [vmem:[#allocation2 + $0x120] sm:$0xff] }
  0x22   :  { %9852 = vst [vmem:[#allocation17_spill] sm:$0xff] %v6101_v13  ;;  %v1449_v22 = vand.u32 4294901760, %v60_v2  ;;  %v1453_v27 = vand.u32 4294901760, %v64_v3  ;;  %5312 = vmatprep.subr.bf16.mxu1 %v6101_v13  ;;  %v168_v29 = vand.u32 4294901760, %v67_v4  ;;  %v172_v30 = vand.u32 4294901760, %v71_v9 }
  0x23   :  { %v1455_v31 = vand.u32 4294901760, %v69_v10  ;;  %v1459_v32 = vand.u32 4294901760, %v73_v11  ;;  %v6110_v34 = vpack.c.bf16 %v166_v21, %v162_v20  ;;  %v6112_v35 = vsub.f32 %v58_v59, %v162_v20 }
  0x24   :  { %v6114_v36 = vsub.f32 %v62_v60, %v166_v21  ;;  %v6116_v37 = vpack.c.bf16 %v1453_v27, %v1449_v22  ;;  %v6118_v45 = vsub.f32 %v60_v2, %v1449_v22  ;;  %v6120_v50 = vsub.f32 %v64_v3, %v1453_v27 }
  0x25   :  { %9853 = vst [vmem:[#allocation18_spill] sm:$0xff] %v6110_v34  ;;  %v6122_v52 = vpack.c.bf16 %v172_v30, %v168_v29  ;;  %v6124_v54 = vsub.f32 %v67_v4, %v168_v29  ;;  %5194 = vmatpush1.bf16.msra.mxu0 %v6110_v34  ;;  %v6128_v58 = vsub.f32 %v71_v9, %v172_v30  ;;  %v170_v1 = vand.u32 4294901760, %v66_v33  ;;  %v81_v9 = vld [vmem:[#allocation2 + $0x138] sm:$0xff]  ;;  %v74_v30 = vld [vmem:[#allocation2 + $0x100] sm:$0xff] }
  0x26   :  { %9854 = vst [vmem:[#allocation19_spill] sm:$0xff] %v6116_v37  ;;  %5314 = vmatpush1.bf16.msra.mxu1 %v6116_v37  ;;  %v6130_v59 = vpack.c.bf16 %v1459_v32, %v1455_v31  ;;  %v6132_v60 = vsub.f32 %v69_v10, %v1455_v31  ;;  %v6135_v2 = vsub.f32 %v73_v11, %v1459_v32  ;;  %v174_v3 = vand.u32 4294901760, %v70_v38  ;;  %v76_v32 = vld [vmem:[#allocation2 + $0x110] sm:$0xff] }
  0x27   :  { %9855 = vst [vmem:[#allocation20_spill] sm:$0xff] %v6122_v52  ;;  %5196 = vmatprep.subr.bf16.mxu0 %v6122_v52  ;;  %v1457_v4 = vand.u32 4294901760, %v68_v43  ;;  %v1461_v20 = vand.u32 4294901760, %v72_v44  ;;  %v6138_v21 = vsub.f32 %v66_v33, %v170_v1  ;;  %v176_v22 = vand.u32 4294901760, %v75_v55  ;;  %v80_v37 = vld [vmem:[#allocation2 + $0x130] sm:$0xff]  ;;  %v29_v33 = vld [vmem:[%s9516_s0] sm:$0xff] }
  0x28   :  { %9856 = vst [vmem:[#allocation21_spill] sm:$0xff] %v6130_v59  ;;  %5316 = vmatprep.subr.bf16.mxu1 %v6130_v59  ;;  %v180_v27 = vand.u32 4294901760, %v79_v56  ;;  %v1463_v29 = vand.u32 4294901760, %v77_v57  ;;  %v6140_v10 = vpack.c.bf16 %v174_v3, %v170_v1  ;;  %v6142_v31 = vsub.f32 %v70_v38, %v174_v3 }
  0x29   :  { %v6144_v52 = vpack.c.bf16 %v1461_v20, %v1457_v4  ;;  %v6146_v11 = vsub.f32 %v68_v43, %v1457_v4  ;;  %v6151_v59 = vsub.f32 %v72_v44, %v1461_v20  ;;  %v6155_v13 = vsub.f32 %v75_v55, %v176_v22 }
  0x2a   :  { %9857 = vst [vmem:[#allocation22_spill] sm:$0xff] %v6140_v10  ;;  %v6153_v34 = vpack.c.bf16 %v180_v27, %v176_v22  ;;  %v6157_v1 = vsub.f32 %v79_v56, %v180_v27  ;;  %5198 = vmatpush1.bf16.msra.mxu0 %v6140_v10  ;;  %v1467_v38 = vand.u32 4294901760, %v81_v9  ;;  %v6161_v43 = vsub.f32 %v77_v57, %v1463_v29  ;;  %v30_v57 = vld [vmem:[%s9516_s0 + $0x8] sm:$0xff] }
  0x2b   :  { %9858 = vst [vmem:[#allocation23_spill] sm:$0xff] %v6144_v52  ;;  %5318 = vmatpush1.bf16.msra.mxu1 %v6144_v52  ;;  %v178_v3 = vand.u32 4294901760, %v74_v30  ;;  %v182_v4 = vand.u32 4294901760, %v78_v0  ;;  %v1465_v7 = vand.u32 4294901760, %v76_v32  ;;  %v1469_v44 = vand.u32 4294901760, %v80_v37 }
  0x2c   :  { %9859 = vst [vmem:[#allocation24_spill] sm:$0xff] %v6153_v34  ;;  %5200 = vmatprep.subr.bf16.mxu0 %v6153_v34  ;;  %v106_v20 = vsel %vm104_vm0, %v29_v33, 0  ;;  %v9542_v55 = vand.u32 4294901760, %v6042_v17  ;;  %v6166_v22 = vpack.c.bf16 %v1467_v38, %v1463_v29  ;;  %v6168_v56 = vsub.f32 %v81_v9, %v1467_v38 }
  0x2d   :  { %v6170_v27 = vpack.c.bf16 %v182_v4, %v178_v3  ;;  %v6172_v52 = vsub.f32 %v74_v30, %v178_v3  ;;  %v6177_v10 = vsub.f32 %v78_v0, %v182_v4  ;;  %v6179_v34 = vpack.c.bf16 %v1469_v44, %v1465_v7 }
  0x2e   :  { %9860 = vst [vmem:[#allocation25_spill] sm:$0xff] %v6166_v22  ;;  %v6181_v5 = vsub.f32 %v76_v32, %v1465_v7  ;;  %v6183_v33 = vsub.f32 %v80_v37, %v1469_v44  ;;  %5320 = vmatprep.subr.bf16.mxu1 %v6166_v22  ;;  %v6187_v9 = vand.u32 4294901760, %v106_v20  ;;  %v375_v29 = vsub.f32 %v6042_v17, %v9542_v55 }
  0x2f   :  { %9861 = vst [vmem:[#allocation26_spill] sm:$0xff] %v6170_v27  ;;  %9862 = vst [vmem:[#allocation27_spill] sm:$0xff] %v6179_v34  ;;  %5202 = vmatpush1.bf16.msra.mxu0 %v6170_v27  ;;  %v9545_v30 = vand.u32 4294901760, %v6044_v18  ;;  %v9550_v0 = vand.u32 4294901760, %v6054_v26  ;;  %5322 = vmatpush1.bf16.msra.mxu1 %v6179_v34  ;;  %v9551_v7 = vand.u32 4294901760, %v6057_v28  ;;  %v109_v37 = vsel %vm104_vm0, %v30_v57, 0 }
  0x30   :  { %v9556_v32 = vand.u32 4294901760, %v6046_v19  ;;  %v9559_v38 = vand.u32 4294901760, %v6050_v24  ;;  %v6200_v3 = vsub.f32 %v106_v20, %v6187_v9  ;;  %v376_v4 = vand.u32 4294901760, %v375_v29 }
  0x31   :  { %v387_v44 = vsub.f32 %v6044_v18, %v9545_v30  ;;  %v381_v55 = vsub.f32 %v6054_v26, %v9550_v0  ;;  %v393_v57 = vsub.f32 %v6057_v28, %v9551_v7  ;;  %v6211_v34 = vand.u32 4294901760, %v109_v37  ;;  %v31_v7 = vld [vmem:[%s9516_s0 + $0x10] sm:$0xff] }
  0x32   :  { %9863 = vst [vmem:[#allocation28_spill] sm:$0xff] %v6200_v3  ;;  %v1662_v20 = vsub.f32 %v6046_v19, %v9556_v32  ;;  %v1674_v29 = vsub.f32 %v6050_v24, %v9559_v38  ;;  %v6220_v30 = vand.u32 4294901760, %v6200_v3  ;;  %v9566_v0 = vand.u32 4294901760, %v6063_v40 }
  0x33   :  { %v388_v27 = vand.u32 4294901760, %v387_v44  ;;  %v382_v22 = vand.u32 4294901760, %v381_v55  ;;  %v394_v61 = vand.u32 4294901760, %v393_v57  ;;  %v6227_v48 = vsub.f32 %v109_v37, %v6211_v34 }
  0x34   :  { %9864 = vst [vmem:[#allocation29_spill] sm:$0xff] %v6220_v30  ;;  %v1663_v32 = vand.u32 4294901760, %v1662_v20  ;;  %v1675_v46 = vand.u32 4294901760, %v1674_v29  ;;  %v232_v38 = vsub.f32 %v6200_v3, %v6220_v30  ;;  %v1668_v55 = vsub.f32 %v6063_v40, %v9566_v0 }
  0x35   :  { %9865 = vst [vmem:[#allocation30_spill] sm:$0xff] %v6227_v48  ;;  %v5203_v39 = vpack.c.bf16 %v388_v27, %v376_v4  ;;  %v9569_v44 = vand.u32 4294901760, %v6065_v41  ;;  %v5205_v57 = vpack.c.bf16 %v394_v61, %v382_v22  ;;  %v6239_v37 = vand.u32 4294901760, %v6227_v48 }
  0x36   :  { %v5323_v20 = vpack.c.bf16 %v1675_v46, %v1663_v32  ;;  %v112_v29 = vsel %vm104_vm0, %v31_v7, 0  ;;  %v233_v23 = vand.u32 4294901760, %v232_v38  ;;  %v1669_v27 = vand.u32 4294901760, %v1668_v55 }
  0x37   :  { %9866 = vst [vmem:[#allocation31_spill] sm:$0xff] %v6239_v37  ;;  %5204 = vmatprep.subr.bf16.mxu0 %v5203_v39  ;;  %v1680_v4 = vsub.f32 %v6065_v41, %v9569_v44  ;;  %v6245_v0 = vand.u32 4294901760, %v112_v29  ;;  %v243_v30 = vsub.f32 %v6227_v48, %v6239_v37  ;;  %v9570_v61 = vand.u32 4294901760, %v6067_v42 }
  0x38   :  { %5324 = vmatprep.subr.bf16.mxu1 %v5323_v20  ;;  %v9571_v22 = vand.u32 4294901760, %v6071_v47  ;;  %v115_v46 = vsel %vm104_vm0, %v32_v25, 0  ;;  %234 = vmatmul.mubr.f32.vlgmr.msra.gmra.mrb[0].mxu0 %v233_v23  ;;  %v9576_v38 = vand.u32 4294901760, %v6080_v53  ;;  %v9869_v55 = vmov 0.0  }
  0x39   :  { %1521 = vmatmul.mubr.f32.vlgmr.msra.gmra.mrb[0].mxu1 %v233_v23  ;;  %v1681_v39 = vand.u32 4294901760, %v1680_v4  ;;  %v6253_v7 = vsub.f32 %v112_v29, %v6245_v0  ;;  %v6255_v32 = vand.u32 4294901760, %v115_v46  ;;  %5206 = vmatpush1.bf16.msra.mxu0 %v5205_v57  ;;  %v244_v20 = vand.u32 4294901760, %v243_v30 }
  0x3a   :  { %239 = vmatprep.mubr.f32.mxu0 %v9869_v55  ;;  %v399_v44 = vsub.f32 %v6067_v42, %v9570_v61  ;;  %v411_v23 = vsub.f32 %v6071_v47, %v9571_v22  ;;  %v9579_v25 = vand.u32 4294901760, %v6086_v62  ;;  %1526 = vmatprep.mubr.f32.mxu1 %v9869_v55  ;;  %v405_v30 = vsub.f32 %v6080_v53, %v9576_v38  ;;  %v33_v61 = vld [vmem:[%s9516_s0 + $0x20] sm:$0xff] }
  0x3b   :  { %9867 = vst [vmem:[#allocation32_spill] sm:$0xff] %v6253_v7  ;;  %9868 = vst [vmem:[#allocation33_spill] sm:$0xff] %v6255_v32  ;;  %v5325_v29 = vpack.c.bf16 %v1681_v39, %v1669_v27  ;;  %v6268_v4 = vand.u32 4294901760, %v6253_v7  ;;  %v6271_v57 = vsub.f32 %v115_v46, %v6255_v32  ;;  %v9582_v39 = vand.u32 4294901760, %v6075_v49 }
  0x3c   :  { %v400_v22 = vand.u32 4294901760, %v399_v44  ;;  %v412_v37 = vand.u32 4294901760, %v411_v23  ;;  %v417_v27 = vsub.f32 %v6086_v62, %v9579_v25  ;;  %245 = vmatmul.mubr.f32.gmra.mrb[2].mxu0 %v244_v20  ;;  %v406_v38 = vand.u32 4294901760, %v405_v30 }
  0x3d   :  { %9870 = vst [vmem:[#allocation34_spill] sm:$0xff] %v6268_v4  ;;  %9871 = vst [vmem:[#allocation35_spill] sm:$0xff] %v6271_v57  ;;  %1532 = vmatmul.mubr.f32.gmra.mrb[2].mxu1 %v244_v20  ;;  %v254_v46 = vsub.f32 %v6253_v7, %v6268_v4  ;;  %v6286_v48 = vand.u32 4294901760, %v6271_v57  ;;  %v9592_v3 = vand.u32 4294901760, %v6078_v51  ;;  %250 = vmatprep.mubr.f32.mxu0 %v9869_v55  ;;  %v118_v20 = vsel %vm104_vm0, %v33_v61, 0  ;;  %v34_v4 = vld [vmem:[%s9516_s0 + $0x28] sm:$0xff] }
  0x3e   :  { %5326 = vmatpush1.bf16.msra.mxu1 %v5325_v29  ;;  %v5207_v44 = vpack.c.bf16 %v412_v37, %v400_v22  ;;  %v418_v23 = vand.u32 4294901760, %v417_v27  ;;  %v1686_v25 = vsub.f32 %v6075_v49, %v9582_v39  ;;  %1537 = vmatprep.mubr.f32.mxu1 %v9869_v55  ;;  %v6303_v22 = vand.u32 4294901760, %v118_v20 }
  0x3f   :  { %9872 = vst [vmem:[#allocation36_spill] sm:$0xff] %v6286_v48  ;;  %v255_v30 = vand.u32 4294901760, %v254_v46  ;;  %v265_v29 = vsub.f32 %v6271_v57, %v6286_v48  ;;  %v1698_v37 = vsub.f32 %v6078_v51, %v9592_v3  ;;  %v9591_v61 = vand.u32 4294901760, %v6088_v63 }
  0x40   :  { %9873 = vst [vmem:[#allocation37_spill] sm:$0xff] %v6303_v22  ;;  %5208 = vmatprep.subr.bf16.mxu0 %v5207_v44  ;;  %v5209_v27 = vpack.c.bf16 %v418_v23, %v406_v38  ;;  %v1687_v39 = vand.u32 4294901760, %v1686_v25  ;;  %v9593_v7 = vand.u32 4294901760, %v6092_v6  ;;  %v6308_v32 = vsub.f32 %v118_v20, %v6303_v22 }
  0x41   :  { %256 = vmatmul.mubr.f32.gmra.mrb[4].mxu0 %v255_v30  ;;  %1543 = vmatmul.mubr.f32.gmra.mrb[4].mxu1 %v255_v30  ;;  %v266_v16 = vand.u32 4294901760, %v265_v29  ;;  %v1699_v46 = vand.u32 4294901760, %v1698_v37  ;;  %v121_v48 = vsel %vm104_vm0, %v34_v4, 0  ;;  %v1692_v38 = vsub.f32 %v6088_v63, %v9591_v61  ;;  %v35_v37 = vld [vmem:[%s9516_s0 + $0x30] sm:$0xff] }
  0x42   :  { %9874 = vst [vmem:[#allocation38_spill] sm:$0xff] %v6308_v32  ;;  %261 = vmatprep.mubr.f32.mxu0 %v9869_v55  ;;  %1548 = vmatprep.mubr.f32.mxu1 %v9869_v55  ;;  %v1704_v25 = vsub.f32 %v6092_v6, %v9593_v7  ;;  %v6319_v44 = vand.u32 4294901760, %v121_v48  ;;  %v9594_v23 = vand.u32 4294901760, %v6096_v8  ;;  %v6323_v4 = vand.u32 4294901760, %v6308_v32 }
  0x43   :  { %5210 = vmatpush1.bf16.msra.mxu0 %v5209_v27  ;;  %v5327_v20 = vpack.c.bf16 %v1699_v46, %v1687_v39  ;;  %v9599_v30 = vand.u32 4294901760, %v6099_v12  ;;  %v9602_v29 = vand.u32 4294901760, %v6112_v35  ;;  %v1693_v61 = vand.u32 4294901760, %v1692_v38 }
  0x44   :  { %9875 = vst [vmem:[#allocation39_spill] sm:$0xff] %v6319_v44  ;;  %9876 = vst [vmem:[#allocation40_spill] sm:$0xff] %v6323_v4  ;;  %v1705_v3 = vand.u32 4294901760, %v1704_v25  ;;  %v6331_v7 = vsub.f32 %v121_v48, %v6319_v44  ;;  %v423_v39 = vsub.f32 %v6096_v8, %v9594_v23  ;;  %v276_v27 = vsub.f32 %v6308_v32, %v6323_v4 }
  0x45   :  { %267 = vmatmul.mubr.f32.gmra.mrb[6].mxu0 %v266_v16  ;;  %1554 = vmatmul.mubr.f32.gmra.mrb[6].mxu1 %v266_v16  ;;  %v435_v46 = vsub.f32 %v6099_v12, %v9599_v30  ;;  %v429_v38 = vsub.f32 %v6112_v35, %v9602_v29  ;;  %v9607_v48 = vand.u32 4294901760, %v6114_v36  ;;  %v124_v4 = vsel %vm104_vm0, %v35_v37, 0 }
  0x46   :  { %9877 = vst [vmem:[#allocation41_spill] sm:$0xff] %v6331_v7  ;;  %272 = vmatprep.mubr.f32.mxu0 %v9869_v55  ;;  %1559 = vmatprep.mubr.f32.mxu1 %v9869_v55  ;;  %v5329_v25 = vpack.c.bf16 %v1705_v3, %v1693_v61  ;;  %v6348_v16 = vand.u32 4294901760, %v6331_v7  ;;  %v424_v23 = vand.u32 4294901760, %v423_v39  ;;  %v277_v32 = vand.u32 4294901760, %v276_v27 }
  0x47   :  { %5328 = vmatprep.subr.bf16.mxu1 %v5327_v20  ;;  %v436_v30 = vand.u32 4294901760, %v435_v46  ;;  %v430_v57 = vand.u32 4294901760, %v429_v38  ;;  %v441_v29 = vsub.f32 %v6114_v36, %v9607_v48  ;;  %v6356_v22 = vand.u32 4294901760, %v124_v4  ;;  %v36_v20 = vld [vmem:[%s9516_s0 + $0x38] sm:$0xff] }
  0x48   :  { %9878 = vst [vmem:[#allocation42_spill] sm:$0xff] %v6348_v16  ;;  %5330 = vmatpush1.bf16.msra.mxu1 %v5329_v25  ;;  %v287_v44 = vsub.f32 %v6331_v7, %v6348_v16  ;;  %v9608_v3 = vand.u32 4294901760, %v6103_v14  ;;  %v9609_v61 = vand.u32 4294901760, %v6105_v15  ;;  %v9614_v27 = vand.u32 4294901760, %v6118_v45 }
  0x49   :  { %9879 = vst [vmem:[#allocation43_spill] sm:$0xff] %v6356_v22  ;;  %278 = vmatmul.mubr.f32.gmra.mrb[8].mxu0 %v277_v32  ;;  %1565 = vmatmul.mubr.f32.gmra.mrb[8].mxu1 %v277_v32  ;;  %v5211_v37 = vpack.c.bf16 %v436_v30, %v424_v23  ;;  %v442_v39 = vand.u32 4294901760, %v441_v29  ;;  %v9615_v46 = vand.u32 4294901760, %v6120_v50  ;;  %v6368_v25 = vsub.f32 %v124_v4, %v6356_v22  ;;  %v37_v23 = vld [vmem:[%s9516_s0 + $0x40] sm:$0xff] }
  0x4a   :  { %283 = vmatprep.mubr.f32.mxu0 %v9869_v55  ;;  %1570 = vmatprep.mubr.f32.mxu1 %v9869_v55  ;;  %v288_v38 = vand.u32 4294901760, %v287_v44  ;;  %v1710_v48 = vsub.f32 %v6103_v14, %v9608_v3  ;;  %v1722_v32 = vsub.f32 %v6105_v15, %v9609_v61  ;;  %v1716_v44 = vsub.f32 %v6118_v45, %v9614_v27 }
  0x4b   :  { %9880 = vst [vmem:[#allocation44_spill] sm:$0xff] %v6368_v25  ;;  %5212 = vmatprep.subr.bf16.mxu0 %v5211_v37  ;;  %v5213_v30 = vpack.c.bf16 %v442_v39, %v430_v57  ;;  %v1728_v4 = vsub.f32 %v6120_v50, %v9615_v46  ;;  %v127_v29 = vsel %vm104_vm0, %v36_v20, 0  ;;  %v6387_v3 = vand.u32 4294901760, %v6368_v25 }
  0x4c   :  { %v1711_v61 = vand.u32 4294901760, %v1710_v48  ;;  %v1723_v16 = vand.u32 4294901760, %v1722_v32  ;;  %v6389_v7 = vand.u32 4294901760, %v127_v29  ;;  %v1717_v57 = vand.u32 4294901760, %v1716_v44 }
  0x4d   :  { %9881 = vst [vmem:[#allocation45_spill] sm:$0xff] %v6387_v3  ;;  %289 = vmatmul.mubr.f32.gmra.mrb[10].mxu0 %v288_v38  ;;  %1576 = vmatmul.mubr.f32.gmra.mrb[10].mxu1 %v288_v38  ;;  %v1729_v37 = vand.u32 4294901760, %v1728_v4  ;;  %v130_v39 = vsel %vm104_vm0, %v37_v23, 0  ;;  %v9618_v27 = vand.u32 4294901760, %v6124_v54  ;;  %v298_v20 = vsub.f32 %v6368_v25, %v6387_v3  ;;  %v38_v38 = vld [vmem:[%s9516_s0 + $0x48] sm:$0xff] }
  0x4e   :  { %9882 = vst [vmem:[#allocation46_spill] sm:$0xff] %v6389_v7  ;;  %5214 = vmatpush1.bf16.msra.mxu0 %v5213_v30  ;;  %294 = vmatprep.mubr.f32.mxu0 %v9869_v55  ;;  %v5331_v46 = vpack.c.bf16 %v1723_v16, %v1711_v61  ;;  %v6397_v48 = vsub.f32 %v127_v29, %v6389_v7  ;;  %v6399_v32 = vand.u32 4294901760, %v130_v39  ;;  %v9620_v44 = vand.u32 4294901760, %v6128_v58 }
  0x4f   :  { %1581 = vmatprep.mubr.f32.mxu1 %v9869_v55  ;;  %v5333_v23 = vpack.c.bf16 %v1729_v37, %v1717_v57  ;;  %v447_v30 = vsub.f32 %v6124_v54, %v9618_v27  ;;  %v9619_v16 = vand.u32 4294901760, %v6138_v21  ;;  %v299_v61 = vand.u32 4294901760, %v298_v20 }
  0x50   :  { %9883 = vst [vmem:[#allocation47_spill] sm:$0xff] %v6397_v48  ;;  %9884 = vst [vmem:[#allocation48_spill] sm:$0xff] %v6399_v32  ;;  %5332 = vmatprep.subr.bf16.mxu1 %v5331_v46  ;;  %v6411_v4 = vand.u32 4294901760, %v6397_v48  ;;  %v6414_v29 = vsub.f32 %v130_v39, %v6399_v32  ;;  %v9629_v3 = vand.u32 4294901760, %v6142_v31  ;;  %v459_v37 = vsub.f32 %v6128_v58, %v9620_v44 }
  0x51   :  { %5334 = vmatpush1.bf16.msra.mxu1 %v5333_v23  ;;  %v448_v57 = vand.u32 4294901760, %v447_v30  ;;  %v453_v27 = vsub.f32 %v6138_v21, %v9619_v16  ;;  %v133_v46 = vsel %vm104_vm0, %v38_v38, 0  ;;  %300 = vmatmul.mubr.f32.gmra.mrb[12].mxu0 %v299_v61  ;;  %v9636_v44 = vand.u32 4294901760, %v6135_v2 }
  0x52   :  { %9885 = vst [vmem:[#allocation49_spill] sm:$0xff] %v6411_v4  ;;  %9886 = vst [vmem:[#allocation50_spill] sm:$0xff] %v6414_v29  ;;  %1587 = vmatmul.mubr.f32.gmra.mrb[12].mxu1 %v299_v61  ;;  %v309_v39 = vsub.f32 %v6397_v48, %v6411_v4  ;;  %v6427_v20 = vand.u32 4294901760, %v6414_v29  ;;  %v465_v23 = vsub.f32 %v6142_v31, %v9629_v3  ;;  %v6432_v30 = vand.u32 4294901760, %v133_v46  ;;  %v39_v3 = vld [vmem:[%s9516_s0 + $0x50] sm:$0xff] }
  0x53   :  { %305 = vmatprep.mubr.f32.mxu0 %v9869_v55  ;;  %1592 = vmatprep.mubr.f32.mxu1 %v9869_v55  ;;  %v460_v16 = vand.u32 4294901760, %v459_v37  ;;  %v454_v38 = vand.u32 4294901760, %v453_v27  ;;  %v9637_v61 = vand.u32 4294901760, %v6132_v60  ;;  %v1746_v37 = vsub.f32 %v6135_v2, %v9636_v44 }
  0x54   :  { %9887 = vst [vmem:[#allocation51_spill] sm:$0xff] %v6427_v20  ;;  %9888 = vst [vmem:[#allocation52_spill] sm:$0xff] %v6432_v30  ;;  %v310_v4 = vand.u32 4294901760, %v309_v39  ;;  %v320_v48 = vsub.f32 %v6414_v29, %v6427_v20  ;;  %v466_v25 = vand.u32 4294901760, %v465_v23  ;;  %v6441_v32 = vsub.f32 %v133_v46, %v6432_v30 }
  0x55   :  { %v5215_v7 = vpack.c.bf16 %v460_v16, %v448_v57  ;;  %v1734_v27 = vsub.f32 %v6132_v60, %v9637_v61  ;;  %v9638_v39 = vand.u32 4294901760, %v6146_v11  ;;  %v9643_v29 = vand.u32 4294901760, %v6151_v59 }
  0x56   :  { %9889 = vst [vmem:[#allocation53_spill] sm:$0xff] %v6441_v32  ;;  %311 = vmatmul.mubr.f32.gmra.mrb[14].mxu0 %v310_v4  ;;  %1598 = vmatmul.mubr.f32.gmra.mrb[14].mxu1 %v310_v4  ;;  %v321_v23 = vand.u32 4294901760, %v320_v48  ;;  %v5217_v46 = vpack.c.bf16 %v466_v25, %v454_v38  ;;  %v6454_v20 = vand.u32 4294901760, %v6441_v32  ;;  %v1747_v57 = vand.u32 4294901760, %v1746_v37 }
  0x57   :  { %316 = vmatprep.mubr.f32.mxu0 %v9869_v55  ;;  %1603 = vmatprep.mubr.f32.mxu1 %v9869_v55  ;;  %v1735_v16 = vand.u32 4294901760, %v1734_v27  ;;  %v1740_v44 = vsub.f32 %v6146_v11, %v9638_v39  ;;  %v136_v61 = vsel %vm104_vm0, %v39_v3, 0  ;;  %v1752_v48 = vsub.f32 %v6151_v59, %v9643_v29  ;;  %v40_v27 = vld [vmem:[%s9516_s0 + $0x58] sm:$0xff] }
  0x58   :  { %9890 = vst [vmem:[#allocation54_spill] sm:$0xff] %v6454_v20  ;;  %5216 = vmatprep.subr.bf16.mxu0 %v5215_v7  ;;  %v331_v25 = vsub.f32 %v6441_v32, %v6454_v20  ;;  %v6468_v4 = vand.u32 4294901760, %v136_v61  ;;  %v9646_v38 = vand.u32 4294901760, %v6155_v13  ;;  %v9649_v7 = vand.u32 4294901760, %v6157_v1 }
  0x59   :  { %5218 = vmatpush1.bf16.msra.mxu0 %v5217_v46  ;;  %v5335_v37 = vpack.c.bf16 %v1747_v57, %v1735_v16  ;;  %v1741_v39 = vand.u32 4294901760, %v1740_v44  ;;  %v9650_v3 = vand.u32 4294901760, %v6172_v52  ;;  %v1753_v32 = vand.u32 4294901760, %v1752_v48 }
  0x5a   :  { %9891 = vst [vmem:[#allocation55_spill] sm:$0xff] %v6468_v4  ;;  %322 = vmatmul.mubr.f32.gmra.mrb[16].mxu0 %v321_v23  ;;  %1609 = vmatmul.mubr.f32.gmra.mrb[16].mxu1 %v321_v23  ;;  %v332_v20 = vand.u32 4294901760, %v331_v25  ;;  %v6477_v29 = vsub.f32 %v136_v61, %v6468_v4  ;;  %v471_v30 = vsub.f32 %v6155_v13, %v9646_v38  ;;  %v9651_v46 = vand.u32 4294901760, %v6177_v10 }
  0x5b   :  { %327 = vmatprep.mubr.f32.mxu0 %v9869_v55  ;;  %1614 = vmatprep.mubr.f32.mxu1 %v9869_v55  ;;  %v483_v44 = vsub.f32 %v6157_v1, %v9649_v7  ;;  %v477_v23 = vsub.f32 %v6172_v52, %v9650_v3  ;;  %v139_v61 = vsel %vm104_vm0, %v40_v27, 0  ;;  %v5337_v16 = vpack.c.bf16 %v1753_v32, %v1741_v39 }
  0x5c   :  { %9892 = vst [vmem:[#allocation56_spill] sm:$0xff] %v6477_v29  ;;  %5336 = vmatprep.subr.bf16.mxu1 %v5335_v37  ;;  %v6493_v57 = vand.u32 4294901760, %v6477_v29  ;;  %v472_v25 = vand.u32 4294901760, %v471_v30  ;;  %v6495_v48 = vand.u32 4294901760, %v139_v61  ;;  %v489_v7 = vsub.f32 %v6177_v10, %v9651_v46  ;;  %v41_v37 = vld [vmem:[%s9516_s0 + $0x60] sm:$0xff] }
  0x5d   :  { %v484_v38 = vand.u32 4294901760, %v483_v44  ;;  %v478_v4 = vand.u32 4294901760, %v477_v23  ;;  %v9654_v3 = vand.u32 4294901760, %v6161_v43  ;;  %v9659_v30 = vand.u32 4294901760, %v6168_v56  ;;  %5338 = vmatpush1.bf16.msra.mxu1 %v5337_v16 }
  0x5e   :  { %9893 = vst [vmem:[#allocation57_spill] sm:$0xff] %v6493_v57  ;;  %9894 = vst [vmem:[#allocation58_spill] sm:$0xff] %v6495_v48  ;;  %333 = vmatmul.mubr.f32.gmra.mrb[18].mxu0 %v332_v20  ;;  %1620 = vmatmul.mubr.f32.gmra.mrb[18].mxu1 %v332_v20  ;;  %v342_v27 = vsub.f32 %v6477_v29, %v6493_v57  ;;  %v6504_v32 = vsub.f32 %v139_v61, %v6495_v48  ;;  %v490_v23 = vand.u32 4294901760, %v489_v7 }
  0x5f   :  { %338 = vmatprep.mubr.f32.mxu0 %v9869_v55  ;;  %v5219_v44 = vpack.c.bf16 %v484_v38, %v472_v25  ;;  %v1758_v20 = vsub.f32 %v6161_v43, %v9654_v3  ;;  %v1775_v61 = vand.u32 4294901760, %v6183_v33  ;;  %1625 = vmatprep.mubr.f32.mxu1 %v9869_v55  ;;  %v1770_v16 = vsub.f32 %v6168_v56, %v9659_v30 }
  0x60   :  { %v343_v46 = vand.u32 4294901760, %v342_v27  ;;  %v6518_v39 = vand.u32 4294901760, %v6504_v32  ;;  %v9895_v57 = vand.u32 4294901760, %v6181_v5  ;;  %v5221_v7 = vpack.c.bf16 %v490_v23, %v478_v4 }
  0x61   :  { %5220 = vmatprep.subr.bf16.mxu0 %v5219_v44  ;;  %v1759_v25 = vand.u32 4294901760, %v1758_v20  ;;  %v1776_v3 = vsub.f32 %v6183_v33, %v1775_v61  ;;  %v142_v27 = vsel %vm104_vm0, %v41_v37, 0  ;;  %v1771_v48 = vand.u32 4294901760, %v1770_v16 }
  0x62   :  { %v1764_v38 = vsub.f32 %v6181_v5, %v9895_v57  ;;  %344 = vmatmul.mubr.f32.gmra.mrb[20].mxu0 %v343_v46  ;;  %1631 = vmatmul.mubr.f32.gmra.mrb[20].mxu1 %v343_v46  ;;  %v353_v29 = vsub.f32 %v6504_v32, %v6518_v39  ;;  %v6532_v22 = vand.u32 4294901760, %v142_v27  ;;  %v5223_v57 = vpack.c.bf16 %v6044_v18, %v6042_v17 }
  0x63   :  { %349 = vmatprep.mubr.f32.mxu0 %v9869_v55  ;;  %5222 = vmatpush1.bf16.msra.mxu0 %v5221_v7  ;;  %v1777_v4 = vand.u32 4294901760, %v1776_v3  ;;  %v5339_v37 = vpack.c.bf16 %v1771_v48, %v1759_v25  ;;  %v5343_v20 = vpack.c.bf16 %v6050_v24, %v6046_v19  ;;  %v9896_v48 = vand.u32 4294901760, %v6042_v17 }
  0x64   :  { %v1765_v30 = vand.u32 4294901760, %v1764_v38  ;;  %1636 = vmatprep.mubr.f32.mxu1 %v9869_v55  ;;  %v354_v44 = vand.u32 4294901760, %v353_v29  ;;  %v6539_v46 = vsub.f32 %v142_v27, %v6532_v22  ;;  %5224 = vmatprep.subr.bf16.mxu0 %v5223_v57  ;;  %v9898_v7 = vand.u32 4294901760, %v6054_v26 }
  0x65   :  { %5340 = vmatprep.subr.bf16.mxu1 %v5339_v37  ;;  %v9899_v25 = vand.u32 4294901760, %v6057_v28  ;;  %v9901_v57 = vand.u32 4294901760, %v6050_v24  ;;  %v9902_v37 = vand.u32 4294901760, %v6063_v40  ;;  %v9903_v17 = vand.u32 4294901760, %v6065_v41 }
  0x66   :  { %v5341_v23 = vpack.c.bf16 %v1777_v4, %v1765_v30  ;;  %355 = vmatmul.mubr.f32.gmra.mrb[22].mxu0 %v354_v44  ;;  %1642 = vmatmul.mubr.f32.gmra.mrb[22].mxu1 %v354_v44  ;;  %v6544_v16 = vand.u32 4294901760, %v6539_v46  ;;  %v9897_v30 = vand.u32 4294901760, %v6044_v18  ;;  %v9900_v4 = vand.u32 4294901760, %v6046_v19 }
  0x67   :  { %360 = vmatprep.mubr.f32.mxu0 %v9869_v55  ;;  %1647 = vmatprep.mubr.f32.mxu1 %v9869_v55  ;;  %v6560_v27 = vpack.c.bf16 %v9899_v25, %v9898_v7  ;;  %v9904_v18 = vand.u32 4294901760, %v6067_v42  ;;  %v9907_v19 = vand.u32 4294901760, %v6086_v62  ;;  %v9908_v24 = vand.u32 4294901760, %v6075_v49 }
  0x68   :  { %5342 = vmatpush1.bf16.msra.mxu1 %v5341_v23  ;;  %v364_v29 = vsub.f32 %v6539_v46, %v6544_v16  ;;  %v6554_v38 = vpack.c.bf16 %v9897_v30, %v9896_v48  ;;  %v6566_v44 = vpack.c.bf16 %v9901_v57, %v9900_v4  ;;  %v6572_v23 = vpack.c.bf16 %v9903_v17, %v9902_v37 }
  0x69   :  { %5344 = vmatprep.subr.bf16.mxu1 %v5343_v20  ;;  %v9905_v20 = vand.u32 4294901760, %v6071_v47  ;;  %v9906_v48 = vand.u32 4294901760, %v6080_v53  ;;  %v9909_v7 = vand.u32 4294901760, %v6078_v51  ;;  %v9910_v4 = vand.u32 4294901760, %v6088_v63 }
  0x6a   :  { %v365_v3 = vand.u32 4294901760, %v364_v29  ;;  %v9911_v57 = vand.u32 4294901760, %v6092_v6  ;;  %v9912_v17 = vand.u32 4294901760, %v6096_v8 }
  0x6b   :  { %v6578_v29 = vpack.c.bf16 %v9905_v20, %v9904_v18  ;;  %v6584_v30 = vpack.c.bf16 %v9907_v19, %v9906_v48  ;;  %v6590_v25 = vpack.c.bf16 %v9909_v7, %v9908_v24  ;;  %v9913_v18 = vand.u32 4294901760, %v6099_v12 }
  0x6c   :  { %366 = vmatmul.mubr.f32.gmra.mrb[24].mxu0 %v365_v3  ;;  %1653 = vmatmul.mubr.f32.gmra.mrb[24].mxu1 %v365_v3  ;;  %v6596_v37 = vpack.c.bf16 %v9911_v57, %v9910_v4  ;;  %v5225_v3 = vpack.c.bf16 %v6057_v28, %v6054_v26  ;;  %v9914_v48 = vand.u32 4294901760, %v6112_v35  ;;  %v9915_v19 = vand.u32 4294901760, %v6114_v36 }
  0x6d   :  { %v6602_v20 = vpack.c.bf16 %v9913_v18, %v9912_v17  ;;  %536 = vmatprep.mubr.f32.mxu0 %v9869_v55  ;;  %1823 = vmatprep.mubr.f32.mxu1 %v9869_v55  ;;  %v5345_v7 = vpack.c.bf16 %v6065_v41, %v6063_v40  ;;  %v5227_v4 = vpack.c.bf16 %v6071_v47, %v6067_v42  ;;  %v9916_v26 = vand.u32 4294901760, %v6103_v14 }
  0x6e   :  { %v6612_v24 = vpack.c.bf16 %v9915_v19, %v9914_v48  ;;  %v5347_v57 = vpack.c.bf16 %v6078_v51, %v6075_v49  ;;  %v9917_v28 = vand.u32 4294901760, %v6105_v15  ;;  %v9918_v18 = vand.u32 4294901760, %v6118_v45 }
  0x6f   :  { %v9919_v40 = vand.u32 4294901760, %v6120_v50  ;;  %v5229_v42 = vpack.c.bf16 %v6086_v62, %v6080_v53  ;;  %v5349_v47 = vpack.c.bf16 %v6092_v6, %v6088_v63  ;;  %v5231_v49 = vpack.c.bf16 %v6099_v12, %v6096_v8 }
  0x70   :  { %538 = vmatmul.mubr.f32.vlgmr.msra.gmra.mrb[0].mxu0 %v6187_v9  ;;  %1825 = vmatmul.mubr.f32.vlgmr.msra.gmra.mrb[0].mxu1 %v6187_v9  ;;  %v6626_v17 = vpack.c.bf16 %v9917_v28, %v9916_v26  ;;  %v5351_v51 = vpack.c.bf16 %v6105_v15, %v6103_v14  ;;  %v5233_v53 = vpack.c.bf16 %v6114_v36, %v6112_v35  ;;  %v9920_v8 = vand.u32 4294901760, %v6124_v54 }
  0x71   :  { %v6632_v41 = vpack.c.bf16 %v9919_v40, %v9918_v18  ;;  %5226 = vmatpush1.bf16.msra.mxu0 %v5225_v3  ;;  %543 = vmatprep.mubr.f32.mxu0 %v9869_v55  ;;  %v5353_v62 = vpack.c.bf16 %v6120_v50, %v6118_v45  ;;  %v5235_v63 = vpack.c.bf16 %v6128_v58, %v6124_v54  ;;  %v9921_v12 = vand.u32 4294901760, %v6128_v58  ;;  %v9924_v3 = vld [vmem:[#allocation33_spill] sm:$0xff] }
  0x72   :  { %1830 = vmatprep.mubr.f32.mxu1 %v9869_v55  ;;  %5346 = vmatpush1.bf16.msra.mxu1 %v5345_v7  ;;  %v5355_v6 = vpack.c.bf16 %v6135_v2, %v6132_v60  ;;  %v9922_v15 = vand.u32 4294901760, %v6138_v21  ;;  %v9923_v35 = vand.u32 4294901760, %v6142_v31  ;;  %v5237_v45 = vpack.c.bf16 %v6142_v31, %v6138_v21 }
  0x73   :  { %5228 = vmatprep.subr.bf16.mxu0 %v5227_v4  ;;  %5348 = vmatprep.subr.bf16.mxu1 %v5347_v57  ;;  %v6662_v14 = vpack.c.bf16 %v9921_v12, %v9920_v8  ;;  %v5357_v50 = vpack.c.bf16 %v6151_v59, %v6146_v11  ;;  %v5239_v54 = vpack.c.bf16 %v6157_v1, %v6155_v13  ;;  %v9925_v48 = vand.u32 4294901760, %v6132_v60  ;;  %v9949_v8 = vld [vmem:[#allocation12_spill] sm:$0xff]  ;;  %v9950_v12 = vld [vmem:[#allocation13_spill] sm:$0xff] }
  0x74   :  { %545 = vmatmul.mubr.f32.gmra.mrb[2].mxu0 %v6211_v34  ;;  %1832 = vmatmul.mubr.f32.gmra.mrb[2].mxu1 %v6211_v34  ;;  %v6668_v36 = vpack.c.bf16 %v9923_v35, %v9922_v15  ;;  %v5359_v58 = vpack.c.bf16 %v6168_v56, %v6161_v43  ;;  %v9926_v19 = vand.u32 4294901760, %v6135_v2  ;;  %v9927_v31 = vand.u32 4294901760, %v6146_v11  ;;  %v9929_v2 = vld [vmem:[#allocation37_spill] sm:$0xff]  ;;  %v9951_v15 = vld [vmem:[#allocation30_spill] sm:$0xff] }
  0x75   :  { %550 = vmatprep.mubr.f32.mxu0 %v9869_v55  ;;  %1837 = vmatprep.mubr.f32.mxu1 %v9869_v55  ;;  %v9928_v7 = vand.u32 4294901760, %v6151_v59  ;;  %v5241_v57 = vpack.c.bf16 %v6177_v10, %v6172_v52  ;;  %v5361_v60 = vpack.c.bf16 %v6183_v33, %v6181_v5  ;;  %v9930_v59 = vand.u32 4294901760, %v6155_v13  ;;  %v9936_v13 = vld [vmem:[#allocation39_spill] sm:$0xff]  ;;  %v9952_v35 = vld [vmem:[#allocation14_spill] sm:$0xff] }
  0x76   :  { %5230 = vmatpush1.bf16.msra.mxu0 %v5229_v42  ;;  %5350 = vmatpush1.bf16.msra.mxu1 %v5349_v47  ;;  %v6686_v21 = vpack.c.bf16 %v9926_v19, %v9925_v48  ;;  %v9931_v11 = vand.u32 4294901760, %v6157_v1  ;;  %v9932_v28 = vand.u32 4294901760, %v6172_v52  ;;  %v9933_v18 = vand.u32 4294901760, %v6177_v10  ;;  %v9934_v42 = vld [vmem:[#allocation8_spill] sm:$0xff]  ;;  %v9935_v47 = vld [vmem:[#allocation9_spill] sm:$0xff]  ;;  %v9944_v33 = vld [vmem:[#allocation55_spill] sm:$0xff] }
  0x77   :  { %5232 = vmatprep.subr.bf16.mxu0 %v5231_v49  ;;  %5352 = vmatprep.subr.bf16.mxu1 %v5351_v51  ;;  %v6692_v4 = vpack.c.bf16 %v9928_v7, %v9927_v31  ;;  %v9937_v1 = vand.u32 4294901760, %v6161_v43  ;;  %v9938_v49 = vand.u32 4294901760, %v6168_v56  ;;  %v9939_v52 = vand.u32 4294901760, %v6181_v5  ;;  %v9941_v43 = vld [vmem:[#allocation46_spill] sm:$0xff]  ;;  %v9942_v5 = vld [vmem:[#allocation48_spill] sm:$0xff]  ;;  %v9958_v19 = vld [vmem:[#allocation19_spill] sm:$0xff] }
  0x78   :  { %552 = vmatmul.mubr.f32.gmra.mrb[4].mxu0 %v6245_v0  ;;  %1839 = vmatmul.mubr.f32.gmra.mrb[4].mxu1 %v6245_v0  ;;  %v6706_v26 = vpack.c.bf16 %v9931_v11, %v9930_v59  ;;  %v6714_v40 = vpack.c.bf16 %v9933_v18, %v9932_v28  ;;  %v9943_v56 = vld [vmem:[#allocation52_spill] sm:$0xff]  ;;  %v9957_v48 = vld [vmem:[#allocation18_spill] sm:$0xff]  ;;  %v9960_v7 = vld [vmem:[#allocation21_spill] sm:$0xff] }
  0x79   :  { %557 = vmatprep.mubr.f32.mxu0 %v9869_v55  ;;  %1844 = vmatprep.mubr.f32.mxu1 %v9869_v55  ;;  %v6724_v51 = vpack.c.bf16 %v9938_v49, %v9937_v1  ;;  %v6732_v10 = vpack.c.bf16 %v1775_v61, %v9939_v52  ;;  %v9945_v61 = vld [vmem:[#allocation58_spill] sm:$0xff]  ;;  %v9959_v31 = vld [vmem:[#allocation20_spill] sm:$0xff]  ;;  %v9963_v59 = vld [vmem:[#allocation23_spill] sm:$0xff] }
  0x7a   :  { %5234 = vmatpush1.bf16.msra.mxu0 %v5233_v53  ;;  %5354 = vmatpush1.bf16.msra.mxu1 %v5353_v62  ;;  %v9940_v53 = vld [vmem:[#allocation43_spill] sm:$0xff]  ;;  %v9946_v62 = vld [vmem:[#allocation28_spill] sm:$0xff]  ;;  %v9965_v28 = vld [vmem:[#allocation25_spill] sm:$0xff] }
  0x7b   :  { %5236 = vmatprep.subr.bf16.mxu0 %v5235_v63  ;;  %5356 = vmatprep.subr.bf16.mxu1 %v5355_v6  ;;  %v9947_v63 = vld [vmem:[#allocation10_spill] sm:$0xff]  ;;  %v9948_v6 = vld [vmem:[#allocation11_spill] sm:$0xff]  ;;  %v9964_v11 = vld [vmem:[#allocation24_spill] sm:$0xff] }
  0x7c   :  { %559 = vmatmul.mubr.f32.gmra.mrb[6].mxu0 %v9924_v3  ;;  %1846 = vmatmul.mubr.f32.gmra.mrb[6].mxu1 %v9924_v3  ;;  %v9966_v18 = vld [vmem:[#allocation38_spill] sm:$0xff]  ;;  %v9968_v49 = vld [vmem:[#allocation27_spill] sm:$0xff]  ;;  %v9969_v52 = vld [vmem:[#allocation41_spill] sm:$0xff] }
  0x7d   :  { %564 = vmatprep.mubr.f32.mxu0 %v9869_v55  ;;  %1851 = vmatprep.mubr.f32.mxu1 %v9869_v55  ;;  %v9967_v1 = vld [vmem:[#allocation26_spill] sm:$0xff] }
  0x7e   :  { %5238 = vmatpush1.bf16.msra.mxu0 %v5237_v45  ;;  %5358 = vmatpush1.bf16.msra.mxu1 %v5357_v50  ;;  %v9953_v45 = vld [vmem:[#allocation15_spill] sm:$0xff]  ;;  %v9954_v50 = vld [vmem:[#allocation16_spill] sm:$0xff] }
  0x7f   :  { %5240 = vmatprep.subr.bf16.mxu0 %v5239_v54  ;;  %5360 = vmatprep.subr.bf16.mxu1 %v5359_v58  ;;  %v9955_v54 = vld [vmem:[#allocation17_spill] sm:$0xff]  ;;  %v9956_v58 = vld [vmem:[#allocation32_spill] sm:$0xff] }
  0x80   :  { %566 = vmatmul.mubr.f32.gmra.mrb[8].mxu0 %v9929_v2  ;;  %1853 = vmatmul.mubr.f32.gmra.mrb[8].mxu1 %v9929_v2 }
  0x81   :  { %571 = vmatprep.mubr.f32.mxu0 %v9869_v55  ;;  %1858 = vmatprep.mubr.f32.mxu1 %v9869_v55 }
  0x82   :  { %5242 = vmatpush1.bf16.msra.mxu0 %v5241_v57  ;;  %5362 = vmatpush1.bf16.msra.mxu1 %v5361_v60  ;;  %v9961_v57 = vld [vmem:[#allocation35_spill] sm:$0xff]  ;;  %v9962_v60 = vld [vmem:[#allocation22_spill] sm:$0xff] }
  0x83   :  { %5244 = vmatprep.subr.bf16.mxu0 %v9934_v42  ;;  %5364 = vmatprep.subr.bf16.mxu1 %v9935_v47 }
  0x84   :  { %573 = vmatmul.mubr.f32.gmra.mrb[10].mxu0 %v9936_v13  ;;  %1860 = vmatmul.mubr.f32.gmra.mrb[10].mxu1 %v9936_v13 }
  0x85   :  { %578 = vmatprep.mubr.f32.mxu0 %v9869_v55  ;;  %1865 = vmatprep.mubr.f32.mxu1 %v9869_v55 }
  0x88   :  { %580 = vmatmul.mubr.f32.gmra.mrb[12].mxu0 %v9940_v53  ;;  %1867 = vmatmul.mubr.f32.gmra.mrb[12].mxu1 %v9940_v53 }
  0x89   :  { %585 = vmatprep.mubr.f32.mxu0 %v9869_v55  ;;  %1872 = vmatprep.mubr.f32.mxu1 %v9869_v55 }
  0x8c   :  { %587 = vmatmul.mubr.f32.gmra.mrb[14].mxu0 %v9941_v43  ;;  %1874 = vmatmul.mubr.f32.gmra.mrb[14].mxu1 %v9941_v43 }
  0x8d   :  { %592 = vmatprep.mubr.f32.mxu0 %v9869_v55  ;;  %1879 = vmatprep.mubr.f32.mxu1 %v9869_v55 }
  0x90   :  { %594 = vmatmul.mubr.f32.gmra.mrb[16].mxu0 %v9942_v5  ;;  %1881 = vmatmul.mubr.f32.gmra.mrb[16].mxu1 %v9942_v5 }
  0x91   :  { %599 = vmatprep.mubr.f32.mxu0 %v9869_v55  ;;  %1886 = vmatprep.mubr.f32.mxu1 %v9869_v55 }
  0x94   :  { %601 = vmatmul.mubr.f32.gmra.mrb[18].mxu0 %v9943_v56  ;;  %1888 = vmatmul.mubr.f32.gmra.mrb[18].mxu1 %v9943_v56 }
  0x95   :  { %606 = vmatprep.mubr.f32.mxu0 %v9869_v55  ;;  %1893 = vmatprep.mubr.f32.mxu1 %v9869_v55 }
  0x98   :  { %608 = vmatmul.mubr.f32.gmra.mrb[20].mxu0 %v9944_v33  ;;  %1895 = vmatmul.mubr.f32.gmra.mrb[20].mxu1 %v9944_v33 }
  0x99   :  { %613 = vmatprep.mubr.f32.mxu0 %v9869_v55  ;;  %1900 = vmatprep.mubr.f32.mxu1 %v9869_v55 }
  0x9c   :  { %615 = vmatmul.mubr.f32.gmra.mrb[22].mxu0 %v9945_v61  ;;  %1902 = vmatmul.mubr.f32.gmra.mrb[22].mxu1 %v9945_v61 }
  0x9d   :  { %620 = vmatprep.mubr.f32.mxu0 %v9869_v55  ;;  %1907 = vmatprep.mubr.f32.mxu1 %v9869_v55 }
  0xa0   :  { %622 = vmatmul.mubr.f32.gmra.mrb[24].mxu0 %v6532_v22  ;;  %1909 = vmatmul.mubr.f32.gmra.mrb[24].mxu1 %v6532_v22 }
  0xa1   :  { %732 = vmatprep.mubr.f32.mxu0 %v9869_v55  ;;  %2019 = vmatprep.mubr.f32.mxu1 %v9869_v55 }
  0xa4   :  { %735 = vmatmul.mubr.f32.vlgmr.msra.gmra.mrb[0].mxu0 %v9946_v62  ;;  %2022 = vmatmul.mubr.f32.vlgmr.msra.gmra.mrb[0].mxu1 %v9946_v62  ;;  %v9970_v62 = vld [vmem:[#allocation44_spill] sm:$0xff] }
  0xa5   :  { %5246 = vmatpush1.bf16.msra.mxu0 %v9947_v63  ;;  %740 = vmatprep.mubr.f32.mxu0 %v9869_v55 }
  0xa6   :  { %2027 = vmatprep.mubr.f32.mxu1 %v9869_v55  ;;  %5366 = vmatpush1.bf16.msra.mxu1 %v9948_v6 }
  0xa7   :  { %5248 = vmatprep.subr.bf16.mxu0 %v9949_v8  ;;  %5368 = vmatprep.subr.bf16.mxu1 %v9950_v12 }
  0xa8   :  { %743 = vmatmul.mubr.f32.gmra.mrb[2].mxu0 %v9951_v15  ;;  %2030 = vmatmul.mubr.f32.gmra.mrb[2].mxu1 %v9951_v15  ;;  %v9971_v15 = vld [vmem:[#allocation47_spill] sm:$0xff] }
  0xa9   :  { %748 = vmatprep.mubr.f32.mxu0 %v9869_v55  ;;  %2035 = vmatprep.mubr.f32.mxu1 %v9869_v55 }
  0xaa   :  { %5250 = vmatpush1.bf16.msra.mxu0 %v9952_v35  ;;  %5370 = vmatpush1.bf16.msra.mxu1 %v9953_v45 }
  0xab   :  { %5252 = vmatprep.subr.bf16.mxu0 %v9954_v50  ;;  %5372 = vmatprep.subr.bf16.mxu1 %v9955_v54 }
  0xac   :  { %751 = vmatmul.mubr.f32.gmra.mrb[4].mxu0 %v9956_v58  ;;  %2038 = vmatmul.mubr.f32.gmra.mrb[4].mxu1 %v9956_v58  ;;  %v9974_v58 = vld [vmem:[#allocation56_spill] sm:$0xff] }
  0xad   :  { %756 = vmatprep.mubr.f32.mxu0 %v9869_v55  ;;  %2043 = vmatprep.mubr.f32.mxu1 %v9869_v55 }
  0xae   :  { %5254 = vmatpush1.bf16.msra.mxu0 %v9957_v48  ;;  %5374 = vmatpush1.bf16.msra.mxu1 %v9958_v19 }
  0xaf   :  { %5256 = vmatprep.subr.bf16.mxu0 %v9959_v31  ;;  %5376 = vmatprep.subr.bf16.mxu1 %v9960_v7 }
  0xb0   :  { %759 = vmatmul.mubr.f32.gmra.mrb[6].mxu0 %v9961_v57  ;;  %2046 = vmatmul.mubr.f32.gmra.mrb[6].mxu1 %v9961_v57  ;;  %v9975_v57 = vld [vmem:[#allocation29_spill] sm:$0xff] }
  0xb1   :  { %764 = vmatprep.mubr.f32.mxu0 %v9869_v55  ;;  %2051 = vmatprep.mubr.f32.mxu1 %v9869_v55 }
  0xb2   :  { %5258 = vmatpush1.bf16.msra.mxu0 %v9962_v60  ;;  %5378 = vmatpush1.bf16.msra.mxu1 %v9963_v59 }
  0xb3   :  { %5260 = vmatprep.subr.bf16.mxu0 %v9964_v11  ;;  %5380 = vmatprep.subr.bf16.mxu1 %v9965_v28 }
  0xb4   :  { %767 = vmatmul.mubr.f32.gmra.mrb[8].mxu0 %v9966_v18  ;;  %2054 = vmatmul.mubr.f32.gmra.mrb[8].mxu1 %v9966_v18 }
  0xb5   :  { %772 = vmatprep.mubr.f32.mxu0 %v9869_v55  ;;  %2059 = vmatprep.mubr.f32.mxu1 %v9869_v55 }
  0xb6   :  { %5262 = vmatpush1.bf16.msra.mxu0 %v9967_v1  ;;  %5382 = vmatpush1.bf16.msra.mxu1 %v9968_v49 }
  0xb7   :  { %5264 = vmatprep.subr.bf16.mxu0 %v6554_v38  ;;  %5384 = vmatprep.subr.bf16.mxu1 %v6566_v44  ;;  %v9972_v38 = vld [vmem:[#allocation50_spill] sm:$0xff]  ;;  %v9973_v44 = vld [vmem:[#allocation53_spill] sm:$0xff] }
  0xb8   :  { %775 = vmatmul.mubr.f32.gmra.mrb[10].mxu0 %v9969_v52  ;;  %2062 = vmatmul.mubr.f32.gmra.mrb[10].mxu1 %v9969_v52 }
  0xb9   :  { %780 = vmatprep.mubr.f32.mxu0 %v9869_v55  ;;  %2067 = vmatprep.mubr.f32.mxu1 %v9869_v55 }
  0xbc   :  { %783 = vmatmul.mubr.f32.gmra.mrb[12].mxu0 %v9970_v62  ;;  %2070 = vmatmul.mubr.f32.gmra.mrb[12].mxu1 %v9970_v62 }
  0xbd   :  { %788 = vmatprep.mubr.f32.mxu0 %v9869_v55  ;;  %2075 = vmatprep.mubr.f32.mxu1 %v9869_v55 }
  0xc0   :  { %791 = vmatmul.mubr.f32.gmra.mrb[14].mxu0 %v9971_v15  ;;  %2078 = vmatmul.mubr.f32.gmra.mrb[14].mxu1 %v9971_v15 }
  0xc1   :  { %796 = vmatprep.mubr.f32.mxu0 %v9869_v55  ;;  %2083 = vmatprep.mubr.f32.mxu1 %v9869_v55 }
  0xc4   :  { %799 = vmatmul.mubr.f32.gmra.mrb[16].mxu0 %v9972_v38  ;;  %2086 = vmatmul.mubr.f32.gmra.mrb[16].mxu1 %v9972_v38 }
  0xc5   :  { %804 = vmatprep.mubr.f32.mxu0 %v9869_v55  ;;  %2091 = vmatprep.mubr.f32.mxu1 %v9869_v55 }
  0xc8   :  { %807 = vmatmul.mubr.f32.gmra.mrb[18].mxu0 %v9973_v44  ;;  %2094 = vmatmul.mubr.f32.gmra.mrb[18].mxu1 %v9973_v44 }
  0xc9   :  { %812 = vmatprep.mubr.f32.mxu0 %v9869_v55  ;;  %2099 = vmatprep.mubr.f32.mxu1 %v9869_v55 }
  0xcc   :  { %815 = vmatmul.mubr.f32.gmra.mrb[20].mxu0 %v9974_v58  ;;  %2102 = vmatmul.mubr.f32.gmra.mrb[20].mxu1 %v9974_v58 }
  0xcd   :  { %820 = vmatprep.mubr.f32.mxu0 %v9869_v55  ;;  %2107 = vmatprep.mubr.f32.mxu1 %v9869_v55 }
  0xd0   :  { %823 = vmatmul.mubr.f32.gmra.mrb[22].mxu0 %v6504_v32  ;;  %2110 = vmatmul.mubr.f32.gmra.mrb[22].mxu1 %v6504_v32  ;;  %v9976_v32 = vld [vmem:[#allocation31_spill] sm:$0xff] }
  0xd1   :  { %828 = vmatprep.mubr.f32.mxu0 %v9869_v55  ;;  %2115 = vmatprep.mubr.f32.mxu1 %v9869_v55 }
  0xd4   :  { %831 = vmatmul.mubr.f32.gmra.mrb[24].mxu0 %v6539_v46  ;;  %2118 = vmatmul.mubr.f32.gmra.mrb[24].mxu1 %v6539_v46  ;;  %v9977_v46 = vld [vmem:[#allocation34_spill] sm:$0xff] }
  0xd5   :  { %921 = vmatprep.mubr.f32.mxu0 %v9869_v55  ;;  %2208 = vmatprep.mubr.f32.mxu1 %v9869_v55 }
  0xd8   :  { %925 = vmatmul.mubr.f32.vlgmr.msra.gmra.mrb[0].mxu0 %v9975_v57  ;;  %2212 = vmatmul.mubr.f32.vlgmr.msra.gmra.mrb[0].mxu1 %v9975_v57 }
  0xd9   :  { %5266 = vmatpush1.bf16.msra.mxu0 %v6560_v27  ;;  %930 = vmatprep.mubr.f32.mxu0 %v9869_v55  ;;  %v9978_v27 = vld [vmem:[#allocation36_spill] sm:$0xff] }
  0xda   :  { %2217 = vmatprep.mubr.f32.mxu1 %v9869_v55  ;;  %5386 = vmatpush1.bf16.msra.mxu1 %v6572_v23  ;;  %v9979_v23 = vld [vmem:[#allocation40_spill] sm:$0xff] }
  0xdb   :  { %5268 = vmatprep.subr.bf16.mxu0 %v6578_v29  ;;  %5388 = vmatprep.subr.bf16.mxu1 %v6590_v25  ;;  %v9980_v29 = vld [vmem:[#allocation42_spill] sm:$0xff]  ;;  %v9982_v25 = vld [vmem:[#allocation49_spill] sm:$0xff] }
  0xdc   :  { %934 = vmatmul.mubr.f32.gmra.mrb[2].mxu0 %v9976_v32  ;;  %2221 = vmatmul.mubr.f32.gmra.mrb[2].mxu1 %v9976_v32 }
  0xdd   :  { %939 = vmatprep.mubr.f32.mxu0 %v9869_v55  ;;  %2226 = vmatprep.mubr.f32.mxu1 %v9869_v55 }
  0xde   :  { %5270 = vmatpush1.bf16.msra.mxu0 %v6584_v30  ;;  %5390 = vmatpush1.bf16.msra.mxu1 %v6596_v37  ;;  %v9981_v30 = vld [vmem:[#allocation45_spill] sm:$0xff]  ;;  %v9983_v37 = vld [vmem:[#allocation51_spill] sm:$0xff] }
  0xdf   :  { %5272 = vmatprep.subr.bf16.mxu0 %v6602_v20  ;;  %5392 = vmatprep.subr.bf16.mxu1 %v6626_v17  ;;  %v9984_v20 = vld [vmem:[#allocation54_spill] sm:$0xff] }
  0xe0   :  { %943 = vmatmul.mubr.f32.gmra.mrb[4].mxu0 %v9977_v46  ;;  %2230 = vmatmul.mubr.f32.gmra.mrb[4].mxu1 %v9977_v46 }
  0xe1   :  { %948 = vmatprep.mubr.f32.mxu0 %v9869_v55  ;;  %2235 = vmatprep.mubr.f32.mxu1 %v9869_v55 }
  0xe2   :  { %5274 = vmatpush1.bf16.msra.mxu0 %v6612_v24  ;;  %5394 = vmatpush1.bf16.msra.mxu1 %v6632_v41  ;;  %v9985_v24 = vld [vmem:[#allocation57_spill] sm:$0xff] }
  0xe3   :  { %5276 = vmatprep.subr.bf16.mxu0 %v6662_v14  ;;  %5396 = vmatprep.subr.bf16.mxu1 %v6686_v21 }
  0xe4   :  { %952 = vmatmul.mubr.f32.gmra.mrb[6].mxu0 %v9978_v27  ;;  %2239 = vmatmul.mubr.f32.gmra.mrb[6].mxu1 %v9978_v27 }
  0xe5   :  { %957 = vmatprep.mubr.f32.mxu0 %v9869_v55  ;;  %2244 = vmatprep.mubr.f32.mxu1 %v9869_v55 }
  0xe6   :  { %5278 = vmatpush1.bf16.msra.mxu0 %v6668_v36  ;;  %5398 = vmatpush1.bf16.msra.mxu1 %v6692_v4 }
  0xe7   :  { %5280 = vmatprep.subr.bf16.mxu0 %v6706_v26  ;;  %5400 = vmatprep.subr.bf16.mxu1 %v6724_v51 }
  0xe8   :  { %961 = vmatmul.mubr.f32.gmra.mrb[8].mxu0 %v9979_v23  ;;  %2248 = vmatmul.mubr.f32.gmra.mrb[8].mxu1 %v9979_v23 }
  0xe9   :  { %966 = vmatprep.mubr.f32.mxu0 %v9869_v55  ;;  %2253 = vmatprep.mubr.f32.mxu1 %v9869_v55 }
  0xea   :  { %5282 = vmatpush1.bf16.msra.mxu0 %v6714_v40  ;;  %5402 = vmatpush1.bf16.msra.mxu1 %v6732_v10 }
  0xeb   :  { %5284 = vmatprep.subr.bf16.mxu0 %v9934_v42  ;;  %5404 = vmatprep.subr.bf16.mxu1 %v9935_v47 }
  0xec   :  { %970 = vmatmul.mubr.f32.gmra.mrb[10].mxu0 %v9980_v29  ;;  %2257 = vmatmul.mubr.f32.gmra.mrb[10].mxu1 %v9980_v29 }
  0xed   :  { %975 = vmatprep.mubr.f32.mxu0 %v9869_v55  ;;  %2262 = vmatprep.mubr.f32.mxu1 %v9869_v55 }
  0xf0   :  { %979 = vmatmul.mubr.f32.gmra.mrb[12].mxu0 %v9981_v30  ;;  %2266 = vmatmul.mubr.f32.gmra.mrb[12].mxu1 %v9981_v30 }
  0xf1   :  { %984 = vmatprep.mubr.f32.mxu0 %v9869_v55  ;;  %2271 = vmatprep.mubr.f32.mxu1 %v9869_v55 }
  0xf4   :  { %988 = vmatmul.mubr.f32.gmra.mrb[14].mxu0 %v9982_v25  ;;  %2275 = vmatmul.mubr.f32.gmra.mrb[14].mxu1 %v9982_v25 }
  0xf5   :  { %993 = vmatprep.mubr.f32.mxu0 %v9869_v55  ;;  %2280 = vmatprep.mubr.f32.mxu1 %v9869_v55 }
  0xf8   :  { %997 = vmatmul.mubr.f32.gmra.mrb[16].mxu0 %v9983_v37  ;;  %2284 = vmatmul.mubr.f32.gmra.mrb[16].mxu1 %v9983_v37 }
  0xf9   :  { %1002 = vmatprep.mubr.f32.mxu0 %v9869_v55  ;;  %2289 = vmatprep.mubr.f32.mxu1 %v9869_v55 }
  0xfc   :  { %1006 = vmatmul.mubr.f32.gmra.mrb[18].mxu0 %v9984_v20  ;;  %2293 = vmatmul.mubr.f32.gmra.mrb[18].mxu1 %v9984_v20 }
  0xfd   :  { %1011 = vmatprep.mubr.f32.mxu0 %v9869_v55  ;;  %2298 = vmatprep.mubr.f32.mxu1 %v9869_v55 }
 0x100   :  { %1015 = vmatmul.mubr.f32.gmra.mrb[20].mxu0 %v9985_v24  ;;  %2302 = vmatmul.mubr.f32.gmra.mrb[20].mxu1 %v9985_v24 }
 0x101   :  { %1020 = vmatprep.mubr.f32.mxu0 %v9869_v55  ;;  %2307 = vmatprep.mubr.f32.mxu1 %v9869_v55 }
 0x104   :  { %1024 = vmatmul.mubr.f32.gmra.mrb[22].mxu0 %v6518_v39  ;;  %2311 = vmatmul.mubr.f32.gmra.mrb[22].mxu1 %v6518_v39 }
 0x105   :  { %1029 = vmatprep.mubr.f32.mxu0 %v9869_v55  ;;  %2316 = vmatprep.mubr.f32.mxu1 %v9869_v55 }
 0x108   :  { %1033 = vmatmul.mubr.f32.gmra.mrb[24].mxu0 %v6544_v16  ;;  %2320 = vmatmul.mubr.f32.gmra.mrb[24].mxu1 %v6544_v16  ;;  %v82_v16 = vld [vmem:[%s9518_s2] sm:$0xf]  ;;  %s6001_s2 = smov 64  }
 0x109   :  { %1163 = vmatprep.mubr.f32.mxu0 %v9869_v55  ;;  %2450 = vmatprep.mubr.f32.mxu1 %v9869_v55 }
 0x10c   :  { %1165 = vmatmul.mubr.f32.vlgmr.msra.gmra.mrb[0].mxu0 %v6187_v9  ;;  %2452 = vmatmul.mubr.f32.vlgmr.msra.gmra.mrb[0].mxu1 %v6187_v9 }
 0x10d   :  { %5286 = vmatpush1.bf16.msra.mxu0 %v9947_v63  ;;  %1170 = vmatprep.mubr.f32.mxu0 %v9869_v55 }
 0x10e   :  { %2457 = vmatprep.mubr.f32.mxu1 %v9869_v55  ;;  %5406 = vmatpush1.bf16.msra.mxu1 %v9948_v6 }
 0x10f   :  { %5288 = vmatprep.subr.bf16.mxu0 %v9949_v8  ;;  %5408 = vmatprep.subr.bf16.mxu1 %v9950_v12 }
 0x110   :  { %1172 = vmatmul.mubr.f32.gmra.mrb[2].mxu0 %v6211_v34  ;;  %2459 = vmatmul.mubr.f32.gmra.mrb[2].mxu1 %v6211_v34 }
 0x111   :  { %1177 = vmatprep.mubr.f32.mxu0 %v9869_v55  ;;  %2464 = vmatprep.mubr.f32.mxu1 %v9869_v55 }
 0x112   :  { %5290 = vmatpush1.bf16.msra.mxu0 %v9952_v35  ;;  %5410 = vmatpush1.bf16.msra.mxu1 %v9953_v45 }
 0x113   :  { %5292 = vmatprep.subr.bf16.mxu0 %v9954_v50  ;;  %5412 = vmatprep.subr.bf16.mxu1 %v9955_v54 }
 0x114   :  { %1179 = vmatmul.mubr.f32.gmra.mrb[4].mxu0 %v6245_v0  ;;  %2466 = vmatmul.mubr.f32.gmra.mrb[4].mxu1 %v6245_v0 }
 0x115   :  { %1184 = vmatprep.mubr.f32.mxu0 %v9869_v55  ;;  %2471 = vmatprep.mubr.f32.mxu1 %v9869_v55 }
 0x116   :  { %5294 = vmatpush1.bf16.msra.mxu0 %v9957_v48  ;;  %5414 = vmatpush1.bf16.msra.mxu1 %v9958_v19 }
 0x117   :  { %5296 = vmatprep.subr.bf16.mxu0 %v9959_v31  ;;  %5416 = vmatprep.subr.bf16.mxu1 %v9960_v7 }
 0x118   :  { %1186 = vmatmul.mubr.f32.gmra.mrb[6].mxu0 %v9924_v3  ;;  %2473 = vmatmul.mubr.f32.gmra.mrb[6].mxu1 %v9924_v3 }
 0x119   :  { %1191 = vmatprep.mubr.f32.mxu0 %v9869_v55  ;;  %2478 = vmatprep.mubr.f32.mxu1 %v9869_v55 }
 0x11a   :  { %5298 = vmatpush1.bf16.msra.mxu0 %v9962_v60  ;;  %5418 = vmatpush1.bf16.msra.mxu1 %v9963_v59 }
 0x11b   :  { %5300 = vmatprep.subr.bf16.mxu0 %v9964_v11  ;;  %5420 = vmatprep.subr.bf16.mxu1 %v9965_v28 }
 0x11c   :  { %1193 = vmatmul.mubr.f32.gmra.mrb[8].mxu0 %v9929_v2  ;;  %2480 = vmatmul.mubr.f32.gmra.mrb[8].mxu1 %v9929_v2 }
 0x11d   :  { %1198 = vmatprep.mubr.f32.mxu0 %v9869_v55  ;;  %2485 = vmatprep.mubr.f32.mxu1 %v9869_v55 }
 0x11e   :  { %5302 = vmatpush1.bf16.msra.mxu0 %v9967_v1  ;;  %5422 = vmatpush1.bf16.msra.mxu1 %v9968_v49 }
 0x120   :  { %1200 = vmatmul.mubr.f32.gmra.mrb[10].mxu0 %v9936_v13  ;;  %2487 = vmatmul.mubr.f32.gmra.mrb[10].mxu1 %v9936_v13 }
 0x121   :  { %1205 = vmatprep.mubr.f32.mxu0 %v9869_v55  ;;  %2492 = vmatprep.mubr.f32.mxu1 %v9869_v55 }
 0x124   :  { %1207 = vmatmul.mubr.f32.gmra.mrb[12].mxu0 %v9940_v53  ;;  %2494 = vmatmul.mubr.f32.gmra.mrb[12].mxu1 %v9940_v53 }
 0x125   :  { %1212 = vmatprep.mubr.f32.mxu0 %v9869_v55  ;;  %2499 = vmatprep.mubr.f32.mxu1 %v9869_v55 }
 0x128   :  { %1214 = vmatmul.mubr.f32.gmra.mrb[14].mxu0 %v9941_v43  ;;  %2501 = vmatmul.mubr.f32.gmra.mrb[14].mxu1 %v9941_v43 }
 0x129   :  { %1219 = vmatprep.mubr.f32.mxu0 %v9869_v55  ;;  %2506 = vmatprep.mubr.f32.mxu1 %v9869_v55 }
 0x12c   :  { %1221 = vmatmul.mubr.f32.gmra.mrb[16].mxu0 %v9942_v5  ;;  %2508 = vmatmul.mubr.f32.gmra.mrb[16].mxu1 %v9942_v5 }
 0x12d   :  { %1226 = vmatprep.mubr.f32.mxu0 %v9869_v55  ;;  %2513 = vmatprep.mubr.f32.mxu1 %v9869_v55 }
 0x130   :  { %1228 = vmatmul.mubr.f32.gmra.mrb[18].mxu0 %v9943_v56  ;;  %2515 = vmatmul.mubr.f32.gmra.mrb[18].mxu1 %v9943_v56 }
 0x131   :  { %1233 = vmatprep.mubr.f32.mxu0 %v9869_v55  ;;  %2520 = vmatprep.mubr.f32.mxu1 %v9869_v55 }
 0x134   :  { %1235 = vmatmul.mubr.f32.gmra.mrb[20].mxu0 %v9944_v33  ;;  %2522 = vmatmul.mubr.f32.gmra.mrb[20].mxu1 %v9944_v33 }
 0x135   :  { %1240 = vmatprep.mubr.f32.mxu0 %v9869_v55  ;;  %2527 = vmatprep.mubr.f32.mxu1 %v9869_v55 }
 0x138   :  { %1242 = vmatmul.mubr.f32.gmra.mrb[22].mxu0 %v9945_v61  ;;  %2529 = vmatmul.mubr.f32.gmra.mrb[22].mxu1 %v9945_v61 }
 0x139   :  { %1247 = vmatprep.mubr.f32.mxu0 %v9869_v55  ;;  %2534 = vmatprep.mubr.f32.mxu1 %v9869_v55 }
 0x13c   :  { %1249 = vmatmul.mubr.f32.gmra.mrb[24].mxu0 %v6532_v22  ;;  %2536 = vmatmul.mubr.f32.gmra.mrb[24].mxu1 %v6532_v22 }
 0x13d   :  { %1339 = vmatprep.mubr.f32.mxu0 %v9869_v55  ;;  %2626 = vmatprep.mubr.f32.mxu1 %v9869_v55 }
 0x140   :  { %1341 = vmatmul.mubr.f32.vlgmr.msra.gmra.mrb[0].mxu0 %v6187_v9  ;;  %2628 = vmatmul.mubr.f32.vlgmr.msra.gmra.mrb[0].mxu1 %v6187_v9 }
 0x141   :  { %1346 = vmatprep.mubr.f32.mxu0 %v9869_v55  ;;  %2633 = vmatprep.mubr.f32.mxu1 %v9869_v55 }
 0x144   :  { %1348 = vmatmul.mubr.f32.gmra.mrb[2].mxu0 %v6211_v34  ;;  %2635 = vmatmul.mubr.f32.gmra.mrb[2].mxu1 %v6211_v34  ;;  %v9662_v34 = vlaneseq }
 0x145   :  { %1353 = vmatprep.mubr.f32.mxu0 %v9869_v55  ;;  %2640 = vmatprep.mubr.f32.mxu1 %v9869_v55 }
 0x146   :  { %v85_v9 = vshrl.u32 %v9662_v34, 7 }
 0x148   :  { %1355 = vmatmul.mubr.f32.gmra.mrb[4].mxu0 %v6245_v0  ;;  %2642 = vmatmul.mubr.f32.gmra.mrb[4].mxu1 %v6245_v0  ;;  %v86_v0 = vsub.s32 0, %v85_v9  ;;  %v94_v39 = vsub.s32 2, %v85_v9  ;;  %v90_v17 = vsub.s32 1, %v85_v9  ;;  %v98_v41 = vsub.s32 3, %v85_v9 }
 0x149   :  { %1360 = vmatprep.mubr.f32.mxu0 %v9869_v55  ;;  %2647 = vmatprep.mubr.f32.mxu1 %v9869_v55 }
 0x14a   :  { %v7030_v14 = vrot.slane %v82_v16, %v86_v0  ;;  %v7032_v36 = vrot.slane %v82_v16, %v94_v39 }
 0x14c   :  { %1362 = vmatmul.mubr.f32.gmra.mrb[6].mxu0 %v9924_v3  ;;  %2649 = vmatmul.mubr.f32.gmra.mrb[6].mxu1 %v9924_v3  ;;  %v7036_v3 = vrot.slane %v82_v16, %v98_v41 }
 0x14d   :  { %1367 = vmatprep.mubr.f32.mxu0 %v9869_v55  ;;  %2654 = vmatprep.mubr.f32.mxu1 %v9869_v55 }
 0x150   :  { %1369 = vmatmul.mubr.f32.gmra.mrb[8].mxu0 %v9929_v2  ;;  %2656 = vmatmul.mubr.f32.gmra.mrb[8].mxu1 %v9929_v2 }
 0x151   :  { %1374 = vmatprep.mubr.f32.mxu0 %v9869_v55  ;;  %2661 = vmatprep.mubr.f32.mxu1 %v9869_v55 }
 0x154   :  { %1376 = vmatmul.mubr.f32.gmra.mrb[10].mxu0 %v9936_v13  ;;  %2663 = vmatmul.mubr.f32.gmra.mrb[10].mxu1 %v9936_v13 }
 0x155   :  { %1381 = vmatprep.mubr.f32.mxu0 %v9869_v55  ;;  %2668 = vmatprep.mubr.f32.mxu1 %v9869_v55 }
 0x158   :  { %1383 = vmatmul.mubr.f32.gmra.mrb[12].mxu0 %v9940_v53  ;;  %2670 = vmatmul.mubr.f32.gmra.mrb[12].mxu1 %v9940_v53 }
 0x159   :  { %1388 = vmatprep.mubr.f32.mxu0 %v9869_v55  ;;  %2675 = vmatprep.mubr.f32.mxu1 %v9869_v55 }
 0x15c   :  { %1390 = vmatmul.mubr.f32.gmra.mrb[14].mxu0 %v9941_v43  ;;  %2677 = vmatmul.mubr.f32.gmra.mrb[14].mxu1 %v9941_v43 }
 0x15d   :  { %1395 = vmatprep.mubr.f32.mxu0 %v9869_v55  ;;  %2682 = vmatprep.mubr.f32.mxu1 %v9869_v55 }
 0x160   :  { %1397 = vmatmul.mubr.f32.gmra.mrb[16].mxu0 %v9942_v5  ;;  %2684 = vmatmul.mubr.f32.gmra.mrb[16].mxu1 %v9942_v5 }
 0x161   :  { %1402 = vmatprep.mubr.f32.mxu0 %v9869_v55  ;;  %2689 = vmatprep.mubr.f32.mxu1 %v9869_v55 }
 0x164   :  { %1404 = vmatmul.mubr.f32.gmra.mrb[18].mxu0 %v9943_v56  ;;  %2691 = vmatmul.mubr.f32.gmra.mrb[18].mxu1 %v9943_v56 }
 0x165   :  { %1409 = vmatprep.mubr.f32.mxu0 %v9869_v55  ;;  %2696 = vmatprep.mubr.f32.mxu1 %v9869_v55 }
 0x168   :  { %1411 = vmatmul.mubr.f32.gmra.mrb[20].mxu0 %v9944_v33  ;;  %2698 = vmatmul.mubr.f32.gmra.mrb[20].mxu1 %v9944_v33 }
 0x169   :  { %1416 = vmatprep.mubr.f32.mxu0 %v9869_v55  ;;  %2703 = vmatprep.mubr.f32.mxu1 %v9869_v55 }
 0x16c   :  { %1418 = vmatmul.mubr.f32.gmra.mrb[22].mxu0 %v9945_v61  ;;  %2705 = vmatmul.mubr.f32.gmra.mrb[22].mxu1 %v9945_v61 }
 0x16d   :  { %1423 = vmatprep.mubr.f32.mxu0 %v9869_v55  ;;  %2710 = vmatprep.mubr.f32.mxu1 %v9869_v55  ;;  %v7034_v55 = vrot.slane %v82_v16, %v90_v17 }
 0x170   :  { %1425 = vmatmul.mubr.f32.gmra.mrb[24].mxu0 %v6532_v22  ;;  %2712 = vmatmul.mubr.f32.gmra.mrb[24].mxu1 %v6532_v22 }
 0x213   :  { %v1342_v22 = vpop.f32.mrb[0].mxu0  ;;  %v2629_v21 = vpop.f32.mrb[0].mxu1 }
 0x214   :  { %v7039_v4 = vadd.f32 %v1342_v22, %v7030_v14  ;;  %v7042_v2 = vadd.f32 %v2629_v21, %v7032_v36  ;;  %v1344_v26 = vpop.f32.mrb[1].mxu0  ;;  %v2631_v40 = vpop.f32.mrb[1].mxu1 }
 0x215   :  { %v7045_v42 = vadd.f32 %v1344_v26, %v7034_v55  ;;  %v7048_v47 = vadd.f32 %v2631_v40, %v7036_v3 }
 0x216   :  { %v7051_v13 = vmul.f32 0.70710677, %v7039_v4  ;;  %v7054_v51 = vmul.f32 0.70710677, %v7042_v2 }
 0x217   :  { %v7057_v10 = vmul.f32 0.70710677, %v7045_v42  ;;  %v7060_v53 = vmul.f32 0.70710677, %v7048_v47  ;;  %v1349_v6 = vpop.f32.mrb[2].mxu0  ;;  %v2636_v8 = vpop.f32.mrb[2].mxu1 }
 0x218   :  { %9986 = vst [vmem:[#allocation33_spill] sm:$0xff] %v7051_v13  ;;  %9987 = vst [vmem:[#allocation37_spill] sm:$0xff] %v7054_v51  ;;  %v7063_v43 = vand.u32 2147483647, %v7051_v13  ;;  %v7066_v5 = vand.u32 2147483647, %v7054_v51  ;;  %v7083_v28 = vadd.f32 %v1349_v6, %v7030_v14  ;;  %v7086_v18 = vadd.f32 %v2636_v8, %v7032_v36 }
 0x219   :  { %9988 = vst [vmem:[#allocation8_spill] sm:$0xff] %v7057_v10  ;;  %9989 = vst [vmem:[#allocation9_spill] sm:$0xff] %v7060_v53  ;;  %v7069_v56 = vand.u32 2147483647, %v7057_v10  ;;  %v7072_v33 = vand.u32 2147483647, %v7060_v53 }
 0x21a   :  { %v2874_v61 = vmul.f32 0.5, %v7063_v43  ;;  %v2876_v63 = vmul.f32 0.5, %v7066_v5  ;;  %v1351_v45 = vpop.f32.mrb[3].mxu0  ;;  %v2638_v50 = vpop.f32.mrb[3].mxu1  ;;  %v7099_v15 = vmul.f32 0.70710677, %v7083_v28 }
 0x21b   :  { %v2875_v12 = vmul.f32 0.5, %v7069_v56  ;;  %v2877_v35 = vmul.f32 0.5, %v7072_v33  ;;  %v1356_v19 = vpop.f32.mrb[4].mxu0  ;;  %v2643_v31 = vpop.f32.mrb[4].mxu1  ;;  %v7089_v1 = vadd.f32 %v1351_v45, %v7034_v55  ;;  %v7092_v49 = vadd.f32 %v2638_v50, %v7036_v3 }
 0x21c   :  { %v2926_v54 = vadd.f32 1.0, %v2874_v61  ;;  %v2928_v48 = vadd.f32 1.0, %v2876_v63  ;;  %v7078_v59 = vpop.f32.mrb[5].mxu0  ;;  %v7080_v11 = vpop.f32.mrb[5].mxu1  ;;  %9990 = vst [vmem:[#allocation39_spill] sm:$0xff] %v7099_v15 }
 0x21d   :  { %v2927_v7 = vadd.f32 1.0, %v2875_v12  ;;  %v2929_v60 = vadd.f32 1.0, %v2877_v35  ;;  %v7106_v58 = vmul.f32 0.70710677, %v7086_v18  ;;  %v7109_v57 = vmul.f32 0.70710677, %v7089_v1 }
 0x21e   :  { %5741 = vrcp.f32 %v2926_v54  ;;  %v7112_v32 = vand.u32 2147483647, %v7099_v15  ;;  %v7115_v46 = vmul.f32 0.70710677, %v7092_v49 }
 0x21f   :  { %5743 = vrcp.f32 %v2928_v48  ;;  %v7094_v52 = vpop.f32.mrb[6].mxu0  ;;  %v7096_v62 = vpop.f32.mrb[6].mxu1  ;;  %9991 = vst [vmem:[#allocation43_spill] sm:$0xff] %v7106_v58  ;;  %9992 = vst [vmem:[#allocation46_spill] sm:$0xff] %v7109_v57  ;;  %v7118_v27 = vand.u32 2147483647, %v7106_v58  ;;  %v7158_v48 = vadd.f32 %v1356_v19, %v7030_v14 }
 0x220   :  { %5745 = vrcp.f32 %v2927_v7  ;;  %v7101_v38 = vpop.f32.mrb[7].mxu0  ;;  %v7103_v44 = vpop.f32.mrb[7].mxu1  ;;  %9993 = vst [vmem:[#allocation48_spill] sm:$0xff] %v7115_v46  ;;  %v7121_v23 = vand.u32 2147483647, %v7109_v57  ;;  %v2878_v29 = vmul.f32 0.5, %v7112_v32 }
 0x221   :  { %5747 = vrcp.f32 %v2929_v60  ;;  %v7125_v30 = vand.u32 2147483647, %v7115_v46  ;;  %v2880_v37 = vmul.f32 0.5, %v7118_v27  ;;  %v7170_v19 = vmul.f32 0.70710677, %v7158_v48 }
 0x222   :  { %v2879_v20 = vmul.f32 0.5, %v7121_v23  ;;  %v2930_v0 = vadd.f32 1.0, %v2878_v29  ;;  %v7162_v29 = vadd.f32 %v2643_v31, %v7032_v36 }
 0x223   :  { %v7127_v25 = vpop.f32.mrb[8].mxu0  ;;  %v7131_v24 = vpop.f32.mrb[8].mxu1  ;;  %v2881_v39 = vmul.f32 0.5, %v7125_v30  ;;  %v2932_v17 = vadd.f32 1.0, %v2880_v37  ;;  %10005 = vst [vmem:[#allocation16_spill] sm:$0xff] %v7170_v19 }
 0x224   :  { %v7133_v9 = vpop.f32.mrb[9].mxu0  ;;  %v7136_v16 = vpop.f32.mrb[9].mxu1  ;;  %v2931_v41 = vadd.f32 1.0, %v2879_v20  ;;  %5749 = vrcp.f32 %v2930_v0  ;;  %v7174_v31 = vmul.f32 0.70710677, %v7162_v29 }
 0x225   :  { %9994 = vst [vmem:[#allocation52_spill] sm:$0xff] %v7133_v9  ;;  %9995 = vst [vmem:[#allocation55_spill] sm:$0xff] %v7136_v16  ;;  %v2933_v40 = vadd.f32 1.0, %v2881_v39  ;;  %5751 = vrcp.f32 %v2932_v17  ;;  %v7187_v57 = vand.u32 2147483647, %v7170_v19 }
 0x226   :  { %5753 = vrcp.f32 %v2931_v41  ;;  %10006 = vst [vmem:[#allocation17_spill] sm:$0xff] %v7174_v31 }
 0x227   :  { %v7138_v22 = vpop.f32.mrb[10].mxu0  ;;  %v7140_v21 = vpop.f32.mrb[10].mxu1  ;;  %5755 = vrcp.f32 %v2933_v40 }
 0x228   :  { %9996 = vst [vmem:[#allocation58_spill] sm:$0xff] %v7138_v22  ;;  %9997 = vst [vmem:[#allocation28_spill] sm:$0xff] %v7140_v21  ;;  %v7142_v26 = vpop.eup %5741  ;;  %v7144_v61 = vpop.f32.mrb[11].mxu0 }
 0x229   :  { %9998 = vst [vmem:[#allocation10_spill] sm:$0xff] %v7142_v26  ;;  %9999 = vst [vmem:[#allocation11_spill] sm:$0xff] %v7144_v61  ;;  %v7146_v63 = vpop.f32.mrb[11].mxu1  ;;  %v7148_v6 = vpop.eup %5743  ;;  %v3082_v8 = vmul.f32 0.17087276, %v7142_v26 }
 0x22a   :  { %10000 = vst [vmem:[#allocation12_spill] sm:$0xff] %v7146_v63  ;;  %10001 = vst [vmem:[#allocation13_spill] sm:$0xff] %v7148_v6  ;;  %v7151_v12 = vpop.eup %5745  ;;  %v3084_v35 = vmul.f32 0.17087276, %v7148_v6 }
 0x22b   :  { %10002 = vst [vmem:[#allocation30_spill] sm:$0xff] %v7151_v12  ;;  %v7154_v45 = vpop.eup %5747  ;;  %v3134_v50 = vadd.f32 -0.82215226, %v3082_v8  ;;  %v3083_v54 = vmul.f32 0.17087276, %v7151_v12  ;;  %v7166_v17 = vpop.f32.mrb[12].mxu0 }
 0x22c   :  { %10003 = vst [vmem:[#allocation14_spill] sm:$0xff] %v7154_v45  ;;  %v3136_v7 = vadd.f32 -0.82215226, %v3084_v35  ;;  %v3085_v60 = vmul.f32 0.17087276, %v7154_v45  ;;  %10004 = vst [vmem:[#allocation15_spill] sm:$0xff] %v7166_v17 }
 0x22d   :  { %v3186_v37 = vmul.f32 %v7142_v26, %v3134_v50  ;;  %v3135_v20 = vadd.f32 -0.82215226, %v3083_v54  ;;  %v7176_v34 = vpop.f32.mrb[12].mxu1  ;;  %v7204_v63 = vpop.f32.mrb[13].mxu0 }
 0x22e   :  { %v3188_v0 = vmul.f32 %v7148_v6, %v3136_v7  ;;  %v3137_v39 = vadd.f32 -0.82215226, %v3085_v60  ;;  %10007 = vst [vmem:[#allocation32_spill] sm:$0xff] %v7176_v34  ;;  %v7179_v7 = vpop.eup %5749  ;;  %10012 = vst [vmem:[#allocation35_spill] sm:$0xff] %v7204_v63 }
 0x22f   :  { %v3238_v41 = vadd.f32 1.4885159, %v3186_v37  ;;  %v3187_v40 = vmul.f32 %v7151_v12, %v3135_v20  ;;  %10008 = vst [vmem:[#allocation18_spill] sm:$0xff] %v7179_v7  ;;  %v7182_v20 = vpop.eup %5751 }
 0x230   :  { %v3240_v8 = vadd.f32 1.4885159, %v3188_v0  ;;  %v3189_v35 = vmul.f32 %v7154_v45, %v3137_v39  ;;  %10009 = vst [vmem:[#allocation19_spill] sm:$0xff] %v7182_v20  ;;  %v3086_v39 = vmul.f32 0.17087276, %v7179_v7  ;;  %v7189_v58 = vpop.eup %5753 }
 0x231   :  { %v3290_v50 = vmul.f32 %v7142_v26, %v3238_v41  ;;  %v3239_v54 = vadd.f32 1.4885159, %v3187_v40  ;;  %10010 = vst [vmem:[#allocation20_spill] sm:$0xff] %v7189_v58  ;;  %v3088_v40 = vmul.f32 0.17087276, %v7182_v20 }
 0x232   :  { %v3292_v60 = vmul.f32 %v7148_v6, %v3240_v8  ;;  %v3241_v37 = vadd.f32 1.4885159, %v3189_v35  ;;  %v7194_v8 = vand.u32 2147483647, %v7174_v31  ;;  %v7196_v35 = vpop.eup %5755  ;;  %v3138_v53 = vadd.f32 -0.82215226, %v3086_v39 }
 0x233   :  { %v3342_v46 = vadd.f32 -1.135204, %v3290_v50  ;;  %v3291_v0 = vmul.f32 %v7151_v12, %v3239_v54  ;;  %10011 = vst [vmem:[#allocation21_spill] sm:$0xff] %v7196_v35  ;;  %v3087_v51 = vmul.f32 0.17087276, %v7189_v58 }
 0x234   :  { %v3344_v15 = vadd.f32 -1.135204, %v3292_v60  ;;  %v3293_v41 = vmul.f32 %v7154_v45, %v3241_v37  ;;  %v3140_v13 = vadd.f32 -0.82215226, %v3088_v40  ;;  %v3089_v60 = vmul.f32 0.17087276, %v7196_v35 }
 0x235   :  { %v3394_v50 = vmul.f32 %v7142_v26, %v3342_v46  ;;  %v3343_v54 = vadd.f32 -1.135204, %v3291_v0  ;;  %v3190_v31 = vmul.f32 %v7179_v7, %v3138_v53  ;;  %v3139_v17 = vadd.f32 -0.82215226, %v3087_v51 }
 0x236   :  { %v3396_v19 = vmul.f32 %v7148_v6, %v3344_v15  ;;  %v3345_v10 = vadd.f32 -1.135204, %v3293_v41  ;;  %v3192_v0 = vmul.f32 %v7182_v20, %v3140_v13  ;;  %v3141_v39 = vadd.f32 -0.82215226, %v3089_v60 }
 0x237   :  { %v3446_v37 = vadd.f32 0.27886808, %v3394_v50  ;;  %v3395_v34 = vmul.f32 %v7151_v12, %v3343_v54  ;;  %v3242_v40 = vadd.f32 1.4885159, %v3190_v31  ;;  %v3191_v21 = vmul.f32 %v7189_v58, %v3139_v17 }
 0x238   :  { %v3448_v61 = vadd.f32 0.27886808, %v3396_v19  ;;  %v3397_v46 = vmul.f32 %v7154_v45, %v3345_v10  ;;  %v3244_v22 = vadd.f32 1.4885159, %v3192_v0  ;;  %v3193_v51 = vmul.f32 %v7196_v35, %v3141_v39 }
 0x239   :  { %v3498_v15 = vmul.f32 %v7142_v26, %v3446_v37  ;;  %v3447_v41 = vadd.f32 0.27886808, %v3395_v34  ;;  %v3294_v10 = vmul.f32 %v7179_v7, %v3242_v40  ;;  %v3243_v63 = vadd.f32 1.4885159, %v3191_v21  ;;  %v7216_v37 = vpop.f32.mrb[13].mxu1 }
 0x23a   :  { %v3500_v50 = vmul.f32 %v7148_v6, %v3448_v61  ;;  %v3449_v54 = vadd.f32 0.27886808, %v3397_v46  ;;  %v3296_v34 = vmul.f32 %v7182_v20, %v3244_v22  ;;  %v3245_v31 = vadd.f32 1.4885159, %v3193_v51  ;;  %10013 = vst [vmem:[#allocation22_spill] sm:$0xff] %v7216_v37 }
 0x23b   :  { %v3550_v53 = vadd.f32 -0.18628806, %v3498_v15  ;;  %v3499_v19 = vmul.f32 %v7151_v12, %v3447_v41  ;;  %v3346_v46 = vadd.f32 -1.135204, %v3294_v10  ;;  %v3295_v0 = vmul.f32 %v7189_v58, %v3243_v63 }
 0x23c   :  { %v3552_v13 = vadd.f32 -0.18628806, %v3500_v50  ;;  %v3501_v60 = vmul.f32 %v7154_v45, %v3449_v54  ;;  %v3348_v39 = vadd.f32 -1.135204, %v3296_v34  ;;  %v3297_v15 = vmul.f32 %v7196_v35, %v3245_v31 }
 0x23d   :  { %v3602_v61 = vmul.f32 %v7142_v26, %v3550_v53  ;;  %v3551_v17 = vadd.f32 -0.18628806, %v3499_v19  ;;  %v2882_v41 = vmul.f32 0.5, %v7187_v57  ;;  %v2884_v21 = vmul.f32 0.5, %v7194_v8 }
 0x23e   :  { %v3604_v40 = vmul.f32 %v7148_v6, %v3552_v13  ;;  %v3553_v50 = vadd.f32 -0.18628806, %v3501_v60  ;;  %v3398_v22 = vmul.f32 %v7179_v7, %v3346_v46  ;;  %v3347_v54 = vadd.f32 -1.135204, %v3295_v0 }
 0x23f   :  { %v3654_v51 = vadd.f32 0.09678418, %v3602_v61  ;;  %v3603_v53 = vmul.f32 %v7151_v12, %v3551_v17  ;;  %v3400_v19 = vmul.f32 %v7182_v20, %v3348_v39  ;;  %v3349_v10 = vadd.f32 -1.135204, %v3297_v15 }
 0x240   :  { %v3450_v63 = vadd.f32 0.27886808, %v3398_v22  ;;  %v3399_v34 = vmul.f32 %v7189_v58, %v3347_v54  ;;  %v2934_v16 = vadd.f32 1.0, %v2882_v41  ;;  %v3656_v9 = vadd.f32 0.09678418, %v3604_v40 }
 0x241   :  { %v3452_v31 = vadd.f32 0.27886808, %v3400_v19  ;;  %v3401_v37 = vmul.f32 %v7196_v35, %v3349_v10  ;;  %v3605_v13 = vmul.f32 %v7154_v45, %v3553_v50  ;;  %v2936_v60 = vadd.f32 1.0, %v2884_v21 }
 0x242   :  { %v7231_v46 = vmul.f32 0.5, %v7039_v4  ;;  %v3706_v61 = vmul.f32 %v7142_v26, %v3654_v51  ;;  %v3655_v17 = vadd.f32 0.09678418, %v3603_v53  ;;  %v3502_v0 = vmul.f32 %v7179_v7, %v3450_v63 }
 0x243   :  { %v4018_v39 = vsub.f32 0.0, %v7063_v43  ;;  %v7237_v15 = vmul.f32 0.5, %v7042_v2  ;;  %v3504_v22 = vmul.f32 %v7182_v20, %v3452_v31  ;;  %v3451_v41 = vadd.f32 0.27886808, %v3399_v34 }
 0x244   :  { %10014 = vst [vmem:[#allocation23_spill] sm:$0xff] %v7231_v46  ;;  %v4020_v40 = vsub.f32 0.0, %v7066_v5  ;;  %v4019_v21 = vsub.f32 0.0, %v7069_v56  ;;  %v3453_v50 = vadd.f32 0.27886808, %v3401_v37  ;;  %5757 = vrcp.f32 %v2934_v16 }
 0x245   :  { %10015 = vst [vmem:[#allocation24_spill] sm:$0xff] %v7237_v15  ;;  %v3708_v4 = vmul.f32 %v7148_v6, %v3656_v9  ;;  %v3657_v54 = vadd.f32 0.09678418, %v3605_v13  ;;  %v4021_v51 = vsub.f32 0.0, %v7072_v33  ;;  %5759 = vrcp.f32 %v2936_v60 }
 0x246   :  { %v3758_v53 = vadd.f32 0.37409195, %v3706_v61  ;;  %v7245_v19 = vmul.f32 0.5, %v7045_v42  ;;  %v3707_v2 = vmul.f32 %v7151_v12, %v3655_v17  ;;  %v3554_v10 = vadd.f32 -0.18628806, %v3502_v0 }
 0x247   :  { %v7249_v63 = vmul.f32 0.5, %v7048_v47  ;;  %v3556_v34 = vadd.f32 -0.18628806, %v3504_v22  ;;  %v3503_v37 = vmul.f32 %v7189_v58, %v3451_v41  ;;  %v5428_v9 = vadd.f32 %v7078_v59, %v7034_v55 }
 0x248   :  { %10016 = vst [vmem:[#allocation25_spill] sm:$0xff] %v7245_v19  ;;  %v7255_v16 = vmul.f32 %v4018_v39, %v7063_v43  ;;  %v7258_v31 = vmul.f32 %v4020_v40, %v7066_v5  ;;  %v7261_v42 = vmul.f32 %v4019_v21, %v7069_v56  ;;  %v3505_v13 = vmul.f32 %v7196_v35, %v3453_v50 }
 0x249   :  { %10017 = vst [vmem:[#allocation38_spill] sm:$0xff] %v7249_v63  ;;  %v3760_v60 = vadd.f32 0.37409195, %v3708_v4  ;;  %v3709_v47 = vmul.f32 %v7154_v45, %v3657_v54  ;;  %v7266_v61 = vmul.f32 %v4021_v51, %v7072_v33  ;;  %v4022_v17 = vsub.f32 0.0, %v7112_v32 }
 0x24a   :  { %v3810_v59 = vmul.f32 %v7142_v26, %v3758_v53  ;;  %v3759_v43 = vadd.f32 0.37409195, %v3707_v2  ;;  %v7271_v0 = vmul.f32 0.5, %v7083_v28  ;;  %v3606_v5 = vmul.f32 %v7179_v7, %v3554_v10 }
 0x24b   :  { %v3608_v56 = vmul.f32 %v7182_v20, %v3556_v34  ;;  %v4024_v39 = vsub.f32 0.0, %v7118_v27  ;;  %v3555_v22 = vadd.f32 -0.18628806, %v3503_v37  ;;  %v7276_v41 = vmul.f32 0.70710677, %v5428_v9 }
 0x24c   :  { %10018 = vst [vmem:[#allocation26_spill] sm:$0xff] %v7271_v0  ;;  %v7279_v33 = vmul.f32 0.5, %v7086_v18  ;;  %v7282_v40 = vmul.f32 0.5, %v7089_v1  ;;  %v4023_v21 = vsub.f32 0.0, %v7121_v23  ;;  %v3557_v50 = vadd.f32 -0.18628806, %v3505_v13 }
 0x24d   :  { %10019 = vst [vmem:[#allocation27_spill] sm:$0xff] %v7276_v41  ;;  %v3812_v28 = vmul.f32 %v7148_v6, %v3760_v60  ;;  %v3761_v4 = vadd.f32 0.37409195, %v3709_v47  ;;  %v7287_v54 = vmul.f32 %v4022_v17, %v7112_v32  ;;  %v7290_v51 = vmul.f32 0.5, %v7092_v49 }
 0x24e   :  { %10020 = vst [vmem:[#allocation41_spill] sm:$0xff] %v7279_v33  ;;  %10021 = vst [vmem:[#allocation44_spill] sm:$0xff] %v7282_v40  ;;  %v7292_v53 = vpop.eup %5757  ;;  %v3862_v2 = vadd.f32 1.0000237, %v3810_v59  ;;  %v3811_v18 = vmul.f32 %v7151_v12, %v3759_v43  ;;  %v3658_v10 = vadd.f32 0.09678418, %v3606_v5  ;;  %v7299_v13 = vmul.f32 %v4024_v39, %v7118_v27 }
 0x24f   :  { %10022 = vst [vmem:[#allocation47_spill] sm:$0xff] %v7290_v51  ;;  %10023 = vst [vmem:[#allocation50_spill] sm:$0xff] %v7292_v53  ;;  %v4025_v1 = vsub.f32 0.0, %v7125_v30  ;;  %v7296_v34 = vpop.eup %5759  ;;  %v3660_v37 = vadd.f32 0.09678418, %v3608_v56  ;;  %v3607_v32 = vmul.f32 %v7189_v58, %v3555_v22  ;;  %v7306_v49 = vmul.f32 %v4023_v21, %v7121_v23 }
 0x250   :  { %10024 = vst [vmem:[#allocation53_spill] sm:$0xff] %v7296_v34  ;;  %v7303_v60 = vand.u32 2147483647, %v7276_v41  ;;  %v3609_v47 = vmul.f32 %v7196_v35, %v3557_v50  ;;  %v7310_v17 = vmul.f32 0.5, %v7158_v48  ;;  %v7313_v59 = vmul.f32 0.5, %v7162_v29  ;;  %v7328_v41 = vpop.f32.mrb[14].mxu0 }
 0x251   :  { %v3864_v43 = vadd.f32 1.0000237, %v3812_v28  ;;  %v3813_v27 = vmul.f32 %v7154_v45, %v3761_v4  ;;  %v3090_v5 = vmul.f32 0.17087276, %v7292_v53  ;;  %v4026_v56 = vsub.f32 0.0, %v7187_v57 }
 0x252   :  { %10025 = vst [vmem:[#allocation56_spill] sm:$0xff] %v7310_v17  ;;  %10026 = vst [vmem:[#allocation29_spill] sm:$0xff] %v7313_v59  ;;  %v3914_v39 = vmul.f32 %v7142_v26, %v3862_v2  ;;  %v3863_v22 = vadd.f32 1.0000237, %v3811_v18  ;;  %v3710_v23 = vmul.f32 %v7179_v7, %v3658_v10  ;;  %v3092_v21 = vmul.f32 0.17087276, %v7296_v34 }
 0x253   :  { %v3712_v48 = vmul.f32 %v7182_v20, %v3660_v37  ;;  %v3659_v50 = vadd.f32 0.09678418, %v3607_v32  ;;  %v3142_v51 = vadd.f32 -0.82215226, %v3090_v5  ;;  %v2883_v29 = vmul.f32 0.5, %v7303_v60 }
 0x254   :  { %v3661_v28 = vadd.f32 0.09678418, %v3609_v47  ;;  %v7324_v4 = vmul.f32 %v4025_v1, %v7125_v30  ;;  %v3144_v59 = vadd.f32 -0.82215226, %v3092_v21  ;;  %v7326_v17 = vmul.f32 0.5, %v5428_v9 }
 0x255   :  { %v3916_v2 = vmul.f32 %v7148_v6, %v3864_v43  ;;  %v3865_v18 = vadd.f32 1.0000237, %v3813_v27  ;;  %v3194_v10 = vmul.f32 %v7292_v53, %v3142_v51  ;;  %v2935_v40 = vadd.f32 1.0, %v2883_v29 }
 0x256   :  { %10027 = vst [vmem:[#allocation31_spill] sm:$0xff] %v7326_v17  ;;  %v3966_v37 = vadd.f32 -1.2655122, %v3914_v39  ;;  %v3762_v32 = vadd.f32 0.37409195, %v3710_v23  ;;  %v7333_v5 = vmul.f32 %v4026_v56, %v7187_v57  ;;  %v3196_v47 = vmul.f32 %v7296_v34, %v3144_v59  ;;  %v7346_v56 = vpop.f32.mrb[14].mxu1 }
 0x257   :  { %v3764_v30 = vadd.f32 0.37409195, %v3712_v48  ;;  %v3711_v1 = vmul.f32 %v7189_v58, %v3659_v50  ;;  %v3246_v9 = vadd.f32 1.4885159, %v3194_v10  ;;  %5761 = vrcp.f32 %v2935_v40 }
 0x258   :  { %v3915_v21 = vmul.f32 %v7151_v12, %v3863_v22  ;;  %v3713_v43 = vmul.f32 %v7196_v35, %v3661_v28  ;;  %v3248_v27 = vadd.f32 1.4885159, %v3196_v47  ;;  %v4028_v51 = vsub.f32 0.0, %v7194_v8 }
 0x259   :  { %v3968_v29 = vadd.f32 -1.2655122, %v3916_v2  ;;  %v3917_v39 = vmul.f32 %v7154_v45, %v3865_v18  ;;  %v3298_v57 = vmul.f32 %v7292_v53, %v3246_v9  ;;  %v7344_v59 = vadd.f32 %v7080_v11, %v7036_v3 }
 0x25a   :  { %v4122_v40 = vadd.f32 %v7255_v16, %v3966_v37  ;;  %v3814_v22 = vmul.f32 %v7179_v7, %v3762_v32  ;;  %v3300_v23 = vmul.f32 %v7296_v34, %v3248_v27  ;;  %v7353_v48 = vadd.f32 %v7094_v52, %v7030_v14 }
 0x25b   :  { %v3816_v50 = vmul.f32 %v7182_v20, %v3764_v30  ;;  %v3763_v28 = vadd.f32 0.37409195, %v3711_v1  ;;  %v3350_v2 = vadd.f32 -1.135204, %v3298_v57  ;;  %v7357_v18 = vmul.f32 0.70710677, %v7344_v59 }
 0x25c   :  { %v3967_v11 = vadd.f32 -1.2655122, %v3915_v21  ;;  %v3765_v10 = vadd.f32 0.37409195, %v3713_v43  ;;  %v7360_v47 = vmul.f32 %v4028_v51, %v7194_v8  ;;  %v7363_v16 = vmul.f32 0.70710677, %v7353_v48 }
 0x25d   :  { %10028 = vst [vmem:[#allocation34_spill] sm:$0xff] %v7357_v18  ;;  %v4124_v37 = vadd.f32 %v7258_v31, %v3968_v29  ;;  %v3352_v32 = vadd.f32 -1.135204, %v3300_v23  ;;  %v7367_v52 = vand.u32 2147483647, %v7357_v18  ;;  %v7371_v30 = vadd.f32 %v7096_v62, %v7032_v36  ;;  %v7394_v18 = vpop.f32.mrb[15].mxu0 }
 0x25e   :  { %10029 = vst [vmem:[#allocation36_spill] sm:$0xff] %v7363_v16  ;;  %v3969_v1 = vadd.f32 -1.2655122, %v3917_v39  ;;  %v3866_v9 = vadd.f32 1.0000237, %v3814_v22  ;;  %v3402_v21 = vmul.f32 %v7292_v53, %v3350_v2  ;;  %v3815_v51 = vmul.f32 %v7189_v58, %v3763_v28 }
 0x25f   :  { %v7375_v8 = vand.u32 2147483647, %v7363_v16  ;;  %v4174_v43 = vmul.f32 1.442695, %v4122_v40  ;;  %v3868_v27 = vadd.f32 1.0000237, %v3816_v50  ;;  %v3817_v29 = vmul.f32 %v7196_v35, %v3765_v10 }
 0x260   :  { %v2885_v31 = vmul.f32 0.5, %v7367_v52  ;;  %v7382_v62 = vmul.f32 0.70710677, %v7371_v30  ;;  %v7386_v39 = vadd.f32 %v7101_v38, %v7034_v55  ;;  %v4178_v23 = vmul.f32 1.442695, %v4124_v37 }
 0x261   :  { %v2886_v57 = vmul.f32 0.5, %v7375_v8  ;;  %v7388_v22 = vpop.eup %5761  ;;  %v4123_v40 = vadd.f32 %v7261_v42, %v3967_v11  ;;  %v3404_v50 = vmul.f32 %v7296_v34, %v3352_v32  ;;  %v3918_v2 = vmul.f32 %v7179_v7, %v3866_v9 }
 0x262   :  { %10030 = vst [vmem:[#allocation40_spill] sm:$0xff] %v7382_v62  ;;  %10031 = vst [vmem:[#allocation42_spill] sm:$0xff] %v7388_v22  ;;  %v2937_v28 = vadd.f32 1.0, %v2885_v31  ;;  %v3454_v10 = vadd.f32 0.27886808, %v3402_v21  ;;  %v3920_v33 = vmul.f32 %v7182_v20, %v3868_v27  ;;  %v4125_v32 = vadd.f32 %v7266_v61, %v3969_v1 }
 0x263   :  { %v3091_v17 = vmul.f32 0.17087276, %v7388_v22  ;;  %v2938_v16 = vadd.f32 1.0, %v2886_v57  ;;  %v3867_v38 = vadd.f32 1.0000237, %v3815_v51  ;;  %v7407_v31 = vadd.f32 %v7103_v44, %v7036_v3 }
 0x264   :  { %5763 = vrcp.f32 %v2937_v28  ;;  %v7398_v0 = vand.u32 2147483647, %v7382_v62  ;;  %v3869_v37 = vadd.f32 1.0000237, %v3817_v29  ;;  %v7401_v11 = vmul.f32 0.70710677, %v7386_v39 }
 0x265   :  { %v3143_v42 = vadd.f32 -0.82215226, %v3091_v17  ;;  %5765 = vrcp.f32 %v2938_v16  ;;  %v3456_v9 = vadd.f32 0.27886808, %v3404_v50  ;;  %v3506_v27 = vmul.f32 %v7292_v53, %v3454_v10  ;;  %v7414_v16 = vpop.f32.mrb[15].mxu1 }
 0x266   :  { %10032 = vst [vmem:[#allocation45_spill] sm:$0xff] %v7401_v11  ;;  %v2888_v21 = vmul.f32 0.5, %v7398_v0  ;;  %5767 = vpow2.f32 %v4174_v43  ;;  %v7412_v17 = vand.u32 2147483647, %v7401_v11  ;;  %v3970_v29 = vadd.f32 -1.2655122, %v3918_v2 }
 0x267   :  { %v3195_v51 = vmul.f32 %v7388_v22, %v3143_v42  ;;  %v3972_v57 = vadd.f32 -1.2655122, %v3920_v33  ;;  %v3919_v61 = vmul.f32 %v7189_v58, %v3867_v38  ;;  %v4176_v50 = vmul.f32 1.442695, %v4123_v40  ;;  %v7456_v20 = vpop.f32.mrb[16].mxu1 }
 0x268   :  { %v2940_v1 = vadd.f32 1.0, %v2888_v21  ;;  %v3921_v28 = vmul.f32 %v7196_v35, %v3869_v37  ;;  %v2887_v43 = vmul.f32 0.5, %v7412_v17  ;;  %v3508_v10 = vmul.f32 %v7296_v34, %v3456_v9  ;;  %v7491_v63 = vpop.f32.mrb[17].mxu1 }
 0x269   :  { %v3247_v44 = vadd.f32 1.4885159, %v3195_v51  ;;  %v7421_v42 = vmul.f32 0.70710677, %v7407_v31  ;;  %v7425_v62 = vadd.f32 %v7127_v25, %v7030_v14  ;;  %v3558_v33 = vadd.f32 -0.18628806, %v3506_v27 }
 0x26a   :  { %5769 = vrcp.f32 %v2940_v1  ;;  %v2939_v40 = vadd.f32 1.0, %v2887_v43  ;;  %v4126_v38 = vadd.f32 %v7287_v54, %v3970_v29  ;;  %v4128_v37 = vadd.f32 %v7299_v13, %v3972_v57  ;;  %v7439_v54 = vpop.f32.mrb[16].mxu0 }
 0x26b   :  { %10033 = vst [vmem:[#allocation49_spill] sm:$0xff] %v7421_v42  ;;  %5771 = vpow2.f32 %v4178_v23  ;;  %v3299_v2 = vmul.f32 %v7388_v22, %v3247_v44  ;;  %v3971_v21 = vadd.f32 -1.2655122, %v3919_v61  ;;  %v7431_v9 = vand.u32 2147483647, %v7421_v42 }
 0x26c   :  { %v3973_v51 = vadd.f32 -1.2655122, %v3921_v28  ;;  %5773 = vrcp.f32 %v2939_v40  ;;  %v7434_v11 = vmul.f32 0.70710677, %v7425_v62  ;;  %v4180_v23 = vmul.f32 1.442695, %v4125_v32 }
 0x26d   :  { %v3351_v1 = vadd.f32 -1.135204, %v3299_v2  ;;  %5775 = vpow2.f32 %v4176_v50  ;;  %v3560_v27 = vadd.f32 -0.18628806, %v3508_v10  ;;  %v2889_v44 = vmul.f32 0.5, %v7431_v9 }
 0x26e   :  { %10034 = vst [vmem:[#allocation51_spill] sm:$0xff] %v7434_v11  ;;  %v7436_v25 = vpop.eup %5763  ;;  %v3610_v29 = vmul.f32 %v7292_v53, %v3558_v33  ;;  %v7447_v28 = vand.u32 2147483647, %v7434_v11  ;;  %v4182_v43 = vmul.f32 1.442695, %v4126_v38  ;;  %v4127_v50 = vadd.f32 %v7306_v49, %v3971_v21 }
 0x26f   :  { %10035 = vst [vmem:[#allocation54_spill] sm:$0xff] %v7436_v25  ;;  %v7441_v13 = vpop.eup %5765  ;;  %v3403_v57 = vmul.f32 %v7388_v22, %v3351_v1  ;;  %v3093_v61 = vmul.f32 0.17087276, %v7436_v25  ;;  %v2941_v10 = vadd.f32 1.0, %v2889_v44  ;;  %v4186_v40 = vmul.f32 1.442695, %v4128_v37 }
 0x270   :  { %10036 = vst [vmem:[#allocation57_spill] sm:$0xff] %v7441_v13  ;;  %v3094_v32 = vmul.f32 0.17087276, %v7441_v13  ;;  %v7451_v2 = vpop.eup %5767  ;;  %v4129_v42 = vadd.f32 %v7324_v4, %v3973_v51  ;;  %v4027_v1 = vsub.f32 0.0, %v7303_v60  ;;  %v2890_v11 = vmul.f32 0.5, %v7447_v28 }
 0x271   :  { %10037 = vst [vmem:[#allocation59_spill] sm:$0xff] %v7451_v2  ;;  %v3455_v35 = vadd.f32 0.27886808, %v3403_v57  ;;  %v3145_v33 = vadd.f32 -0.82215226, %v3093_v61  ;;  %5777 = vrcp.f32 %v2941_v10  ;;  %v3612_v38 = vmul.f32 %v7296_v34, %v3560_v27 }
 0x272   :  { %v3146_v58 = vadd.f32 -0.82215226, %v3094_v32  ;;  %5779 = vpow2.f32 %v4180_v23  ;;  %v3662_v49 = vadd.f32 0.09678418, %v3610_v29  ;;  %v4184_v4 = vmul.f32 1.442695, %v4127_v50 }
 0x273   :  { %v3197_v21 = vmul.f32 %v7436_v25, %v3145_v33  ;;  %5781 = vpow2.f32 %v4182_v43  ;;  %v2942_v51 = vadd.f32 1.0, %v2890_v11  ;;  %v4188_v61 = vmul.f32 1.442695, %v4129_v42  ;;  %v7470_v33 = vpop.f32.mrb[17].mxu0 }
 0x274   :  { %v7460_v44 = vpop.eup %5769  ;;  %v3198_v37 = vmul.f32 %v7441_v13, %v3146_v58  ;;  %5783 = vpow2.f32 %v4186_v40  ;;  %v3507_v32 = vmul.f32 %v7388_v22, %v3455_v35  ;;  %v7467_v23 = vmul.f32 %v4027_v1, %v7303_v60 }
 0x275   :  { %10038 = vst [vmem:[#allocation60_spill] sm:$0xff] %v7460_v44  ;;  %v7463_v57 = vpop.eup %5771  ;;  %v3249_v10 = vadd.f32 1.4885159, %v3197_v21  ;;  %v3096_v29 = vmul.f32 0.17087276, %v7460_v44  ;;  %5785 = vrcp.f32 %v2942_v51  ;;  %v3714_v58 = vmul.f32 %v7292_v53, %v3662_v49 }
 0x276   :  { %10039 = vst [vmem:[#allocation61_spill] sm:$0xff] %v7463_v57  ;;  %v3250_v27 = vadd.f32 1.4885159, %v3198_v37  ;;  %v7472_v43 = vpop.eup %5773  ;;  %v3664_v11 = vadd.f32 0.09678418, %v3612_v38  ;;  %v7478_v35 = vadd.f32 %v7131_v24, %v7032_v36  ;;  %5787 = vpow2.f32 %v4184_v4 }
 0x277   :  { %10040 = vst [vmem:[#allocation62_spill] sm:$0xff] %v7472_v43  ;;  %v3301_v50 = vmul.f32 %v7436_v25, %v3249_v10  ;;  %v7480_v42 = vpop.eup %5775  ;;  %v3148_v40 = vadd.f32 -0.82215226, %v3096_v29  ;;  %v3095_v1 = vmul.f32 0.17087276, %v7472_v43  ;;  %5789 = vpow2.f32 %v4188_v61 }
 0x278   :  { %10041 = vst [vmem:[#allocation63_spill] sm:$0xff] %v7480_v42  ;;  %v3302_v60 = vmul.f32 %v7441_v13, %v3250_v27  ;;  %v3559_v21 = vadd.f32 -0.18628806, %v3507_v32  ;;  %v7485_v37 = vmul.f32 0.5, %v7344_v59  ;;  %v7488_v38 = vmul.f32 0.5, %v7353_v48 }
 0x279   :  { %v3353_v49 = vadd.f32 -1.135204, %v3301_v50  ;;  %v3200_v24 = vmul.f32 %v7460_v44, %v3148_v40  ;;  %v3147_v10 = vadd.f32 -0.82215226, %v3095_v1  ;;  %v3766_v4 = vadd.f32 0.37409195, %v3714_v58 }
 0x27a   :  { %10042 = vst [vmem:[#allocation64_spill] sm:$0xff] %v7485_v37  ;;  %10043 = vst [vmem:[#allocation65_spill] sm:$0xff] %v7488_v38  ;;  %v3354_v51 = vadd.f32 -1.135204, %v3302_v60  ;;  %v3716_v27 = vmul.f32 %v7296_v34, %v3664_v11  ;;  %v7496_v61 = vmul.f32 0.70710677, %v7478_v35  ;;  %v3611_v58 = vmul.f32 %v7388_v22, %v3559_v21 }
 0x27b   :  { %v3405_v29 = vmul.f32 %v7436_v25, %v3353_v49  ;;  %v7498_v59 = vpop.eup %5777  ;;  %v4029_v32 = vsub.f32 0.0, %v7367_v52  ;;  %v3252_v50 = vadd.f32 1.4885159, %v3200_v24  ;;  %v3199_v60 = vmul.f32 %v7472_v43, %v3147_v10 }
 0x27c   :  { %10044 = vst [vmem:[#allocation66_spill] sm:$0xff] %v7496_v61  ;;  %10045 = vst [vmem:[#allocation67_spill] sm:$0xff] %v7498_v59  ;;  %v3406_v48 = vmul.f32 %v7441_v13, %v3354_v51  ;;  %v7503_v40 = vpop.eup %5779  ;;  %v7507_v11 = vmul.f32 0.5, %v7371_v30  ;;  %v3097_v49 = vmul.f32 0.17087276, %v7498_v59  ;;  %v3818_v10 = vmul.f32 %v7292_v53, %v3766_v4 }
 0x27d   :  { %10046 = vst [vmem:[#allocation68_spill] sm:$0xff] %v7503_v40  ;;  %v3457_v1 = vadd.f32 0.27886808, %v3405_v29  ;;  %v7510_v38 = vpop.eup %5781  ;;  %v3304_v15 = vmul.f32 %v7460_v44, %v3252_v50  ;;  %v3251_v7 = vadd.f32 1.4885159, %v3199_v60 }
 0x27e   :  { %10047 = vst [vmem:[#allocation69_spill] sm:$0xff] %v7507_v11  ;;  %10048 = vst [vmem:[#allocation70_spill] sm:$0xff] %v7510_v38  ;;  %v3458_v37 = vadd.f32 0.27886808, %v3406_v48  ;;  %v7514_v51 = vand.u32 2147483647, %v7496_v61  ;;  %v7516_v24 = vpop.eup %5783 }
 0x27f   :  { %10049 = vst [vmem:[#allocation71_spill] sm:$0xff] %v7516_v24  ;;  %v3768_v21 = vadd.f32 0.37409195, %v3716_v27  ;;  %v3509_v29 = vmul.f32 %v7436_v25, %v3457_v1  ;;  %v3149_v30 = vadd.f32 -0.82215226, %v3097_v49  ;;  %v7520_v11 = vpop.eup %5785  ;;  %v3303_v48 = vmul.f32 %v7472_v43, %v3251_v7 }
 0x280   :  { %10050 = vst [vmem:[#allocation72_spill] sm:$0xff] %v7520_v11  ;;  %v3510_v40 = vmul.f32 %v7441_v13, %v3458_v37  ;;  %v3356_v38 = vadd.f32 -1.135204, %v3304_v15  ;;  %v2892_v50 = vmul.f32 0.5, %v7514_v51  ;;  %v3663_v60 = vadd.f32 0.09678418, %v3611_v58  ;;  %v7527_v4 = vpop.eup %5787 }
 0x281   :  { %v3561_v61 = vadd.f32 -0.18628806, %v3509_v29  ;;  %v3201_v45 = vmul.f32 %v7498_v59, %v3149_v30  ;;  %v3098_v24 = vmul.f32 0.17087276, %v7520_v11  ;;  %10051 = vst [vmem:[#allocation73_spill] sm:$0xff] %v7527_v4  ;;  %v7530_v57 = vpop.eup %5789  ;;  %v3820_v15 = vmul.f32 %v7296_v34, %v3768_v21  ;;  %v7542_v21 = vpop.f32.mrb[18].mxu0 }
 0x282   :  { %v3562_v27 = vadd.f32 -0.18628806, %v3510_v40  ;;  %v3408_v1 = vmul.f32 %v7460_v44, %v3356_v38  ;;  %v3355_v49 = vadd.f32 -1.135204, %v3303_v48  ;;  %v2944_v19 = vadd.f32 1.0, %v2892_v50  ;;  %10052 = vst [vmem:[#allocation74_spill] sm:$0xff] %v7530_v57 }
 0x283   :  { %v3613_v7 = vmul.f32 %v7436_v25, %v3561_v61  ;;  %v3253_v37 = vadd.f32 1.4885159, %v3201_v45  ;;  %v3150_v58 = vadd.f32 -0.82215226, %v3098_v24  ;;  %v10053_v48 = vld [vmem:[#allocation52_spill] sm:$0xff]  ;;  %v3715_v45 = vmul.f32 %v7388_v22, %v3663_v60 }
 0x284   :  { %v3614_v29 = vmul.f32 %v7441_v13, %v3562_v27  ;;  %v3460_v30 = vadd.f32 0.27886808, %v3408_v1  ;;  %v3407_v6 = vmul.f32 %v7472_v43, %v3355_v49  ;;  %5791 = vrcp.f32 %v2944_v19 }
 0x285   :  { %v3665_v4 = vadd.f32 0.09678418, %v3613_v7  ;;  %v3305_v40 = vmul.f32 %v7498_v59, %v3253_v37  ;;  %v3202_v38 = vmul.f32 %v7520_v11, %v3150_v58  ;;  %v7540_v50 = vadd.f32 %v10053_v48, %v7034_v55 }
 0x286   :  { %v3666_v61 = vadd.f32 0.09678418, %v3614_v29  ;;  %v3512_v24 = vmul.f32 %v7460_v44, %v3460_v30  ;;  %v3459_v27 = vadd.f32 0.27886808, %v3407_v6  ;;  %v7547_v1 = vmul.f32 %v4029_v32, %v7367_v52 }
 0x287   :  { %v4030_v19 = vsub.f32 0.0, %v7375_v8  ;;  %v3357_v49 = vadd.f32 -1.135204, %v3305_v40  ;;  %v3254_v7 = vadd.f32 1.4885159, %v3202_v38  ;;  %v3717_v58 = vmul.f32 %v7436_v25, %v3665_v4 }
 0x288   :  { %v3870_v37 = vadd.f32 1.0000237, %v3818_v10  ;;  %v3564_v48 = vadd.f32 -0.18628806, %v3512_v24  ;;  %v3511_v57 = vmul.f32 %v7472_v43, %v3459_v27  ;;  %v3872_v46 = vadd.f32 1.0000237, %v3820_v15 }
 0x289   :  { %v3718_v60 = vmul.f32 %v7441_v13, %v3666_v61  ;;  %v3409_v29 = vmul.f32 %v7498_v59, %v3357_v49  ;;  %v3306_v6 = vmul.f32 %v7520_v11, %v3254_v7  ;;  %v3767_v30 = vadd.f32 0.37409195, %v3715_v45 }
 0x28a   :  { %v3616_v52 = vmul.f32 %v7460_v44, %v3564_v48  ;;  %v3563_v32 = vadd.f32 -0.18628806, %v3511_v57  ;;  %v7557_v40 = vmul.f32 0.70710677, %v7540_v50  ;;  %v4032_v10 = vsub.f32 0.0, %v7398_v0 }
 0x28b   :  { %v7561_v4 = vmul.f32 0.5, %v7386_v39  ;;  %v3461_v38 = vadd.f32 0.27886808, %v3409_v29  ;;  %v3358_v15 = vadd.f32 -1.135204, %v3306_v6  ;;  %v3922_v61 = vmul.f32 %v7292_v53, %v3870_v37 }
 0x28c   :  { %10054 = vst [vmem:[#allocation52_spill] sm:$0xff] %v7557_v40  ;;  %v3769_v24 = vadd.f32 0.37409195, %v3717_v58  ;;  %v3615_v27 = vmul.f32 %v7472_v43, %v3563_v32  ;;  %v7566_v45 = vand.u32 2147483647, %v7557_v40  ;;  %v3924_v57 = vmul.f32 %v7296_v34, %v3872_v46 }
 0x28d   :  { %10055 = vst [vmem:[#allocation75_spill] sm:$0xff] %v7561_v4  ;;  %v3770_v49 = vadd.f32 0.37409195, %v3718_v60  ;;  %v3513_v7 = vmul.f32 %v7498_v59, %v3461_v38  ;;  %v3410_v48 = vmul.f32 %v7520_v11, %v3358_v15  ;;  %v3819_v39 = vmul.f32 %v7388_v22, %v3767_v30 }
 0x28e   :  { %v7571_v42 = vpop.eup %5791  ;;  %v3668_v29 = vadd.f32 0.09678418, %v3616_v52  ;;  %v3667_v6 = vadd.f32 0.09678418, %v3615_v27  ;;  %v2891_v37 = vmul.f32 0.5, %v7566_v45  ;;  %v7576_v58 = vmul.f32 %v4030_v19, %v7375_v8 }
 0x28f   :  { %10056 = vst [vmem:[#allocation76_spill] sm:$0xff] %v7571_v42  ;;  %v3565_v32 = vadd.f32 -0.18628806, %v3513_v7  ;;  %v3462_v4 = vadd.f32 0.27886808, %v3410_v48  ;;  %v3821_v60 = vmul.f32 %v7436_v25, %v3769_v24  ;;  %v7581_v38 = vmul.f32 %v4032_v10, %v7398_v0 }
 0x290   :  { %v3100_v46 = vmul.f32 0.17087276, %v7571_v42  ;;  %v4031_v15 = vsub.f32 0.0, %v7412_v17  ;;  %v2943_v40 = vadd.f32 1.0, %v2891_v37  ;;  %v3974_v30 = vadd.f32 -1.2655122, %v3922_v61 }
 0x291   :  { %v3617_v52 = vmul.f32 %v7498_v59, %v3565_v32  ;;  %v3514_v27 = vmul.f32 %v7520_v11, %v3462_v4  ;;  %v3976_v8 = vadd.f32 -1.2655122, %v3924_v57  ;;  %v3871_v19 = vadd.f32 1.0000237, %v3819_v39 }
 0x292   :  { %v3152_v34 = vadd.f32 -0.82215226, %v3100_v46  ;;  %v3720_v7 = vmul.f32 %v7460_v44, %v3668_v29  ;;  %5793 = vrcp.f32 %v2943_v40  ;;  %v3822_v48 = vmul.f32 %v7441_v13, %v3770_v49  ;;  %v10058_v49 = vld [vmem:[#allocation55_spill] sm:$0xff] }
 0x293   :  { %v3719_v24 = vmul.f32 %v7472_v43, %v3667_v6  ;;  %v3566_v0 = vadd.f32 -0.18628806, %v3514_v27  ;;  %v3873_v53 = vadd.f32 1.0000237, %v3821_v60  ;;  %v7591_v61 = vmul.f32 %v4031_v15, %v7412_v17  ;;  %v10059_v17 = vld [vmem:[#allocation58_spill] sm:$0xff] }
 0x294   :  { %v3204_v10 = vmul.f32 %v7571_v42, %v3152_v34  ;;  %v7594_v37 = vmul.f32 0.5, %v7407_v31  ;;  %v4033_v4 = vsub.f32 0.0, %v7431_v9  ;;  %v4130_v57 = vadd.f32 %v7333_v5, %v3974_v30 }
 0x295   :  { %v3669_v39 = vadd.f32 0.09678418, %v3617_v52  ;;  %v7600_v29 = vadd.f32 %v10058_v49, %v7036_v3  ;;  %v4132_v6 = vadd.f32 %v7360_v47, %v3976_v8  ;;  %v3772_v34 = vadd.f32 0.37409195, %v3720_v7 }
 0x296   :  { %10057 = vst [vmem:[#allocation77_spill] sm:$0xff] %v7594_v37  ;;  %v3256_v40 = vadd.f32 1.4885159, %v3204_v10  ;;  %v3618_v32 = vmul.f32 %v7520_v11, %v3566_v0  ;;  %v7606_v46 = vadd.f32 %v10059_v17, %v7030_v14  ;;  %v3923_v31 = vmul.f32 %v7388_v22, %v3871_v19 }
 0x297   :  { %v3874_v60 = vadd.f32 1.0000237, %v3822_v48  ;;  %v3771_v15 = vadd.f32 0.37409195, %v3719_v24  ;;  %v3925_v30 = vmul.f32 %v7436_v25, %v3873_v53  ;;  %v7612_v52 = vmul.f32 %v4033_v4, %v7431_v9 }
 0x298   :  { %v3308_v5 = vmul.f32 %v7571_v42, %v3256_v40  ;;  %v7615_v47 = vmul.f32 0.5, %v7425_v62  ;;  %v4034_v27 = vsub.f32 0.0, %v7447_v28  ;;  %v4190_v8 = vmul.f32 1.442695, %v4130_v57 }
 0x299   :  { %v3721_v7 = vmul.f32 %v7498_v59, %v3669_v39  ;;  %v7620_v19 = vmul.f32 0.70710677, %v7600_v29  ;;  %v4194_v48 = vmul.f32 1.442695, %v4132_v6  ;;  %v3824_v24 = vmul.f32 %v7460_v44, %v3772_v34 }
 0x29a   :  { %10060 = vst [vmem:[#allocation55_spill] sm:$0xff] %v7615_v47  ;;  %v3360_v0 = vadd.f32 -1.135204, %v3308_v5  ;;  %v3670_v10 = vadd.f32 0.09678418, %v3618_v32  ;;  %v3926_v62 = vmul.f32 %v7441_v13, %v3874_v60  ;;  %v3823_v4 = vmul.f32 %v7472_v43, %v3771_v15  ;;  %v7644_v60 = vpop.f32.mrb[18].mxu1 }
 0x29b   :  { %10061 = vst [vmem:[#allocation58_spill] sm:$0xff] %v7620_v19  ;;  %v7624_v53 = vmul.f32 0.70710677, %v7606_v46  ;;  %v3975_v9 = vadd.f32 -1.2655122, %v3923_v31  ;;  %v7634_v49 = vmul.f32 %v4034_v27, %v7447_v28  ;;  %5795 = vpow2.f32 %v4190_v8 }
 0x29c   :  { %v7629_v57 = vand.u32 2147483647, %v7620_v19  ;;  %v7631_v39 = vpop.eup %5793  ;;  %v3977_v40 = vadd.f32 -1.2655122, %v3925_v30  ;;  %v3412_v6 = vmul.f32 %v7571_v42, %v3360_v0  ;;  %v3773_v32 = vadd.f32 0.37409195, %v3721_v7 }
 0x29d   :  { %10062 = vst [vmem:[#allocation78_spill] sm:$0xff] %v7624_v53  ;;  %v7638_v34 = vand.u32 2147483647, %v7624_v53  ;;  %v7641_v17 = vmul.f32 0.5, %v7478_v35  ;;  %v3099_v31 = vmul.f32 0.17087276, %v7631_v39  ;;  %5797 = vpow2.f32 %v4194_v48 }
 0x29e   :  { %v3876_v15 = vadd.f32 1.0000237, %v3824_v24  ;;  %v3722_v5 = vmul.f32 %v7520_v11, %v3670_v10  ;;  %v2893_v28 = vmul.f32 0.5, %v7629_v57  ;;  %v4131_v30 = vadd.f32 %v7467_v23, %v3975_v9 }
 0x29f   :  { %10063 = vst [vmem:[#allocation79_spill] sm:$0xff] %v7641_v17  ;;  %v3978_v27 = vadd.f32 -1.2655122, %v3926_v62  ;;  %v3875_v0 = vadd.f32 1.0000237, %v3823_v4  ;;  %v7650_v7 = vmul.f32 0.5, %v7540_v50  ;;  %v4133_v37 = vadd.f32 %v7547_v1, %v3977_v40 }
 0x2a0   :  { %v3151_v47 = vadd.f32 -0.82215226, %v3099_v31  ;;  %v3464_v8 = vadd.f32 0.27886808, %v3412_v6  ;;  %v2945_v35 = vadd.f32 1.0, %v2893_v28  ;;  %v2894_v17 = vmul.f32 0.5, %v7638_v34 }
 0x2a1   :  { %10064 = vst [vmem:[#allocation80_spill] sm:$0xff] %v7650_v7  ;;  %v3825_v48 = vmul.f32 %v7498_v59, %v3773_v32  ;;  %v4036_v24 = vsub.f32 0.0, %v7514_v51  ;;  %v3928_v23 = vmul.f32 %v7460_v44, %v3876_v15  ;;  %v3774_v9 = vadd.f32 0.37409195, %v3722_v5  ;;  %v10065_v1 = vld [vmem:[#allocation28_spill] sm:$0xff]  ;;  %v7669_v15 = vpop.f32.mrb[19].mxu0 }
 0x2a2   :  { %v3203_v10 = vmul.f32 %v7631_v39, %v3151_v47  ;;  %5799 = vrcp.f32 %v2945_v35  ;;  %v2946_v62 = vadd.f32 1.0, %v2894_v17  ;;  %v4192_v4 = vmul.f32 1.442695, %v4131_v30  ;;  %v10066_v47 = vld [vmem:[#allocation11_spill] sm:$0xff] }
 0x2a3   :  { %v4134_v50 = vadd.f32 %v7576_v58, %v3978_v27  ;;  %v3927_v6 = vmul.f32 %v7472_v43, %v3875_v0  ;;  %v3516_v28 = vmul.f32 %v7571_v42, %v3464_v8  ;;  %v7663_v40 = vadd.f32 %v10065_v1, %v7032_v36 }
 0x2a4   :  { %v3255_v31 = vadd.f32 1.4885159, %v3203_v10  ;;  %5801 = vrcp.f32 %v2946_v62  ;;  %v7667_v32 = vadd.f32 %v10066_v47, %v7034_v55  ;;  %v4196_v17 = vmul.f32 1.442695, %v4133_v37 }
 0x2a5   :  { %v3877_v5 = vadd.f32 1.0000237, %v3825_v48  ;;  %v4035_v30 = vsub.f32 0.0, %v7566_v45  ;;  %v3980_v27 = vadd.f32 -1.2655122, %v3928_v23  ;;  %v3826_v0 = vmul.f32 %v7520_v11, %v3774_v9  ;;  %v7680_v10 = vpop.eup %5795  ;;  %v10070_v48 = vld [vmem:[#allocation12_spill] sm:$0xff] }
 0x2a6   :  { %v3307_v58 = vmul.f32 %v7631_v39, %v3255_v31  ;;  %v7675_v8 = vmul.f32 0.70710677, %v7663_v40  ;;  %v7678_v35 = vmul.f32 0.70710677, %v7667_v32  ;;  %10069 = vst [vmem:[#allocation81_spill] sm:$0xff] %v7680_v10  ;;  %v7683_v37 = vmul.f32 %v4036_v24, %v7514_v51  ;;  %v7701_v24 = vpop.f32.mrb[19].mxu1 }
 0x2a7   :  { %v4198_v62 = vmul.f32 1.442695, %v4134_v50  ;;  %v3979_v1 = vadd.f32 -1.2655122, %v3927_v6  ;;  %v7687_v31 = vadd.f32 %v10070_v48, %v7036_v3  ;;  %v7689_v23 = vpop.eup %5797  ;;  %5803 = vpow2.f32 %v4192_v4 }
 0x2a8   :  { %10067 = vst [vmem:[#allocation28_spill] sm:$0xff] %v7675_v8  ;;  %10068 = vst [vmem:[#allocation11_spill] sm:$0xff] %v7678_v35  ;;  %v3568_v9 = vadd.f32 -0.18628806, %v3516_v28  ;;  %v7692_v47 = vand.u32 2147483647, %v7675_v8  ;;  %5805 = vpow2.f32 %v4196_v17  ;;  %v3929_v50 = vmul.f32 %v7498_v59, %v3877_v5 }
 0x2a9   :  { %10071 = vst [vmem:[#allocation12_spill] sm:$0xff] %v7689_v23  ;;  %v7695_v7 = vand.u32 2147483647, %v7678_v35  ;;  %v3359_v6 = vadd.f32 -1.135204, %v3307_v58  ;;  %v7699_v51 = vmul.f32 %v4035_v30, %v7566_v45  ;;  %v4136_v48 = vadd.f32 %v7581_v38, %v3980_v27  ;;  %v10074_v45 = vld [vmem:[#allocation15_spill] sm:$0xff] }
 0x2aa   :  { %v3878_v53 = vadd.f32 1.0000237, %v3826_v0  ;;  %v2896_v4 = vmul.f32 0.5, %v7692_v47  ;;  %v4135_v8 = vadd.f32 %v7591_v61, %v3979_v1  ;;  %v7708_v35 = vmul.f32 0.5, %v7600_v29 }
 0x2ab   :  { %v2895_v28 = vmul.f32 0.5, %v7695_v7  ;;  %v7711_v17 = vmul.f32 0.70710677, %v7687_v31  ;;  %v7715_v5 = vadd.f32 %v10074_v45, %v7030_v14  ;;  %v3620_v38 = vmul.f32 %v7571_v42, %v3568_v9 }
 0x2ac   :  { %10072 = vst [vmem:[#allocation82_spill] sm:$0xff] %v7708_v35  ;;  %v7717_v58 = vpop.eup %5799  ;;  %v7721_v30 = vmul.f32 0.5, %v7606_v46  ;;  %v2948_v27 = vadd.f32 1.0, %v2896_v4  ;;  %v3981_v61 = vadd.f32 -1.2655122, %v3929_v50  ;;  %v3411_v29 = vmul.f32 %v7631_v39, %v3359_v6 }
 0x2ad   :  { %10073 = vst [vmem:[#allocation83_spill] sm:$0xff] %v7711_v17  ;;  %v2947_v0 = vadd.f32 1.0, %v2895_v28  ;;  %v3101_v1 = vmul.f32 0.17087276, %v7717_v58  ;;  %v7726_v35 = vand.u32 2147483647, %v7711_v17  ;;  %v3930_v44 = vmul.f32 %v7520_v11, %v3878_v53 }
 0x2ae   :  { %10075 = vst [vmem:[#allocation15_spill] sm:$0xff] %v7721_v30  ;;  %v7728_v19 = vpop.eup %5801  ;;  %v4202_v45 = vmul.f32 1.442695, %v4136_v48  ;;  %5807 = vrcp.f32 %v2948_v27  ;;  %v7732_v9 = vmul.f32 0.70710677, %v7715_v5  ;;  %v4137_v48 = vadd.f32 %v7612_v52, %v3981_v61  ;;  %v7741_v11 = vpop.f32.mrb[20].mxu0 }
 0x2af   :  { %10076 = vst [vmem:[#allocation84_spill] sm:$0xff] %v7728_v19  ;;  %5809 = vpow2.f32 %v4198_v62  ;;  %v4200_v46 = vmul.f32 1.442695, %v4135_v8  ;;  %v3153_v4 = vadd.f32 -0.82215226, %v3101_v1  ;;  %v2897_v28 = vmul.f32 0.5, %v7726_v35 }
 0x2b0   :  { %10077 = vst [vmem:[#allocation85_spill] sm:$0xff] %v7732_v9  ;;  %v3102_v50 = vmul.f32 0.17087276, %v7728_v19  ;;  %v3672_v6 = vadd.f32 0.09678418, %v3620_v38  ;;  %5811 = vrcp.f32 %v2947_v0  ;;  %v4037_v59 = vsub.f32 0.0, %v7629_v57 }
 0x2b1   :  { %v7737_v30 = vand.u32 2147483647, %v7732_v9  ;;  %v3463_v17 = vadd.f32 0.27886808, %v3411_v29  ;;  %v3205_v53 = vmul.f32 %v7717_v58, %v3153_v4  ;;  %v7743_v62 = vpop.eup %5803  ;;  %5813 = vpow2.f32 %v4202_v45  ;;  %v7750_v61 = vpop.f32.mrb[20].mxu1 }
 0x2b2   :  { %v3154_v27 = vadd.f32 -0.82215226, %v3102_v50  ;;  %10078 = vst [vmem:[#allocation86_spill] sm:$0xff] %v7743_v62  ;;  %v3982_v8 = vadd.f32 -1.2655122, %v3930_v44  ;;  %v2949_v1 = vadd.f32 1.0, %v2897_v28  ;;  %v7746_v0 = vpop.eup %5805  ;;  %5815 = vpow2.f32 %v4200_v46 }
 0x2b3   :  { %v2898_v38 = vmul.f32 0.5, %v7737_v30  ;;  %10079 = vst [vmem:[#allocation87_spill] sm:$0xff] %v7746_v0  ;;  %v3257_v9 = vadd.f32 1.4885159, %v3205_v53  ;;  %10080 = vst [vmem:[#allocation88_spill] sm:$0xff] %v7750_v61  ;;  %v3724_v29 = vmul.f32 %v7571_v42, %v3672_v6  ;;  %v4038_v4 = vsub.f32 0.0, %v7638_v34 }
 0x2b4   :  { %v3206_v52 = vmul.f32 %v7728_v19, %v3154_v27  ;;  %5817 = vrcp.f32 %v2949_v1  ;;  %v4204_v44 = vmul.f32 1.442695, %v4137_v48  ;;  %v3515_v50 = vmul.f32 %v7631_v39, %v3463_v17  ;;  %v7756_v46 = vpop.f32.mrb[21].mxu0  ;;  %v10082_v27 = vld [vmem:[#allocation32_spill] sm:$0xff]  ;;  %v10083_v6 = vld [vmem:[#allocation35_spill] sm:$0xff]  ;;  %v7807_v25 = vpop.f32.mrb[21].mxu1 }
 0x2b5   :  { %v2950_v45 = vadd.f32 1.0, %v2898_v38  ;;  %v3309_v28 = vmul.f32 %v7717_v58, %v3257_v9  ;;  %10081 = vst [vmem:[#allocation89_spill] sm:$0xff] %v7756_v46  ;;  %v4138_v53 = vadd.f32 %v7634_v49, %v3982_v8  ;;  %v7761_v43 = vadd.f32 %v10082_v27, %v7032_v36  ;;  %10091 = vst [vmem:[#allocation95_spill] sm:$0xff] %v7807_v25 }
 0x2b6   :  { %v3258_v13 = vadd.f32 1.4885159, %v3206_v52  ;;  %v7765_v0 = vadd.f32 %v10083_v6, %v7034_v55  ;;  %v7768_v48 = vmul.f32 %v4037_v59, %v7629_v57  ;;  %v7772_v9 = vmul.f32 0.5, %v7663_v40 }
 0x2b7   :  { %5819 = vrcp.f32 %v2950_v45  ;;  %v3361_v1 = vadd.f32 -1.135204, %v3309_v28  ;;  %v3776_v49 = vadd.f32 0.37409195, %v3724_v29  ;;  %v7777_v8 = vmul.f32 %v4038_v4, %v7638_v34 }
 0x2b8   :  { %v3310_v17 = vmul.f32 %v7728_v19, %v3258_v13  ;;  %10084 = vst [vmem:[#allocation32_spill] sm:$0xff] %v7772_v9  ;;  %v7774_v38 = vpop.eup %5807  ;;  %v7780_v52 = vmul.f32 0.70710677, %v7761_v43  ;;  %v7783_v45 = vmul.f32 0.70710677, %v7765_v0  ;;  %5821 = vpow2.f32 %v4204_v44 }
 0x2b9   :  { %10085 = vst [vmem:[#allocation35_spill] sm:$0xff] %v7774_v38  ;;  %v7785_v28 = vpop.eup %5809  ;;  %v3567_v59 = vadd.f32 -0.18628806, %v3515_v50  ;;  %v3413_v13 = vmul.f32 %v7717_v58, %v3361_v1  ;;  %v3104_v40 = vmul.f32 0.17087276, %v7774_v38  ;;  %v7799_v50 = vmul.f32 0.5, %v7667_v32 }
 0x2ba   :  { %10086 = vst [vmem:[#allocation90_spill] sm:$0xff] %v7780_v52  ;;  %10087 = vst [vmem:[#allocation91_spill] sm:$0xff] %v7783_v45  ;;  %v3362_v57 = vadd.f32 -1.135204, %v3310_v17  ;;  %v7789_v27 = vpop.eup %5811  ;;  %v4206_v29 = vmul.f32 1.442695, %v4138_v53  ;;  %v3828_v17 = vmul.f32 %v7571_v42, %v3776_v49 }
 0x2bb   :  { %10088 = vst [vmem:[#allocation92_spill] sm:$0xff] %v7785_v28  ;;  %v7792_v34 = vand.u32 2147483647, %v7780_v52  ;;  %v7795_v4 = vand.u32 2147483647, %v7783_v45  ;;  %10089 = vst [vmem:[#allocation93_spill] sm:$0xff] %v7799_v50  ;;  %v7801_v1 = vpop.eup %5813 }
 0x2bc   :  { %v3465_v6 = vadd.f32 0.27886808, %v3413_v13  ;;  %v3414_v9 = vmul.f32 %v7728_v19, %v3362_v57  ;;  %v3156_v28 = vadd.f32 -0.82215226, %v3104_v40  ;;  %10090 = vst [vmem:[#allocation94_spill] sm:$0xff] %v7801_v1  ;;  %v7809_v45 = vpop.eup %5815  ;;  %v3619_v13 = vmul.f32 %v7631_v39, %v3567_v59 }
 0x2bd   :  { %v3103_v44 = vmul.f32 0.17087276, %v7789_v27  ;;  %v2900_v53 = vmul.f32 0.5, %v7792_v34  ;;  %v2899_v52 = vmul.f32 0.5, %v7795_v4  ;;  %10092 = vst [vmem:[#allocation96_spill] sm:$0xff] %v7809_v45  ;;  %5823 = vpow2.f32 %v4206_v29 }
 0x2be   :  { %v3517_v57 = vmul.f32 %v7717_v58, %v3465_v6  ;;  %v3466_v32 = vadd.f32 0.27886808, %v3414_v9  ;;  %v3208_v40 = vmul.f32 %v7774_v38, %v3156_v28  ;;  %v7814_v50 = vpop.eup %5817  ;;  %v4040_v12 = vsub.f32 0.0, %v7692_v47  ;;  %v7822_v28 = vpop.f32.mrb[22].mxu0 }
 0x2bf   :  { %10093 = vst [vmem:[#allocation97_spill] sm:$0xff] %v7814_v50  ;;  %v3155_v49 = vadd.f32 -0.82215226, %v3103_v44  ;;  %v2952_v1 = vadd.f32 1.0, %v2900_v53  ;;  %v2951_v23 = vadd.f32 1.0, %v2899_v52  ;;  %10095 = vst [vmem:[#allocation99_spill] sm:$0xff] %v7822_v28 }
 0x2c0   :  { %v3569_v62 = vadd.f32 -0.18628806, %v3517_v57  ;;  %v3518_v22 = vmul.f32 %v7728_v19, %v3466_v32  ;;  %v3260_v10 = vadd.f32 1.4885159, %v3208_v40  ;;  %v3880_v59 = vadd.f32 1.0000237, %v3828_v17 }
 0x2c1   :  { %v7818_v45 = vpop.eup %5819  ;;  %v3207_v6 = vmul.f32 %v7789_v27, %v3155_v49  ;;  %v3105_v9 = vmul.f32 0.17087276, %v7814_v50  ;;  %5825 = vrcp.f32 %v2952_v1  ;;  %v3671_v29 = vadd.f32 0.09678418, %v3619_v13 }
 0x2c2   :  { %10094 = vst [vmem:[#allocation98_spill] sm:$0xff] %v7818_v45  ;;  %v3621_v44 = vmul.f32 %v7717_v58, %v3569_v62  ;;  %v3570_v52 = vadd.f32 -0.18628806, %v3518_v22  ;;  %v3312_v53 = vmul.f32 %v7774_v38, %v3260_v10  ;;  %v3106_v40 = vmul.f32 0.17087276, %v7818_v45  ;;  %v7829_v1 = vpop.eup %5821 }
 0x2c3   :  { %v3259_v57 = vadd.f32 1.4885159, %v3207_v6  ;;  %v3157_v32 = vadd.f32 -0.82215226, %v3105_v9  ;;  %5827 = vrcp.f32 %v2951_v23  ;;  %v4039_v26 = vsub.f32 0.0, %v7695_v7  ;;  %10096 = vst [vmem:[#allocation100_spill] sm:$0xff] %v7829_v1 }
 0x2c4   :  { %v3673_v2 = vadd.f32 0.09678418, %v3621_v44  ;;  %v3622_v17 = vmul.f32 %v7728_v19, %v3570_v52  ;;  %v3364_v49 = vadd.f32 -1.135204, %v3312_v53  ;;  %v7833_v62 = vmul.f32 0.5, %v7687_v31  ;;  %v7836_v6 = vpop.f32.mrb[22].mxu1 }
 0x2c5   :  { %v3311_v13 = vmul.f32 %v7789_v27, %v3259_v57  ;;  %v3209_v22 = vmul.f32 %v7814_v50, %v3157_v32  ;;  %v3158_v10 = vadd.f32 -0.82215226, %v3106_v40  ;;  %10098 = vst [vmem:[#allocation102_spill] sm:$0xff] %v7836_v6  ;;  %v3723_v23 = vmul.f32 %v7631_v39, %v3671_v29  ;;  %v10099_v29 = vld [vmem:[#allocation22_spill] sm:$0xff] }
 0x2c6   :  { %10097 = vst [vmem:[#allocation101_spill] sm:$0xff] %v7833_v62  ;;  %v3725_v9 = vmul.f32 %v7717_v58, %v3673_v2  ;;  %v3416_v44 = vmul.f32 %v7774_v38, %v3364_v49  ;;  %v7842_v52 = vmul.f32 %v4040_v12, %v7692_v47  ;;  %v3932_v53 = vmul.f32 %v7571_v42, %v3880_v59 }
 0x2c7   :  { %v3363_v57 = vadd.f32 -1.135204, %v3311_v13  ;;  %v3261_v1 = vadd.f32 1.4885159, %v3209_v22  ;;  %v3210_v31 = vmul.f32 %v7818_v45, %v3158_v10  ;;  %v3674_v62 = vadd.f32 0.09678418, %v3622_v17  ;;  %v7853_v2 = vpop.eup %5823 }
 0x2c8   :  { %v3468_v32 = vadd.f32 0.27886808, %v3416_v44  ;;  %v7847_v40 = vmul.f32 %v4039_v26, %v7695_v7  ;;  %v7851_v6 = vadd.f32 %v10099_v29, %v7036_v3  ;;  %10100 = vst [vmem:[#allocation22_spill] sm:$0xff] %v7853_v2  ;;  %v4041_v59 = vsub.f32 0.0, %v7726_v35 }
 0x2c9   :  { %v3415_v12 = vmul.f32 %v7789_v27, %v3363_v57  ;;  %v3313_v47 = vmul.f32 %v7814_v50, %v3261_v1  ;;  %v3262_v49 = vadd.f32 1.4885159, %v3210_v31  ;;  %v3775_v13 = vadd.f32 0.37409195, %v3723_v23 }
 0x2ca   :  { %v3777_v22 = vadd.f32 0.37409195, %v3725_v9  ;;  %v3520_v17 = vmul.f32 %v7774_v38, %v3468_v32  ;;  %v7860_v26 = vmul.f32 0.5, %v7715_v5  ;;  %v3984_v10 = vadd.f32 -1.2655122, %v3932_v53 }
 0x2cb   :  { %v7862_v7 = vpop.eup %5825  ;;  %v3467_v44 = vadd.f32 0.27886808, %v3415_v12  ;;  %v3365_v29 = vadd.f32 -1.135204, %v3313_v47  ;;  %v3314_v42 = vmul.f32 %v7818_v45, %v3262_v49  ;;  %v3726_v57 = vmul.f32 %v7728_v19, %v3674_v62 }
 0x2cc   :  { %10101 = vst [vmem:[#allocation103_spill] sm:$0xff] %v7860_v26  ;;  %10102 = vst [vmem:[#allocation104_spill] sm:$0xff] %v7862_v7  ;;  %v3572_v1 = vadd.f32 -0.18628806, %v3520_v17  ;;  %v3108_v2 = vmul.f32 0.17087276, %v7862_v7  ;;  %v7875_v53 = vmul.f32 %v4041_v59, %v7726_v35  ;;  %v3827_v12 = vmul.f32 %v7631_v39, %v3775_v13 }
 0x2cd   :  { %v7868_v23 = vmul.f32 0.70710677, %v7851_v6  ;;  %v7870_v9 = vpop.eup %5827  ;;  %v3519_v5 = vmul.f32 %v7789_v27, %v3467_v44  ;;  %v3417_v31 = vmul.f32 %v7814_v50, %v3365_v29  ;;  %v3366_v32 = vadd.f32 -1.135204, %v3314_v42 }
 0x2ce   :  { %10104 = vst [vmem:[#allocation106_spill] sm:$0xff] %v7870_v9  ;;  %v3829_v62 = vmul.f32 %v7717_v58, %v3777_v22  ;;  %v3624_v47 = vmul.f32 %v7774_v38, %v3572_v1  ;;  %v3160_v49 = vadd.f32 -0.82215226, %v3108_v2  ;;  %v3107_v25 = vmul.f32 0.17087276, %v7870_v9 }
 0x2cf   :  { %10103 = vst [vmem:[#allocation105_spill] sm:$0xff] %v7868_v23  ;;  %v3571_v17 = vadd.f32 -0.18628806, %v3519_v5  ;;  %v3469_v26 = vadd.f32 0.27886808, %v3417_v31  ;;  %v3418_v28 = vmul.f32 %v7818_v45, %v3366_v32  ;;  %v4042_v5 = vsub.f32 0.0, %v7737_v30 }
 0x2d0   :  { %v3778_v44 = vadd.f32 0.37409195, %v3726_v57  ;;  %v3676_v46 = vadd.f32 0.09678418, %v3624_v47  ;;  %v3212_v29 = vmul.f32 %v7862_v7, %v3160_v49  ;;  %v7884_v35 = vand.u32 2147483647, %v7868_v23 }
 0x2d1   :  { %v3623_v42 = vmul.f32 %v7789_v27, %v3571_v17  ;;  %v3521_v59 = vmul.f32 %v7814_v50, %v3469_v26  ;;  %v3470_v13 = vadd.f32 0.27886808, %v3418_v28  ;;  %v3159_v22 = vadd.f32 -0.82215226, %v3107_v25 }
 0x2d2   :  { %v3879_v2 = vadd.f32 1.0000237, %v3827_v12  ;;  %v3728_v1 = vmul.f32 %v7774_v38, %v3676_v46  ;;  %v3264_v31 = vadd.f32 1.4885159, %v3212_v29  ;;  %v3881_v23 = vadd.f32 1.0000237, %v3829_v62 }
 0x2d3   :  { %v3675_v32 = vadd.f32 0.09678418, %v3623_v42  ;;  %v3573_v57 = vadd.f32 -0.18628806, %v3521_v59  ;;  %v3522_v47 = vmul.f32 %v7818_v45, %v3470_v13  ;;  %v3211_v49 = vmul.f32 %v7870_v9, %v3159_v22 }
 0x2d4   :  { %v3780_v61 = vadd.f32 0.37409195, %v3728_v1  ;;  %v3316_v17 = vmul.f32 %v7862_v7, %v3264_v31  ;;  %v2901_v26 = vmul.f32 0.5, %v7884_v35  ;;  %v3830_v25 = vmul.f32 %v7728_v19, %v3778_v44 }
 0x2d5   :  { %v3625_v28 = vmul.f32 %v7814_v50, %v3573_v57  ;;  %v3574_v46 = vadd.f32 -0.18628806, %v3522_v47  ;;  %v3263_v12 = vadd.f32 1.4885159, %v3211_v49  ;;  %v4140_v29 = vadd.f32 %v7683_v37, %v3984_v10 }
 0x2d6   :  { %v3727_v42 = vmul.f32 %v7789_v27, %v3675_v32  ;;  %v7899_v59 = vmul.f32 %v4042_v5, %v7737_v30  ;;  %v3368_v13 = vadd.f32 -1.135204, %v3316_v17  ;;  %v3832_v62 = vmul.f32 %v7774_v38, %v3780_v61 }
 0x2d7   :  { %v3677_v22 = vadd.f32 0.09678418, %v3625_v28  ;;  %v3626_v1 = vmul.f32 %v7818_v45, %v3574_v46  ;;  %v3315_v31 = vmul.f32 %v7870_v9, %v3263_v12  ;;  %v3931_v44 = vmul.f32 %v7631_v39, %v3879_v2 }
 0x2d8   :  { %v3933_v57 = vmul.f32 %v7717_v58, %v3881_v23  ;;  %v3420_v47 = vmul.f32 %v7862_v7, %v3368_v13  ;;  %v2953_v37 = vadd.f32 1.0, %v2901_v26  ;;  %v3882_v10 = vadd.f32 1.0000237, %v3830_v25 }
 0x2d9   :  { %v3729_v32 = vmul.f32 %v7814_v50, %v3677_v22  ;;  %v3678_v30 = vadd.f32 0.09678418, %v3626_v1  ;;  %v3367_v5 = vadd.f32 -1.135204, %v3315_v31  ;;  %v4210_v49 = vmul.f32 1.442695, %v4140_v29 }
 0x2da   :  { %v3472_v17 = vadd.f32 0.27886808, %v3420_v47  ;;  %5829 = vrcp.f32 %v2953_v37  ;;  %v7910_v61 = vadd.f32 %v7328_v41, %v7030_v14  ;;  %v3884_v28 = vadd.f32 1.0000237, %v3832_v62 }
 0x2db   :  { %v3779_v46 = vadd.f32 0.37409195, %v3727_v42  ;;  %v3730_v2 = vmul.f32 %v7818_v45, %v3678_v30  ;;  %v3419_v23 = vmul.f32 %v7870_v9, %v3367_v5  ;;  %v3983_v12 = vadd.f32 -1.2655122, %v3931_v44 }
 0x2dc   :  { %v3781_v26 = vadd.f32 0.37409195, %v3729_v32  ;;  %v7915_v25 = vmul.f32 0.5, %v7761_v43  ;;  %v3524_v13 = vmul.f32 %v7862_v7, %v3472_v17  ;;  %v3985_v29 = vadd.f32 -1.2655122, %v3933_v57 }
 0x2dd   :  { %v3934_v22 = vmul.f32 %v7728_v19, %v3882_v10  ;;  %v7920_v1 = vmul.f32 0.5, %v7765_v0  ;;  %v3471_v41 = vadd.f32 0.27886808, %v3419_v23  ;;  %5831 = vpow2.f32 %v4210_v49 }
 0x2de   :  { %10105 = vst [vmem:[#allocation107_spill] sm:$0xff] %v7915_v25  ;;  %v3782_v42 = vadd.f32 0.37409195, %v3730_v2  ;;  %v3576_v62 = vadd.f32 -0.18628806, %v3524_v13  ;;  %v3936_v44 = vmul.f32 %v7774_v38, %v3884_v28  ;;  %v3831_v43 = vmul.f32 %v7789_v27, %v3779_v46 }
 0x2df   :  { %10106 = vst [vmem:[#allocation108_spill] sm:$0xff] %v7920_v1  ;;  %v7923_v31 = vmul.f32 0.70710677, %v7910_v61  ;;  %v4044_v47 = vsub.f32 0.0, %v7792_v34  ;;  %v3523_v57 = vmul.f32 %v7870_v9, %v3471_v41  ;;  %v4139_v37 = vadd.f32 %v7699_v51, %v3983_v12 }
 0x2e0   :  { %v3833_v0 = vmul.f32 %v7814_v50, %v3781_v26  ;;  %v3628_v10 = vmul.f32 %v7862_v7, %v3576_v62  ;;  %v4141_v30 = vadd.f32 %v7768_v48, %v3985_v29  ;;  %v3986_v5 = vadd.f32 -1.2655122, %v3934_v22 }
 0x2e1   :  { %10107 = vst [vmem:[#allocation109_spill] sm:$0xff] %v7923_v31  ;;  %v7933_v32 = vand.u32 2147483647, %v7923_v31  ;;  %v3575_v49 = vadd.f32 -0.18628806, %v3523_v57  ;;  %v4043_v17 = vsub.f32 0.0, %v7795_v4  ;;  %v3834_v28 = vmul.f32 %v7818_v45, %v3782_v42 }
 0x2e2   :  { %v3680_v46 = vadd.f32 0.09678418, %v3628_v10  ;;  %v7941_v51 = vadd.f32 %v7346_v56, %v7032_v36  ;;  %v3988_v23 = vadd.f32 -1.2655122, %v3936_v44  ;;  %v3883_v12 = vadd.f32 1.0000237, %v3831_v43 }
 0x2e3   :  { %v2902_v2 = vmul.f32 0.5, %v7933_v32  ;;  %v7944_v26 = vmul.f32 %v4044_v47, %v7792_v34  ;;  %v3627_v48 = vmul.f32 %v7870_v9, %v3575_v49  ;;  %v4208_v29 = vmul.f32 1.442695, %v4139_v37 }
 0x2e4   :  { %v7947_v13 = vpop.eup %5829  ;;  %v3885_v22 = vadd.f32 1.0000237, %v3833_v0  ;;  %v3732_v41 = vmul.f32 %v7862_v7, %v3680_v46  ;;  %v4212_v62 = vmul.f32 1.442695, %v4141_v30  ;;  %v4142_v57 = vadd.f32 %v7777_v8, %v3986_v5 }
 0x2e5   :  { %10108 = vst [vmem:[#allocation110_spill] sm:$0xff] %v7947_v13  ;;  %v2954_v42 = vadd.f32 1.0, %v2902_v2  ;;  %v3679_v10 = vadd.f32 0.09678418, %v3627_v48  ;;  %v7952_v56 = vmul.f32 %v4043_v17, %v7795_v4  ;;  %v3886_v44 = vadd.f32 1.0000237, %v3834_v28 }
 0x2e6   :  { %v3109_v34 = vmul.f32 0.17087276, %v7947_v13  ;;  %v7956_v43 = vmul.f32 0.70710677, %v7941_v51  ;;  %v4144_v47 = vadd.f32 %v7842_v52, %v3988_v23  ;;  %v3935_v37 = vmul.f32 %v7789_v27, %v3883_v12  ;;  %v7970_v17 = vpop.f32.mrb[23].mxu0 }
 0x2e7   :  { %5833 = vrcp.f32 %v2954_v42  ;;  %v3784_v0 = vadd.f32 0.37409195, %v3732_v41  ;;  %v7962_v30 = vadd.f32 %v7394_v18, %v7034_v55  ;;  %v7964_v8 = vpop.eup %5831  ;;  %v3937_v4 = vmul.f32 %v7814_v50, %v3885_v22 }
 0x2e8   :  { %10109 = vst [vmem:[#allocation111_spill] sm:$0xff] %v7956_v43  ;;  %5835 = vpow2.f32 %v4208_v29  ;;  %v3161_v5 = vadd.f32 -0.82215226, %v3109_v34  ;;  %v7968_v49 = vand.u32 2147483647, %v7956_v43  ;;  %v3731_v52 = vmul.f32 %v7870_v9, %v3679_v10 }
 0x2e9   :  { %v4214_v28 = vmul.f32 1.442695, %v4142_v57  ;;  %v7974_v46 = vmul.f32 0.5, %v7851_v6  ;;  %v4045_v18 = vsub.f32 0.0, %v7884_v35  ;;  %5837 = vpow2.f32 %v4212_v62 }
 0x2ea   :  { %v3938_v2 = vmul.f32 %v7818_v45, %v3886_v44  ;;  %v3213_v23 = vmul.f32 %v7947_v13, %v3161_v5  ;;  %v2904_v12 = vmul.f32 0.5, %v7968_v49  ;;  %v4218_v48 = vmul.f32 1.442695, %v4144_v47 }
 0x2eb   :  { %10110 = vst [vmem:[#allocation112_spill] sm:$0xff] %v7974_v46  ;;  %v3987_v29 = vadd.f32 -1.2655122, %v3935_v37  ;;  %v7981_v22 = vmul.f32 0.70710677, %v7962_v30  ;;  %v7985_v41 = vadd.f32 %v7414_v16, %v7036_v3  ;;  %v3836_v42 = vmul.f32 %v7862_v7, %v3784_v0 }
 0x2ec   :  { %v3989_v6 = vadd.f32 -1.2655122, %v3937_v4  ;;  %v3265_v57 = vadd.f32 1.4885159, %v3213_v23  ;;  %v2956_v62 = vadd.f32 1.0, %v2904_v12  ;;  %5839 = vpow2.f32 %v4214_v28  ;;  %v7998_v4 = vpop.f32.mrb[23].mxu1 }
 0x2ed   :  { %10111 = vst [vmem:[#allocation113_spill] sm:$0xff] %v7981_v22  ;;  %v3783_v10 = vadd.f32 0.37409195, %v3731_v52  ;;  %v7989_v44 = vmul.f32 %v4045_v18, %v7884_v35  ;;  %v7992_v34 = vand.u32 2147483647, %v7981_v22  ;;  %v4143_v0 = vadd.f32 %v7847_v40, %v3987_v29 }
 0x2ee   :  { %v3990_v47 = vadd.f32 -1.2655122, %v3938_v2  ;;  %v3317_v37 = vmul.f32 %v7947_v13, %v3265_v57  ;;  %5841 = vrcp.f32 %v2956_v62  ;;  %v7996_v16 = vmul.f32 0.70710677, %v7985_v41 }
 0x2ef   :  { %5843 = vpow2.f32 %v4218_v48  ;;  %v8002_v5 = vmul.f32 0.5, %v7910_v61  ;;  %v2903_v35 = vmul.f32 0.5, %v7992_v34  ;;  %v4145_v52 = vadd.f32 %v7875_v53, %v3989_v6 }
 0x2f0   :  { %10112 = vst [vmem:[#allocation114_spill] sm:$0xff] %v7996_v16  ;;  %v3888_v18 = vadd.f32 1.0000237, %v3836_v42  ;;  %v3369_v2 = vadd.f32 -1.135204, %v3317_v37  ;;  %v3835_v12 = vmul.f32 %v7870_v9, %v3783_v10  ;;  %v8015_v40 = vadd.f32 %v7439_v54, %v7030_v14 }
 0x2f1   :  { %10113 = vst [vmem:[#allocation115_spill] sm:$0xff] %v8002_v5  ;;  %v8005_v28 = vpop.eup %5833  ;;  %v8009_v23 = vand.u32 2147483647, %v7996_v16  ;;  %v2955_v57 = vadd.f32 1.0, %v2903_v35  ;;  %v4146_v29 = vadd.f32 %v7899_v59, %v3990_v47  ;;  %v4046_v6 = vsub.f32 0.0, %v7933_v32 }
 0x2f2   :  { %10114 = vst [vmem:[#allocation116_spill] sm:$0xff] %v8005_v28  ;;  %v3110_v48 = vmul.f32 0.17087276, %v8005_v28  ;;  %v8017_v61 = vpop.eup %5835  ;;  %v3421_v53 = vmul.f32 %v7947_v13, %v3369_v2  ;;  %v4216_v62 = vmul.f32 1.442695, %v4143_v0  ;;  %v8024_v10 = vmul.f32 0.5, %v7941_v51 }
 0x2f3   :  { %v2905_v42 = vmul.f32 0.5, %v8009_v23  ;;  %5845 = vrcp.f32 %v2955_v57  ;;  %v8026_v35 = vpop.eup %5837  ;;  %v4220_v54 = vmul.f32 1.442695, %v4145_v52  ;;  %v3940_v5 = vmul.f32 %v7862_v7, %v3888_v18  ;;  %v8042_v18 = vpop.f32.mrb[24].mxu0 }
 0x2f4   :  { %v3162_v37 = vadd.f32 -0.82215226, %v3110_v48  ;;  %10115 = vst [vmem:[#allocation117_spill] sm:$0xff] %v8024_v10  ;;  %v3473_v46 = vadd.f32 0.27886808, %v3421_v53  ;;  %v8035_v0 = vadd.f32 %v7456_v20, %v7032_v36  ;;  %v8040_v52 = vadd.f32 %v7470_v33, %v7034_v55  ;;  %v8076_v43 = vpop.f32.mrb[25].mxu0 }
 0x2f5   :  { %v2957_v25 = vadd.f32 1.0, %v2905_v42  ;;  %v3887_v59 = vadd.f32 1.0000237, %v3835_v12  ;;  %v8031_v2 = vmul.f32 0.70710677, %v8015_v40  ;;  %v8047_v53 = vmul.f32 %v4046_v6, %v7933_v32 }
 0x2f6   :  { %v3214_v47 = vmul.f32 %v8005_v28, %v3162_v37  ;;  %v4222_v51 = vmul.f32 1.442695, %v4146_v29  ;;  %v3525_v48 = vmul.f32 %v7947_v13, %v3473_v46  ;;  %v8044_v12 = vpop.eup %5839  ;;  %v8050_v42 = vmul.f32 0.5, %v7962_v30  ;;  %v8055_v46 = vpop.f32.mrb[24].mxu1 }
 0x2f7   :  { %10116 = vst [vmem:[#allocation118_spill] sm:$0xff] %v8031_v2  ;;  %5847 = vrcp.f32 %v2957_v25  ;;  %10117 = vst [vmem:[#allocation119_spill] sm:$0xff] %v8044_v12  ;;  %v8053_v20 = vand.u32 2147483647, %v8031_v2  ;;  %v3992_v33 = vadd.f32 -1.2655122, %v3940_v5  ;;  %v3939_v32 = vmul.f32 %v7870_v9, %v3887_v59 }
 0x2f8   :  { %v3266_v57 = vadd.f32 1.4885159, %v3214_v47  ;;  %10118 = vst [vmem:[#allocation120_spill] sm:$0xff] %v8050_v42  ;;  %v8057_v25 = vpop.eup %5841  ;;  %5849 = vpow2.f32 %v4216_v62  ;;  %v3577_v29 = vadd.f32 -0.18628806, %v3525_v48  ;;  %v4048_v1 = vsub.f32 0.0, %v7968_v49 }
 0x2f9   :  { %v8060_v37 = vmul.f32 0.70710677, %v8035_v0  ;;  %v8062_v47 = vpop.eup %5843  ;;  %v3112_v6 = vmul.f32 0.17087276, %v8057_v25  ;;  %v2906_v10 = vmul.f32 0.5, %v8053_v20  ;;  %5851 = vpow2.f32 %v4220_v54 }
 0x2fa   :  { %10120 = vst [vmem:[#allocation122_spill] sm:$0xff] %v8062_v47  ;;  %v3318_v30 = vmul.f32 %v8005_v28, %v3266_v57  ;;  %v3629_v42 = vmul.f32 %v7947_v13, %v3577_v29  ;;  %v8074_v62 = vmul.f32 0.70710677, %v8040_v52  ;;  %5853 = vpow2.f32 %v4222_v51 }
 0x2fb   :  { %10119 = vst [vmem:[#allocation121_spill] sm:$0xff] %v8060_v37  ;;  %v8071_v5 = vand.u32 2147483647, %v8060_v37  ;;  %v3164_v2 = vadd.f32 -0.82215226, %v3112_v6  ;;  %v2958_v59 = vadd.f32 1.0, %v2906_v10  ;;  %v4148_v57 = vadd.f32 %v7944_v26, %v3992_v33 }
 0x2fc   :  { %10121 = vst [vmem:[#allocation123_spill] sm:$0xff] %v8074_v62  ;;  %v3370_v48 = vadd.f32 -1.135204, %v3318_v30  ;;  %v8081_v29 = vand.u32 2147483647, %v8074_v62  ;;  %v8087_v30 = vpop.f32.mrb[25].mxu1  ;;  %v8092_v26 = vadd.f32 %v7491_v63, %v7036_v3  ;;  %v8095_v22 = vmul.f32 %v4048_v1, %v7968_v49 }
 0x2fd   :  { %v2908_v16 = vmul.f32 0.5, %v8071_v5  ;;  %v8083_v7 = vpop.eup %5845  ;;  %v3991_v37 = vadd.f32 -1.2655122, %v3939_v32  ;;  %v3216_v54 = vmul.f32 %v8057_v25, %v3164_v2  ;;  %5855 = vrcp.f32 %v2958_v59 }
 0x2fe   :  { %v3422_v31 = vmul.f32 %v8005_v28, %v3370_v48  ;;  %v3681_v10 = vadd.f32 0.09678418, %v3629_v42  ;;  %v3111_v51 = vmul.f32 0.17087276, %v8083_v7  ;;  %v2907_v32 = vmul.f32 0.5, %v8081_v29 }
 0x2ff   :  { %v2960_v6 = vadd.f32 1.0, %v2908_v16  ;;  %v3268_v62 = vadd.f32 1.4885159, %v3216_v54  ;;  %v4226_v2 = vmul.f32 1.442695, %v4148_v57  ;;  %v4047_v42 = vsub.f32 0.0, %v7992_v34 }
 0x300   :  { %v3474_v33 = vadd.f32 0.27886808, %v3422_v31  ;;  %v3163_v59 = vadd.f32 -0.82215226, %v3111_v51  ;;  %v2959_v31 = vadd.f32 1.0, %v2907_v32  ;;  %v4147_v1 = vadd.f32 %v7952_v56, %v3991_v37 }
 0x301   :  { %v8098_v48 = vpop.eup %5847  ;;  %5857 = vrcp.f32 %v2960_v6  ;;  %v3320_v9 = vmul.f32 %v8057_v25, %v3268_v62  ;;  %v3733_v49 = vmul.f32 %v7947_v13, %v3681_v10  ;;  %v8110_v57 = vmul.f32 0.70710677, %v8092_v26 }
 0x302   :  { %v3526_v16 = vmul.f32 %v8005_v28, %v3474_v33  ;;  %v3113_v63 = vmul.f32 0.17087276, %v8098_v48  ;;  %v8104_v54 = vpop.eup %5849  ;;  %v3215_v45 = vmul.f32 %v8083_v7, %v3163_v59  ;;  %5859 = vrcp.f32 %v2959_v31 }
 0x303   :  { %10122 = vst [vmem:[#allocation124_spill] sm:$0xff] %v8104_v54  ;;  %10123 = vst [vmem:[#allocation125_spill] sm:$0xff] %v8110_v57  ;;  %v3372_v6 = vadd.f32 -1.135204, %v3320_v9  ;;  %v8113_v62 = vmul.f32 0.5, %v7985_v41  ;;  %v4049_v32 = vsub.f32 0.0, %v8009_v23  ;;  %v8119_v56 = vpop.eup %5851  ;;  %5861 = vpow2.f32 %v4226_v2 }
 0x304   :  { %v3578_v51 = vadd.f32 -0.18628806, %v3526_v16  ;;  %v3165_v47 = vadd.f32 -0.82215226, %v3113_v63  ;;  %v3267_v33 = vadd.f32 1.4885159, %v3215_v45  ;;  %v8127_v45 = vpop.eup %5853 }
 0x305   :  { %10124 = vst [vmem:[#allocation126_spill] sm:$0xff] %v8113_v62  ;;  %v8117_v38 = vand.u32 2147483647, %v8110_v57  ;;  %10125 = vst [vmem:[#allocation127_spill] sm:$0xff] %v8119_v56  ;;  %v3424_v10 = vmul.f32 %v8057_v25, %v3372_v6  ;;  %v8125_v9 = vmul.f32 0.5, %v8015_v40  ;;  %v8137_v40 = vmul.f32 %v4049_v32, %v8009_v23 }
 0x306   :  { %v3630_v37 = vmul.f32 %v8005_v28, %v3578_v51  ;;  %v3217_v59 = vmul.f32 %v8098_v48, %v3165_v47  ;;  %10127 = vst [vmem:[#allocation129_spill] sm:$0xff] %v8127_v45  ;;  %v4224_v41 = vmul.f32 1.442695, %v4147_v1  ;;  %v3785_v16 = vadd.f32 0.37409195, %v3733_v49 }
 0x307   :  { %10126 = vst [vmem:[#allocation128_spill] sm:$0xff] %v8125_v9  ;;  %v3319_v63 = vmul.f32 %v8083_v7, %v3267_v33  ;;  %v2909_v31 = vmul.f32 0.5, %v8117_v38  ;;  %v8131_v62 = vpop.eup %5855  ;;  %v3476_v56 = vadd.f32 0.27886808, %v3424_v10  ;;  %v8134_v51 = vmul.f32 %v4047_v42, %v7992_v34 }
 0x308   :  { %10128 = vst [vmem:[#allocation130_spill] sm:$0xff] %v8131_v62  ;;  %v3682_v57 = vadd.f32 0.09678418, %v3630_v37  ;;  %v3269_v6 = vadd.f32 1.4885159, %v3217_v59  ;;  %5863 = vpow2.f32 %v4224_v41  ;;  %v8147_v2 = vmul.f32 0.5, %v8035_v0 }
 0x309   :  { %v3371_v47 = vadd.f32 -1.135204, %v3319_v63  ;;  %v3114_v1 = vmul.f32 0.17087276, %v8131_v62  ;;  %v3528_v33 = vmul.f32 %v8057_v25, %v3476_v56  ;;  %v2961_v45 = vadd.f32 1.0, %v2909_v31 }
 0x30a   :  { %v3734_v49 = vmul.f32 %v8005_v28, %v3682_v57  ;;  %v3321_v9 = vmul.f32 %v8098_v48, %v3269_v6  ;;  %10130 = vst [vmem:[#allocation132_spill] sm:$0xff] %v8147_v2  ;;  %v3837_v23 = vmul.f32 %v7947_v13, %v3785_v16  ;;  %v4050_v0 = vsub.f32 0.0, %v8053_v20 }
 0x30b   :  { %v8143_v37 = vpop.eup %5857  ;;  %v3423_v34 = vmul.f32 %v8083_v7, %v3371_v47  ;;  %v3166_v42 = vadd.f32 -0.82215226, %v3114_v1  ;;  %v3580_v10 = vadd.f32 -0.18628806, %v3528_v33  ;;  %5865 = vrcp.f32 %v2961_v45 }
 0x30c   :  { %10129 = vst [vmem:[#allocation131_spill] sm:$0xff] %v8143_v37  ;;  %v3786_v32 = vadd.f32 0.37409195, %v3734_v49  ;;  %v3373_v59 = vadd.f32 -1.135204, %v3321_v9  ;;  %v8152_v31 = vpop.eup %5859  ;;  %v8159_v16 = vadd.f32 %v7542_v21, %v7030_v14  ;;  %v8163_v49 = vmul.f32 0.5, %v8040_v52 }
 0x30d   :  { %v3475_v57 = vadd.f32 0.27886808, %v3423_v34  ;;  %v3218_v56 = vmul.f32 %v8131_v62, %v3166_v42  ;;  %v3116_v63 = vmul.f32 0.17087276, %v8143_v37  ;;  %10131 = vst [vmem:[#allocation133_spill] sm:$0xff] %v8152_v31  ;;  %v3632_v41 = vmul.f32 %v8057_v25, %v3580_v10 }
 0x30e   :  { %v3425_v6 = vmul.f32 %v8098_v48, %v3373_v59  ;;  %10132 = vst [vmem:[#allocation134_spill] sm:$0xff] %v8163_v49  ;;  %v3889_v45 = vadd.f32 1.0000237, %v3837_v23  ;;  %v3838_v33 = vmul.f32 %v8005_v28, %v3786_v32  ;;  %v3115_v21 = vmul.f32 0.17087276, %v8152_v31  ;;  %v8177_v23 = vpop.eup %5861 }
 0x30f   :  { %v3527_v9 = vmul.f32 %v8083_v7, %v3475_v57  ;;  %v3270_v47 = vadd.f32 1.4885159, %v3218_v56  ;;  %v3168_v1 = vadd.f32 -0.82215226, %v3116_v63  ;;  %v3684_v34 = vadd.f32 0.09678418, %v3632_v41 }
 0x310   :  { %v3477_v42 = vadd.f32 0.27886808, %v3425_v6  ;;  %v8172_v56 = vmul.f32 %v4050_v0, %v8053_v20  ;;  %v8175_v52 = vmul.f32 0.70710677, %v8159_v16  ;;  %10134 = vst [vmem:[#allocation136_spill] sm:$0xff] %v8177_v23 }
 0x311   :  { %v3579_v10 = vadd.f32 -0.18628806, %v3527_v9  ;;  %v3322_v59 = vmul.f32 %v8131_v62, %v3270_v47  ;;  %v3220_v2 = vmul.f32 %v8143_v37, %v3168_v1  ;;  %v3736_v50 = vmul.f32 %v8057_v25, %v3684_v34 }
 0x312   :  { %v3529_v57 = vmul.f32 %v8098_v48, %v3477_v42  ;;  %10133 = vst [vmem:[#allocation135_spill] sm:$0xff] %v8175_v52  ;;  %v3167_v6 = vadd.f32 -0.82215226, %v3115_v21  ;;  %v3941_v9 = vmul.f32 %v7947_v13, %v3889_v45  ;;  %v3890_v47 = vadd.f32 1.0000237, %v3838_v33  ;;  %v8181_v49 = vpop.eup %5863 }
 0x313   :  { %v3631_v32 = vmul.f32 %v8083_v7, %v3579_v10  ;;  %v3374_v63 = vadd.f32 -1.135204, %v3322_v59  ;;  %v3272_v41 = vadd.f32 1.4885159, %v3220_v2  ;;  %v3788_v1 = vadd.f32 0.37409195, %v3736_v50 }
 0x314   :  { %v3581_v34 = vadd.f32 -0.18628806, %v3529_v57  ;;  %10135 = vst [vmem:[#allocation137_spill] sm:$0xff] %v8181_v49  ;;  %v3219_v12 = vmul.f32 %v8152_v31, %v3167_v6  ;;  %v4052_v10 = vsub.f32 0.0, %v8071_v5  ;;  %v4051_v2 = vsub.f32 0.0, %v8081_v29 }
 0x315   :  { %v3683_v42 = vadd.f32 0.09678418, %v3631_v32  ;;  %v3426_v20 = vmul.f32 %v8131_v62, %v3374_v63  ;;  %v3324_v0 = vmul.f32 %v8143_v37, %v3272_v41  ;;  %v8190_v45 = vand.u32 2147483647, %v8175_v52  ;;  %v8192_v50 = vpop.eup %5865 }
 0x316   :  { %v3633_v23 = vmul.f32 %v8098_v48, %v3581_v34  ;;  %10136 = vst [vmem:[#allocation138_spill] sm:$0xff] %v8192_v50  ;;  %v3271_v57 = vadd.f32 1.4885159, %v3219_v12  ;;  %v3993_v32 = vadd.f32 -1.2655122, %v3941_v9  ;;  %v3942_v63 = vmul.f32 %v8005_v28, %v3890_v47 }
 0x317   :  { %v3735_v33 = vmul.f32 %v8083_v7, %v3683_v42  ;;  %v3478_v59 = vadd.f32 0.27886808, %v3426_v20  ;;  %v3376_v21 = vadd.f32 -1.135204, %v3324_v0  ;;  %v3840_v41 = vmul.f32 %v8057_v25, %v3788_v1 }
 0x318   :  { %v3685_v6 = vadd.f32 0.09678418, %v3633_v23  ;;  %v3323_v52 = vmul.f32 %v8152_v31, %v3271_v57  ;;  %v8202_v42 = vmul.f32 0.5, %v8092_v26  ;;  %v3117_v12 = vmul.f32 0.17087276, %v8192_v50 }
 0x319   :  { %v3787_v34 = vadd.f32 0.37409195, %v3735_v33  ;;  %v3530_v13 = vmul.f32 %v8131_v62, %v3478_v59  ;;  %v3428_v49 = vmul.f32 %v8143_v37, %v3376_v21  ;;  %v2910_v9 = vmul.f32 0.5, %v8190_v45 }
 0x31a   :  { %v3737_v19 = vmul.f32 %v8098_v48, %v3685_v6  ;;  %10137 = vst [vmem:[#allocation139_spill] sm:$0xff] %v8202_v42  ;;  %v3375_v20 = vadd.f32 -1.135204, %v3323_v52  ;;  %v4149_v0 = vadd.f32 %v7989_v44, %v3993_v32  ;;  %v3892_v33 = vadd.f32 1.0000237, %v3840_v41 }
 0x31b   :  { %v3839_v47 = vmul.f32 %v8083_v7, %v3787_v34  ;;  %v3582_v1 = vadd.f32 -0.18628806, %v3530_v13  ;;  %v3480_v23 = vadd.f32 0.27886808, %v3428_v49  ;;  %v3169_v21 = vadd.f32 -0.82215226, %v3117_v12 }
 0x31c   :  { %v3789_v59 = vadd.f32 0.37409195, %v3737_v19  ;;  %v3994_v57 = vadd.f32 -1.2655122, %v3942_v63  ;;  %v3427_v42 = vmul.f32 %v8152_v31, %v3375_v20  ;;  %v2962_v13 = vadd.f32 1.0, %v2910_v9 }
 0x31d   :  { %v3634_v6 = vmul.f32 %v8131_v62, %v3582_v1  ;;  %v3532_v26 = vmul.f32 %v8143_v37, %v3480_v23  ;;  %v3891_v28 = vadd.f32 1.0000237, %v3839_v47  ;;  %v3221_v34 = vmul.f32 %v8192_v50, %v3169_v21 }
 0x31e   :  { %v3841_v54 = vmul.f32 %v8098_v48, %v3789_v59  ;;  %v8214_v44 = vmul.f32 %v4052_v10, %v8071_v5  ;;  %v3479_v19 = vadd.f32 0.27886808, %v3427_v42  ;;  %v3944_v32 = vmul.f32 %v8057_v25, %v3892_v33 }
 0x31f   :  { %v3686_v49 = vadd.f32 0.09678418, %v3634_v6  ;;  %v3584_v52 = vadd.f32 -0.18628806, %v3532_v26  ;;  %v3273_v63 = vadd.f32 1.4885159, %v3221_v34  ;;  %5867 = vrcp.f32 %v2962_v13 }
 0x320   :  { %v4053_v41 = vsub.f32 0.0, %v8117_v38  ;;  %v3893_v12 = vadd.f32 1.0000237, %v3841_v54  ;;  %v3531_v23 = vmul.f32 %v8152_v31, %v3479_v19  ;;  %v4228_v9 = vmul.f32 1.442695, %v4149_v0 }
 0x321   :  { %v3738_v47 = vmul.f32 %v8131_v62, %v3686_v49  ;;  %v3636_v1 = vmul.f32 %v8143_v37, %v3584_v52  ;;  %v4150_v20 = vadd.f32 %v8047_v53, %v3994_v57  ;;  %v3325_v5 = vmul.f32 %v8192_v50, %v3273_v63 }
 0x322   :  { %v5467_v10 = vadd.f32 %v7644_v60, %v7032_v36  ;;  %v3943_v42 = vmul.f32 %v8083_v7, %v3891_v28  ;;  %v3583_v21 = vadd.f32 -0.18628806, %v3531_v23  ;;  %v3996_v54 = vadd.f32 -1.2655122, %v3944_v32 }
 0x323   :  { %v3790_v33 = vadd.f32 0.37409195, %v3738_v47  ;;  %v3688_v59 = vadd.f32 0.09678418, %v3636_v1  ;;  %v8227_v6 = vmul.f32 %v4051_v2, %v8081_v29  ;;  %v3377_v26 = vadd.f32 -1.135204, %v3325_v5 }
 0x324   :  { %v8230_v34 = vmul.f32 %v4053_v41, %v8117_v38  ;;  %v3945_v53 = vmul.f32 %v8098_v48, %v3893_v12  ;;  %v3635_v60 = vmul.f32 %v8152_v31, %v3583_v21  ;;  %v4230_v28 = vmul.f32 1.442695, %v4150_v20 }
 0x325   :  { %v3842_v0 = vmul.f32 %v8131_v62, %v3790_v33  ;;  %v3740_v57 = vmul.f32 %v8143_v37, %v3688_v59  ;;  %v3429_v13 = vmul.f32 %v8192_v50, %v3377_v26  ;;  %v8238_v49 = vmul.f32 0.5, %v8159_v16 }
 0x326   :  { %v8240_v29 = vmul.f32 0.70710677, %v5467_v10  ;;  %5869 = vpow2.f32 %v4228_v9  ;;  %v3995_v2 = vadd.f32 -1.2655122, %v3943_v42  ;;  %v3687_v52 = vadd.f32 0.09678418, %v3635_v60 }
 0x327   :  { %10138 = vst [vmem:[#allocation140_spill] sm:$0xff] %v8238_v49  ;;  %v3792_v38 = vadd.f32 0.37409195, %v3740_v57  ;;  %v3894_v19 = vadd.f32 1.0000237, %v3842_v0  ;;  %v8245_v41 = vadd.f32 %v7669_v15, %v7034_v55  ;;  %v4152_v12 = vadd.f32 %v8095_v22, %v3996_v54 }
 0x328   :  { %10139 = vst [vmem:[#allocation141_spill] sm:$0xff] %v8240_v29  ;;  %v3481_v32 = vadd.f32 0.27886808, %v3429_v13  ;;  %v2860_v63 = vand.u32 2147483647, %v8240_v29  ;;  %v3739_v1 = vmul.f32 %v8152_v31, %v3687_v52  ;;  %v8255_v5 = vadd.f32 %v7701_v24, %v7036_v3 }
 0x329   :  { %v3997_v47 = vadd.f32 -1.2655122, %v3945_v53  ;;  %v3844_v16 = vmul.f32 %v8143_v37, %v3792_v38  ;;  %v8250_v23 = vpop.eup %5867  ;;  %v8259_v15 = vadd.f32 %v7741_v11, %v7030_v14  ;;  %5871 = vpow2.f32 %v4230_v28  ;;  %v10142_v38 = vld [vmem:[#allocation88_spill] sm:$0xff] }
 0x32a   :  { %10140 = vst [vmem:[#allocation142_spill] sm:$0xff] %v8250_v23  ;;  %v3533_v9 = vmul.f32 %v8192_v50, %v3481_v32  ;;  %v2912_v20 = vmul.f32 0.5, %v2860_v63  ;;  %v4151_v22 = vadd.f32 %v8134_v51, %v3995_v2  ;;  %v3791_v33 = vadd.f32 0.37409195, %v3739_v1 }
 0x32b   :  { %v3896_v42 = vadd.f32 1.0000237, %v3844_v16  ;;  %v3946_v59 = vmul.f32 %v8131_v62, %v3894_v19  ;;  %v3118_v54 = vmul.f32 0.17087276, %v8250_v23  ;;  %v4234_v53 = vmul.f32 1.442695, %v4152_v12 }
 0x32c   :  { %v3585_v21 = vadd.f32 -0.18628806, %v3533_v9  ;;  %v2964_v26 = vadd.f32 1.0, %v2912_v20  ;;  %v4153_v0 = vadd.f32 %v8137_v40, %v3997_v47  ;;  %v3843_v24 = vmul.f32 %v8152_v31, %v3791_v33 }
 0x32d   :  { %v4054_v57 = vsub.f32 0.0, %v8190_v45  ;;  %v3170_v60 = vadd.f32 -0.82215226, %v3118_v54  ;;  %v8269_v51 = vmul.f32 0.70710677, %v8245_v41  ;;  %v3948_v13 = vmul.f32 %v8143_v37, %v3896_v42 }
 0x32e   :  { %v3637_v11 = vmul.f32 %v8192_v50, %v3585_v21  ;;  %5873 = vrcp.f32 %v2964_v26  ;;  %v4232_v28 = vmul.f32 1.442695, %v4151_v22  ;;  %v3895_v2 = vadd.f32 1.0000237, %v3843_v24 }
 0x32f   :  { %10141 = vst [vmem:[#allocation143_spill] sm:$0xff] %v8269_v51  ;;  %v8274_v52 = vadd.f32 %v10142_v38, %v7032_v36  ;;  %v3998_v40 = vadd.f32 -1.2655122, %v3946_v59  ;;  %v3222_v32 = vmul.f32 %v8250_v23, %v3170_v60  ;;  %v2859_v12 = vand.u32 2147483647, %v8269_v51  ;;  %v10146_v60 = vld [vmem:[#allocation95_spill] sm:$0xff] }
 0x330   :  { %v3689_v19 = vadd.f32 0.09678418, %v3637_v11  ;;  %v8278_v47 = vpop.eup %5869  ;;  %5875 = vpow2.f32 %v4234_v53  ;;  %v4236_v16 = vmul.f32 1.442695, %v4153_v0  ;;  %v8281_v1 = vmul.f32 %v4054_v57, %v8190_v45  ;;  %v10145_v57 = vld [vmem:[#allocation89_spill] sm:$0xff] }
 0x331   :  { %v8283_v9 = vmul.f32 0.5, %v5467_v10  ;;  %v3947_v20 = vmul.f32 %v8152_v31, %v3895_v2  ;;  %v3274_v42 = vadd.f32 1.4885159, %v3222_v32  ;;  %v2911_v33 = vmul.f32 0.5, %v2859_v12 }
 0x332   :  { %v3741_v22 = vmul.f32 %v8192_v50, %v3689_v19  ;;  %5877 = vpow2.f32 %v4232_v28  ;;  %v4000_v59 = vadd.f32 -1.2655122, %v3948_v13  ;;  %v4056_v21 = vsub.f32 0.0, %v2860_v63 }
 0x333   :  { %10143 = vst [vmem:[#allocation88_spill] sm:$0xff] %v8283_v9  ;;  %v8288_v54 = vmul.f32 0.70710677, %v8255_v5  ;;  %v4154_v26 = vadd.f32 %v8172_v56, %v3998_v40  ;;  %v3326_v45 = vmul.f32 %v8250_v23, %v3274_v42  ;;  %v2963_v0 = vadd.f32 1.0, %v2911_v33  ;;  %v8292_v10 = vpop.eup %5871 }
 0x334   :  { %v3793_v53 = vadd.f32 0.37409195, %v3741_v22  ;;  %5879 = vpow2.f32 %v4236_v16  ;;  %v8299_v11 = vadd.f32 %v10145_v57, %v7034_v55  ;;  %v8303_v28 = vadd.f32 %v10146_v60, %v7036_v3 }
 0x335   :  { %10144 = vst [vmem:[#allocation144_spill] sm:$0xff] %v8288_v54  ;;  %v8295_v24 = vand.u32 2147483647, %v8288_v54  ;;  %v3999_v13 = vadd.f32 -1.2655122, %v3947_v20  ;;  %5881 = vrcp.f32 %v2963_v0  ;;  %v4156_v38 = vadd.f32 %v8214_v44, %v4000_v59  ;;  %v10151_v59 = vld [vmem:[#allocation99_spill] sm:$0xff] }
 0x336   :  { %v3845_v56 = vmul.f32 %v8192_v50, %v3793_v53  ;;  %v3378_v2 = vadd.f32 -1.135204, %v3326_v45  ;;  %v8307_v40 = vmul.f32 %v4056_v21, %v2860_v63  ;;  %v8311_v32 = vmul.f32 0.70710677, %v8259_v15 }
 0x337   :  { %v2913_v19 = vmul.f32 0.5, %v8295_v24  ;;  %v4238_v22 = vmul.f32 1.442695, %v4154_v26  ;;  %v8317_v20 = vmul.f32 0.70710677, %v8274_v52  ;;  %v8321_v44 = vmul.f32 0.5, %v8245_v41 }
 0x338   :  { %10147 = vst [vmem:[#allocation89_spill] sm:$0xff] %v8311_v32  ;;  %v8313_v16 = vpop.eup %5873  ;;  %v3897_v42 = vadd.f32 1.0000237, %v3845_v56  ;;  %v3430_v33 = vmul.f32 %v8250_v23, %v3378_v2  ;;  %v8325_v21 = vadd.f32 %v10151_v59, %v7030_v14  ;;  %v4155_v45 = vadd.f32 %v8227_v6, %v3999_v13 }
 0x339   :  { %10148 = vst [vmem:[#allocation95_spill] sm:$0xff] %v8313_v16  ;;  %10149 = vst [vmem:[#allocation145_spill] sm:$0xff] %v8317_v20  ;;  %v3120_v53 = vmul.f32 0.17087276, %v8313_v16  ;;  %v2965_v63 = vadd.f32 1.0, %v2913_v19  ;;  %v4055_v26 = vsub.f32 0.0, %v2859_v12 }
 0x33a   :  { %10150 = vst [vmem:[#allocation146_spill] sm:$0xff] %v8321_v44  ;;  %v3482_v0 = vadd.f32 0.27886808, %v3430_v33  ;;  %v2862_v57 = vand.u32 2147483647, %v8311_v32  ;;  %v8329_v60 = vpop.eup %5875  ;;  %v3949_v41 = vmul.f32 %v8192_v50, %v3897_v42  ;;  %v8340_v13 = vmul.f32 0.5, %v8255_v5 }
 0x33b   :  { %10152 = vst [vmem:[#allocation99_spill] sm:$0xff] %v8329_v60  ;;  %v4242_v56 = vmul.f32 1.442695, %v4156_v38  ;;  %v3172_v2 = vadd.f32 -0.82215226, %v3120_v53  ;;  %5883 = vrcp.f32 %v2965_v63  ;;  %v10154_v33 = vld [vmem:[#allocation102_spill] sm:$0xff]  ;;  %v8347_v44 = vmul.f32 %v4055_v26, %v2859_v12 }
 0x33c   :  { %v8332_v9 = vand.u32 2147483647, %v8317_v20  ;;  %5885 = vpow2.f32 %v4238_v22  ;;  %v3534_v19 = vmul.f32 %v8250_v23, %v3482_v0  ;;  %v2914_v59 = vmul.f32 0.5, %v2862_v57  ;;  %v8336_v49 = vpop.eup %5877  ;;  %10153 = vst [vmem:[#allocation147_spill] sm:$0xff] %v8340_v13 }
 0x33d   :  { %v3224_v6 = vmul.f32 %v8313_v16, %v3172_v2  ;;  %v8345_v53 = vadd.f32 %v10154_v33, %v7032_v36  ;;  %v4240_v63 = vmul.f32 1.442695, %v4155_v45  ;;  %5887 = vpow2.f32 %v4242_v56 }
 0x33e   :  { %v2916_v38 = vmul.f32 0.5, %v8332_v9  ;;  %v3586_v22 = vadd.f32 -0.18628806, %v3534_v19  ;;  %v2966_v42 = vadd.f32 1.0, %v2914_v59  ;;  %v8349_v0 = vpop.eup %5879  ;;  %v8352_v2 = vmul.f32 0.70710677, %v8299_v11 }
 0x33f   :  { %v3276_v20 = vadd.f32 1.4885159, %v3224_v6  ;;  %v8354_v5 = vpop.eup %5881  ;;  %v4001_v13 = vadd.f32 -1.2655122, %v3949_v41  ;;  %v4057_v33 = vsub.f32 0.0, %v8295_v24  ;;  %v8362_v19 = vmul.f32 0.5, %v8259_v15 }
 0x340   :  { %v2968_v32 = vadd.f32 1.0, %v2916_v38  ;;  %10155 = vst [vmem:[#allocation102_spill] sm:$0xff] %v8352_v2  ;;  %v3638_v29 = vmul.f32 %v8250_v23, %v3586_v22  ;;  %5889 = vrcp.f32 %v2966_v42  ;;  %v3119_v45 = vmul.f32 0.17087276, %v8354_v5 }
 0x341   :  { %v3328_v12 = vmul.f32 %v8313_v16, %v3276_v20  ;;  %v2863_v26 = vand.u32 2147483647, %v8352_v2  ;;  %10156 = vst [vmem:[#allocation148_spill] sm:$0xff] %v8362_v19  ;;  %v8365_v59 = vmul.f32 0.5, %v8274_v52  ;;  %v8368_v41 = vmul.f32 0.70710677, %v8303_v28 }
 0x342   :  { %5891 = vrcp.f32 %v2968_v32  ;;  %v3690_v56 = vadd.f32 0.09678418, %v3638_v29  ;;  %v3171_v38 = vadd.f32 -0.82215226, %v3119_v45  ;;  %v4157_v20 = vadd.f32 %v8230_v34, %v4001_v13 }
 0x343   :  { %10157 = vst [vmem:[#allocation149_spill] sm:$0xff] %v8365_v59  ;;  %10158 = vst [vmem:[#allocation150_spill] sm:$0xff] %v8368_v41  ;;  %5893 = vpow2.f32 %v4240_v63  ;;  %v3380_v6 = vadd.f32 -1.135204, %v3328_v12  ;;  %v2915_v22 = vmul.f32 0.5, %v2863_v26  ;;  %v8372_v32 = vmul.f32 %v4057_v33, %v8295_v24 }
 0x344   :  { %v4058_v42 = vsub.f32 0.0, %v2862_v57  ;;  %v8375_v29 = vand.u32 2147483647, %v8368_v41  ;;  %v3223_v59 = vmul.f32 %v8354_v5, %v3171_v38  ;;  %v4060_v63 = vsub.f32 0.0, %v8332_v9 }
 0x345   :  { %v8377_v15 = vpop.eup %5883  ;;  %v3432_v52 = vmul.f32 %v8313_v16, %v3380_v6  ;;  %v2967_v12 = vadd.f32 1.0, %v2915_v22  ;;  %v3742_v34 = vmul.f32 %v8250_v23, %v3690_v56  ;;  %v8387_v13 = vmul.f32 0.5, %v8299_v11 }
 0x346   :  { %v8382_v45 = vpop.eup %5885  ;;  %v3121_v24 = vmul.f32 0.17087276, %v8377_v15  ;;  %v2917_v33 = vmul.f32 0.5, %v8375_v29  ;;  %v3275_v41 = vadd.f32 1.4885159, %v3223_v59  ;;  %v8393_v22 = vmul.f32 %v4058_v42, %v2862_v57 }
 0x347   :  { %10159 = vst [vmem:[#allocation151_spill] sm:$0xff] %v8382_v45  ;;  %10160 = vst [vmem:[#allocation152_spill] sm:$0xff] %v8387_v13  ;;  %v3484_v19 = vadd.f32 0.27886808, %v3432_v52  ;;  %5895 = vrcp.f32 %v2967_v12  ;;  %v8391_v6 = vmul.f32 0.70710677, %v8325_v21  ;;  %v8395_v50 = vpop.eup %5887 }
 0x348   :  { %v4244_v38 = vmul.f32 1.442695, %v4157_v20  ;;  %v3173_v2 = vadd.f32 -0.82215226, %v3121_v24  ;;  %v2969_v54 = vadd.f32 1.0, %v2917_v33  ;;  %10162 = vst [vmem:[#allocation154_spill] sm:$0xff] %v8395_v50  ;;  %v3327_v11 = vmul.f32 %v8354_v5, %v3275_v41 }
 0x349   :  { %10161 = vst [vmem:[#allocation153_spill] sm:$0xff] %v8391_v6  ;;  %v3536_v56 = vmul.f32 %v8313_v16, %v3484_v19  ;;  %v8400_v13 = vmul.f32 0.5, %v8303_v28  ;;  %v8403_v59 = vand.u32 2147483647, %v8391_v6  ;;  %v3794_v12 = vadd.f32 0.37409195, %v3742_v34 }
 0x34a   :  { %v8405_v52 = vpop.eup %5889  ;;  %v3225_v20 = vmul.f32 %v8377_v15, %v3173_v2  ;;  %v4059_v57 = vsub.f32 0.0, %v2863_v26  ;;  %5897 = vrcp.f32 %v2969_v54  ;;  %v3379_v33 = vadd.f32 -1.135204, %v3327_v11 }
 0x34b   :  { %10163 = vst [vmem:[#allocation155_spill] sm:$0xff] %v8400_v13  ;;  %v3588_v24 = vadd.f32 -0.18628806, %v3536_v56  ;;  %v3122_v19 = vmul.f32 0.17087276, %v8405_v52  ;;  %v8412_v41 = vmul.f32 %v4060_v63, %v8332_v9  ;;  %5899 = vpow2.f32 %v4244_v38 }
 0x34c   :  { %v8408_v42 = vpop.eup %5891  ;;  %v3277_v28 = vadd.f32 1.4885159, %v3225_v20  ;;  %v2918_v6 = vmul.f32 0.5, %v8403_v59  ;;  %v3431_v54 = vmul.f32 %v8354_v5, %v3379_v33  ;;  %v8421_v56 = vmul.f32 0.5, %v8325_v21 }
 0x34d   :  { %v3124_v13 = vmul.f32 0.17087276, %v8408_v42  ;;  %v8416_v34 = vpop.eup %5893  ;;  %v3640_v2 = vmul.f32 %v8313_v16, %v3588_v24  ;;  %v3174_v50 = vadd.f32 -0.82215226, %v3122_v19  ;;  %v4061_v63 = vsub.f32 0.0, %v8375_v29 }
 0x34e   :  { %10164 = vst [vmem:[#allocation156_spill] sm:$0xff] %v8416_v34  ;;  %10165 = vst [vmem:[#allocation157_spill] sm:$0xff] %v8421_v56  ;;  %v3329_v11 = vmul.f32 %v8377_v15, %v3277_v28  ;;  %v2970_v38 = vadd.f32 1.0, %v2918_v6  ;;  %v3483_v37 = vadd.f32 0.27886808, %v3431_v54  ;;  %v8426_v51 = vmul.f32 %v4059_v57, %v2863_v26 }
 0x34f   :  { %v3176_v9 = vadd.f32 -0.82215226, %v3124_v13  ;;  %v3692_v20 = vadd.f32 0.09678418, %v3640_v2  ;;  %v3226_v31 = vmul.f32 %v8405_v52, %v3174_v50  ;;  %v3846_v24 = vmul.f32 %v8250_v23, %v3794_v12 }
 0x350   :  { %v3381_v34 = vadd.f32 -1.135204, %v3329_v11  ;;  %5901 = vrcp.f32 %v2970_v38  ;;  %v3535_v13 = vmul.f32 %v8354_v5, %v3483_v37  ;;  %v8435_v6 = vmul.f32 0.70710677, %v8345_v53 }
 0x351   :  { %v3228_v33 = vmul.f32 %v8408_v42, %v3176_v9  ;;  %v8430_v21 = vpop.eup %5895  ;;  %v3744_v19 = vmul.f32 %v8313_v16, %v3692_v20  ;;  %v3278_v28 = vadd.f32 1.4885159, %v3226_v31  ;;  %v8440_v12 = vmul.f32 %v4061_v63, %v8375_v29 }
 0x352   :  { %10166 = vst [vmem:[#allocation158_spill] sm:$0xff] %v8435_v6  ;;  %v3433_v50 = vmul.f32 %v8377_v15, %v3381_v34  ;;  %v3123_v57 = vmul.f32 0.17087276, %v8430_v21  ;;  %v3587_v54 = vadd.f32 -0.18628806, %v3535_v13 }
 0x353   :  { %v3280_v26 = vadd.f32 1.4885159, %v3228_v33  ;;  %v3796_v2 = vadd.f32 0.37409195, %v3744_v19  ;;  %v3330_v11 = vmul.f32 %v8405_v52, %v3278_v28  ;;  %v8444_v9 = vand.u32 2147483647, %v8435_v6 }
 0x354   :  { %v8446_v37 = vpop.eup %5897  ;;  %v3898_v31 = vadd.f32 1.0000237, %v3846_v24  ;;  %v3485_v38 = vadd.f32 0.27886808, %v3433_v50  ;;  %v3175_v34 = vadd.f32 -0.82215226, %v3123_v57  ;;  %v3639_v56 = vmul.f32 %v8354_v5, %v3587_v54 }
 0x355   :  { %10167 = vst [vmem:[#allocation159_spill] sm:$0xff] %v8446_v37  ;;  %v3332_v20 = vmul.f32 %v8408_v42, %v3280_v26  ;;  %v3848_v33 = vmul.f32 %v8313_v16, %v3796_v2  ;;  %v3382_v29 = vadd.f32 -1.135204, %v3330_v11  ;;  %v3125_v63 = vmul.f32 0.17087276, %v8446_v37  ;;  %v8452_v19 = vpop.eup %5899 }
 0x356   :  { %10168 = vst [vmem:[#allocation160_spill] sm:$0xff] %v8452_v19  ;;  %v3537_v13 = vmul.f32 %v8377_v15, %v3485_v38  ;;  %v3227_v6 = vmul.f32 %v8430_v21, %v3175_v34  ;;  %v2920_v24 = vmul.f32 0.5, %v8444_v9  ;;  %v3691_v50 = vadd.f32 0.09678418, %v3639_v56 }
 0x357   :  { %v3384_v28 = vadd.f32 -1.135204, %v3332_v20  ;;  %v3434_v26 = vmul.f32 %v8405_v52, %v3382_v29  ;;  %v3177_v57 = vadd.f32 -0.82215226, %v3125_v63  ;;  %v8459_v2 = vmul.f32 0.5, %v8345_v53 }
 0x358   :  { %v3589_v54 = vadd.f32 -0.18628806, %v3537_v13  ;;  %v3279_v45 = vadd.f32 1.4885159, %v3227_v6  ;;  %v2972_v62 = vadd.f32 1.0, %v2920_v24  ;;  %v3743_v38 = vmul.f32 %v8354_v5, %v3691_v50 }
 0x359   :  { %10169 = vst [vmem:[#allocation161_spill] sm:$0xff] %v8459_v2  ;;  %v3436_v11 = vmul.f32 %v8408_v42, %v3384_v28  ;;  %v3900_v19 = vadd.f32 1.0000237, %v3848_v33  ;;  %v3486_v20 = vadd.f32 0.27886808, %v3434_v26  ;;  %v3229_v34 = vmul.f32 %v8446_v37, %v3177_v57 }
 0x35a   :  { %v8464_v60 = vpop.eup %5901  ;;  %v3641_v56 = vmul.f32 %v8377_v15, %v3589_v54  ;;  %v3331_v63 = vmul.f32 %v8430_v21, %v3279_v45  ;;  %5903 = vrcp.f32 %v2972_v62  ;;  %v3950_v53 = vmul.f32 %v8250_v23, %v3898_v31 }
 0x35b   :  { %10170 = vst [vmem:[#allocation162_spill] sm:$0xff] %v8464_v60  ;;  %v3488_v29 = vadd.f32 0.27886808, %v3436_v11  ;;  %v3795_v13 = vadd.f32 0.37409195, %v3743_v38  ;;  %v3538_v6 = vmul.f32 %v8405_v52, %v3486_v20  ;;  %v3952_v57 = vmul.f32 %v8313_v16, %v3900_v19 }
 0x35c   :  { %v3281_v28 = vadd.f32 1.4885159, %v3229_v34  ;;  %v3693_v33 = vadd.f32 0.09678418, %v3641_v56  ;;  %v3383_v50 = vadd.f32 -1.135204, %v3331_v63 }
 0x35d   :  { %v3540_v24 = vmul.f32 %v8408_v42, %v3488_v29  ;;  %v3126_v26 = vmul.f32 0.17087276, %v8464_v60  ;;  %v3847_v54 = vmul.f32 %v8354_v5, %v3795_v13  ;;  %v3590_v11 = vadd.f32 -0.18628806, %v3538_v6 }
 0x35e   :  { %v3333_v45 = vmul.f32 %v8446_v37, %v3281_v28  ;;  %v3745_v62 = vmul.f32 %v8377_v15, %v3693_v33  ;;  %v3435_v38 = vmul.f32 %v8430_v21, %v3383_v50  ;;  %v4002_v34 = vadd.f32 -1.2655122, %v3950_v53 }
 0x35f   :  { %v3592_v31 = vadd.f32 -0.18628806, %v3540_v24  ;;  %v3178_v20 = vadd.f32 -0.82215226, %v3126_v26  ;;  %v3899_v56 = vadd.f32 1.0000237, %v3847_v54  ;;  %v3642_v29 = vmul.f32 %v8405_v52, %v3590_v11 }
 0x360   :  { %v3385_v63 = vadd.f32 -1.135204, %v3333_v45  ;;  %v3797_v2 = vadd.f32 0.37409195, %v3745_v62  ;;  %v3487_v19 = vadd.f32 0.27886808, %v3435_v38  ;;  %v4158_v54 = vadd.f32 %v8281_v1, %v4002_v34 }
 0x361   :  { %v3644_v23 = vmul.f32 %v8408_v42, %v3592_v31  ;;  %v3230_v13 = vmul.f32 %v8464_v60, %v3178_v20  ;;  %v4004_v6 = vadd.f32 -1.2655122, %v3952_v57  ;;  %v3951_v28 = vmul.f32 %v8354_v5, %v3899_v56 }
 0x362   :  { %v3694_v16 = vadd.f32 0.09678418, %v3642_v29  ;;  %v3437_v33 = vmul.f32 %v8446_v37, %v3385_v63  ;;  %v3849_v24 = vmul.f32 %v8377_v15, %v3797_v2  ;;  %v3539_v53 = vmul.f32 %v8430_v21, %v3487_v19 }
 0x363   :  { %v3696_v50 = vadd.f32 0.09678418, %v3644_v23  ;;  %v3282_v26 = vadd.f32 1.4885159, %v3230_v13  ;;  %v4062_v62 = vsub.f32 0.0, %v8403_v59  ;;  %v4160_v23 = vadd.f32 %v8307_v40, %v4004_v6 }
 0x364   :  { %v3746_v11 = vmul.f32 %v8405_v52, %v3694_v16  ;;  %v3489_v45 = vadd.f32 0.27886808, %v3437_v33  ;;  %v8487_v31 = vpop.eup %5903  ;;  %v3901_v57 = vadd.f32 1.0000237, %v3849_v24  ;;  %v3591_v20 = vadd.f32 -0.18628806, %v3539_v53 }
 0x365   :  { %10171 = vst [vmem:[#allocation163_spill] sm:$0xff] %v8487_v31  ;;  %v3748_v38 = vmul.f32 %v8408_v42, %v3696_v50  ;;  %v3334_v56 = vmul.f32 %v8464_v60, %v3282_v26  ;;  %v3128_v1 = vmul.f32 0.17087276, %v8487_v31  ;;  %v4003_v34 = vadd.f32 -1.2655122, %v3951_v28 }
 0x366   :  { %v3798_v2 = vadd.f32 0.37409195, %v3746_v11  ;;  %v3541_v29 = vmul.f32 %v8446_v37, %v3489_v45  ;;  %v3643_v63 = vmul.f32 %v8430_v21, %v3591_v20  ;;  %v3953_v13 = vmul.f32 %v8377_v15, %v3901_v57 }
 0x367   :  { %v3800_v16 = vadd.f32 0.37409195, %v3748_v38  ;;  %v3386_v19 = vadd.f32 -1.135204, %v3334_v56  ;;  %v3180_v50 = vadd.f32 -0.82215226, %v3128_v1  ;;  %v4159_v20 = vadd.f32 %v8347_v44, %v4003_v34 }
 0x368   :  { %v3850_v33 = vmul.f32 %v8405_v52, %v3798_v2  ;;  %v3593_v24 = vadd.f32 -0.18628806, %v3541_v29  ;;  %v4246_v53 = vmul.f32 1.442695, %v4158_v54  ;;  %v3695_v40 = vadd.f32 0.09678418, %v3643_v63 }
 0x369   :  { %v3852_v26 = vmul.f32 %v8408_v42, %v3800_v16  ;;  %v3438_v6 = vmul.f32 %v8464_v60, %v3386_v19  ;;  %v4250_v11 = vmul.f32 1.442695, %v4160_v23  ;;  %v3232_v38 = vmul.f32 %v8487_v31, %v3180_v50 }
 0x36a   :  { %v3902_v45 = vadd.f32 1.0000237, %v3850_v33  ;;  %v3645_v28 = vmul.f32 %v8446_v37, %v3593_v24  ;;  %v3747_v57 = vmul.f32 %v8430_v21, %v3695_v40  ;;  %v4005_v29 = vadd.f32 -1.2655122, %v3953_v13 }
 0x36b   :  { %v3904_v56 = vadd.f32 1.0000237, %v3852_v26  ;;  %v3490_v2 = vadd.f32 0.27886808, %v3438_v6  ;;  %v3284_v16 = vadd.f32 1.4885159, %v3232_v38  ;;  %v5446_v33 = vadd.f32 %v7970_v17, %v7034_v55 }
 0x36c   :  { %v3954_v54 = vmul.f32 %v8405_v52, %v3902_v45  ;;  %v3697_v1 = vadd.f32 0.09678418, %v3645_v28  ;;  %v3799_v19 = vadd.f32 0.37409195, %v3747_v57  ;;  %5905 = vpow2.f32 %v4246_v53 }
 0x36d   :  { %v3956_v63 = vmul.f32 %v8408_v42, %v3904_v56  ;;  %v3542_v23 = vmul.f32 %v8464_v60, %v3490_v2  ;;  %v3336_v34 = vmul.f32 %v8487_v31, %v3284_v16  ;;  %5907 = vpow2.f32 %v4250_v11 }
 0x36e   :  { %v4006_v24 = vadd.f32 -1.2655122, %v3954_v54  ;;  %v3749_v44 = vmul.f32 %v8446_v37, %v3697_v1  ;;  %v3851_v13 = vmul.f32 %v8430_v21, %v3799_v19  ;;  %v8512_v26 = vmul.f32 %v4062_v62, %v8403_v59 }
 0x36f   :  { %v3594_v50 = vadd.f32 -0.18628806, %v3542_v23  ;;  %v4248_v40 = vmul.f32 1.442695, %v4159_v20  ;;  %v4161_v6 = vadd.f32 %v8372_v32, %v4005_v29  ;;  %v3388_v28 = vadd.f32 -1.135204, %v3336_v34 }
 0x370   :  { %v3801_v45 = vadd.f32 0.37409195, %v3749_v44  ;;  %v4008_v38 = vadd.f32 -1.2655122, %v3956_v63  ;;  %v3903_v17 = vadd.f32 1.0000237, %v3851_v13  ;;  %v4162_v57 = vadd.f32 %v8393_v22, %v4006_v24 }
 0x371   :  { %v3646_v53 = vmul.f32 %v8464_v60, %v3594_v50  ;;  %v8516_v56 = vmul.f32 0.70710677, %v5446_v33  ;;  %v3440_v2 = vmul.f32 %v8487_v31, %v3388_v28  ;;  %v4064_v59 = vsub.f32 0.0, %v8444_v9 }
 0x372   :  { %v3853_v11 = vmul.f32 %v8446_v37, %v3801_v45  ;;  %v3955_v62 = vmul.f32 %v8430_v21, %v3903_v17  ;;  %v8526_v29 = vadd.f32 %v7998_v4, %v7036_v3  ;;  %5909 = vpow2.f32 %v4248_v40 }
 0x373   :  { %v3698_v20 = vadd.f32 0.09678418, %v3646_v53  ;;  %v2867_v32 = vand.u32 2147483647, %v8516_v56  ;;  %v4252_v54 = vmul.f32 1.442695, %v4161_v6  ;;  %v4164_v22 = vadd.f32 %v8412_v41, %v4008_v38 }
 0x374   :  { %10172 = vst [vmem:[#allocation164_spill] sm:$0xff] %v8526_v29  ;;  %v3905_v1 = vadd.f32 1.0000237, %v3853_v11  ;;  %v3492_v16 = vadd.f32 0.27886808, %v3440_v2  ;;  %v8533_v13 = vmul.f32 %v4064_v59, %v8444_v9  ;;  %v5447_v38 = vadd.f32 %v8042_v18, %v7030_v14 }
 0x375   :  { %v4007_v63 = vadd.f32 -1.2655122, %v3955_v62  ;;  %v3750_v19 = vmul.f32 %v8464_v60, %v3698_v20  ;;  %v2919_v23 = vmul.f32 0.5, %v2867_v32  ;;  %v4254_v24 = vmul.f32 1.442695, %v4162_v57 }
 0x376   :  { %v3957_v44 = vmul.f32 %v8446_v37, %v3905_v1  ;;  %v3544_v34 = vmul.f32 %v8487_v31, %v3492_v16  ;;  %v8537_v6 = vmul.f32 0.70710677, %v8526_v29  ;;  %v8539_v41 = vpop.eup %5905  ;;  %5911 = vpow2.f32 %v4252_v54  ;;  %v10187_v29 = vld [vmem:[#allocation63_spill] sm:$0xff] }
 0x377   :  { %v4163_v4 = vadd.f32 %v8426_v51, %v4007_v63  ;;  %v3802_v50 = vadd.f32 0.37409195, %v3750_v19  ;;  %v2971_v40 = vadd.f32 1.0, %v2919_v23  ;;  %v8543_v17 = vpop.eup %5907  ;;  %v4258_v53 = vmul.f32 1.442695, %v4164_v22 }
 0x378   :  { %10173 = vst [vmem:[#allocation165_spill] sm:$0xff] %v8537_v6  ;;  %v4009_v45 = vadd.f32 -1.2655122, %v3957_v44  ;;  %v3596_v28 = vadd.f32 -0.18628806, %v3544_v34  ;;  %v8549_v2 = vmul.f32 0.5, %v5446_v33  ;;  %v5473_v16 = vadd.f32 %v8055_v46, %v7032_v36 }
 0x379   :  { %v3854_v9 = vmul.f32 %v8464_v60, %v3802_v50  ;;  %5913 = vrcp.f32 %v2971_v40  ;;  %v2869_v51 = vand.u32 2147483647, %v8537_v6  ;;  %v4063_v59 = vsub.f32 0.0, %v2867_v32 }
 0x37a   :  { %v4165_v57 = vadd.f32 %v8440_v12, %v4009_v45  ;;  %v3648_v11 = vmul.f32 %v8487_v31, %v3596_v28  ;;  %10174 = vst [vmem:[#allocation166_spill] sm:$0xff] %v8549_v2  ;;  %5915 = vpow2.f32 %v4254_v24  ;;  %v4256_v62 = vmul.f32 1.442695, %v4163_v4 }
 0x37b   :  { %v3906_v20 = vadd.f32 1.0000237, %v3854_v9  ;;  %v2921_v54 = vmul.f32 0.5, %v2869_v51  ;;  %v4065_v18 = vsub.f32 0.0, %v2869_v51  ;;  %v8551_v1 = vmul.f32 0.70710677, %v5447_v38 }
 0x37c   :  { %v3700_v14 = vadd.f32 0.09678418, %v3648_v11  ;;  %5917 = vpow2.f32 %v4258_v53  ;;  %v5448_v33 = vadd.f32 %v8076_v43, %v7034_v55  ;;  %v8558_v63 = vpop.eup %5909  ;;  %v4260_v19 = vmul.f32 1.442695, %v4165_v57 }
 0x37d   :  { %v3958_v22 = vmul.f32 %v8464_v60, %v3906_v20  ;;  %v2973_v12 = vadd.f32 1.0, %v2921_v54  ;;  %v8561_v24 = vmul.f32 %v4063_v59, %v2867_v32  ;;  %v2870_v44 = vand.u32 2147483647, %v8551_v1  ;;  %v10181_v20 = vld [vmem:[#allocation8_spill] sm:$0xff] }
 0x37e   :  { %v3752_v23 = vmul.f32 %v8487_v31, %v3700_v14  ;;  %v8564_v4 = vmul.f32 0.5, %v5447_v38  ;;  %v8566_v36 = vmul.f32 0.70710677, %v5473_v16  ;;  %v8568_v50 = vmul.f32 %v4065_v18, %v2869_v51  ;;  %v10179_v51 = vld [vmem:[#allocation33_spill] sm:$0xff] }
 0x37f   :  { %v4010_v34 = vadd.f32 -1.2655122, %v3958_v22  ;;  %5919 = vrcp.f32 %v2973_v12  ;;  %v2922_v55 = vmul.f32 0.5, %v2870_v44  ;;  %v4066_v40 = vsub.f32 0.0, %v2870_v44 }
 0x380   :  { %10175 = vst [vmem:[#allocation167_spill] sm:$0xff] %v8564_v4  ;;  %10176 = vst [vmem:[#allocation168_spill] sm:$0xff] %v8566_v36  ;;  %5921 = vpow2.f32 %v4256_v62  ;;  %v3804_v46 = vadd.f32 0.37409195, %v3752_v23  ;;  %v2872_v45 = vand.u32 2147483647, %v8566_v36  ;;  %v8574_v28 = vpop.eup %5911  ;;  %v8585_v62 = vadd.f32 %v8087_v30, %v7036_v3 }
 0x381   :  { %v4166_v43 = vadd.f32 %v8512_v26, %v4010_v34  ;;  %v8572_v32 = vmul.f32 0.70710677, %v5448_v33  ;;  %5923 = vpow2.f32 %v4260_v19  ;;  %v2974_v53 = vadd.f32 1.0, %v2922_v55 }
 0x382   :  { %v3856_v38 = vmul.f32 %v8487_v31, %v3804_v46  ;;  %v8577_v9 = vmul.f32 0.5, %v5473_v16  ;;  %vm4330_vm1 = vcmp.ge.f32.partialorder %v10179_v51, 0.0  ;;  %v2924_v59 = vmul.f32 0.5, %v2872_v45  ;;  %10180 = vst [vmem:[#allocation33_spill] sm:$0xff] %v8585_v62  ;;  %v10192_v51 = vld [vmem:[#allocation23_spill] sm:$0xff] }
 0x383   :  { %10177 = vst [vmem:[#allocation169_spill] sm:$0xff] %v8572_v32  ;;  %v8579_v57 = vpop.eup %5913  ;;  %v4262_v11 = vmul.f32 1.442695, %v4166_v43  ;;  %v2871_v26 = vand.u32 2147483647, %v8572_v32  ;;  %vm4331_vm2 = vcmp.ge.f32.partialorder %v10181_v20, 0.0  ;;  %5925 = vrcp.f32 %v2974_v53 }
 0x384   :  { %10178 = vst [vmem:[#allocation170_spill] sm:$0xff] %v8577_v9  ;;  %v3908_v54 = vadd.f32 1.0000237, %v3856_v38  ;;  %v3127_v14 = vmul.f32 0.17087276, %v8579_v57  ;;  %v4068_v18 = vsub.f32 0.0, %v2872_v45  ;;  %v8589_v16 = vpop.eup %5915  ;;  %v8591_v22 = vmul.f32 %v4066_v40, %v2870_v44 }
 0x385   :  { %v2976_v12 = vadd.f32 1.0, %v2924_v59  ;;  %v8593_v19 = vmul.f32 0.5, %v5448_v33  ;;  %v2923_v23 = vmul.f32 0.5, %v2871_v26  ;;  %5927 = vpow2.f32 %v4262_v11  ;;  %v10184_v38 = vld [vmem:[#allocation10_spill] sm:$0xff]  ;;  %v10185_v53 = vld [vmem:[#allocation59_spill] sm:$0xff]  ;;  %v10188_v9 = vld [vmem:[#allocation37_spill] sm:$0xff] }
 0x386   :  { %v3960_v34 = vmul.f32 %v8487_v31, %v3908_v54  ;;  %v3179_v3 = vadd.f32 -0.82215226, %v3127_v14  ;;  %v4067_v30 = vsub.f32 0.0, %v2871_v26  ;;  %v8596_v46 = vpop.eup %5917  ;;  %v8599_v43 = vmul.f32 0.70710677, %v8585_v62  ;;  %v10186_v11 = vld [vmem:[#allocation30_spill] sm:$0xff] }
 0x387   :  { %10182 = vst [vmem:[#allocation8_spill] sm:$0xff] %v8593_v19  ;;  %5929 = vrcp.f32 %v2976_v12  ;;  %v2975_v55 = vadd.f32 1.0, %v2923_v23  ;;  %v4278_v44 = vmul.f32 %v10185_v53, %v10184_v38  ;;  %v8604_v59 = vmul.f32 %v4068_v18, %v2872_v45 }
 0x388   :  { %10183 = vst [vmem:[#allocation171_spill] sm:$0xff] %v8599_v43  ;;  %v4012_v40 = vadd.f32 -1.2655122, %v3960_v34  ;;  %v3231_v33 = vmul.f32 %v8579_v57, %v3179_v3  ;;  %v4279_v54 = vmul.f32 %v10187_v29, %v10186_v11  ;;  %v8610_v19 = vmul.f32 %v4067_v30, %v2871_v26  ;;  %v10190_v26 = vld [vmem:[#allocation9_spill] sm:$0xff] }
 0x389   :  { %v8608_v14 = vpop.eup %5919  ;;  %5931 = vrcp.f32 %v2975_v55  ;;  %v2873_v12 = vand.u32 2147483647, %v8599_v43  ;;  %v4382_v23 = vsub.f32 1.0, %v4278_v44  ;;  %vm4332_vm3 = vcmp.ge.f32.partialorder %v10188_v9, 0.0 }
 0x38a   :  { %v8613_v62 = vpop.eup %5921  ;;  %v4168_v34 = vadd.f32 %v8533_v13, %v4012_v40  ;;  %v3283_v3 = vadd.f32 1.4885159, %v3231_v33  ;;  %v3129_v45 = vmul.f32 0.17087276, %v8608_v14  ;;  %v5131_v18 = vadd.f32 -1.0, %v4278_v44 }
 0x38b   :  { %v2925_v38 = vmul.f32 0.5, %v2873_v12  ;;  %v4069_v29 = vsub.f32 0.0, %v2873_v12  ;;  %v4383_v53 = vsub.f32 1.0, %v4279_v54  ;;  %v5132_v11 = vadd.f32 -1.0, %v4279_v54  ;;  %v8618_v55 = vpop.eup %5923  ;;  %v10191_v54 = vld [vmem:[#allocation39_spill] sm:$0xff] }
 0x38c   :  { %10189 = vst [vmem:[#allocation10_spill] sm:$0xff] %v8618_v55  ;;  %vm4333_vm4 = vcmp.ge.f32.partialorder %v10190_v26, 0.0  ;;  %v4266_v30 = vmul.f32 1.442695, %v4168_v34  ;;  %v3335_v43 = vmul.f32 %v8579_v57, %v3283_v3  ;;  %v3181_v6 = vadd.f32 -0.82215226, %v3129_v45 }
 0x38d   :  { %v4486_v4 = vsel %vm4330_vm1, %v4382_v23, %v5131_v18  ;;  %v2977_v13 = vadd.f32 1.0, %v2925_v38  ;;  %v8624_v40 = vmul.f32 %v4069_v29, %v2873_v12  ;;  %v4487_v44 = vsel %vm4331_vm2, %v4383_v53, %v5132_v11  ;;  %v8628_v32 = vpop.eup %5925  ;;  %v10194_v12 = vld [vmem:[#allocation13_spill] sm:$0xff]  ;;  %v10203_v55 = vld [vmem:[#allocation43_spill] sm:$0xff] }
 0x38e   :  { %v4538_v33 = vadd.f32 1.0, %v4486_v4  ;;  %vm4334_vm5 = vcmp.ge.f32.partialorder %v10191_v54, 0.0  ;;  %5933 = vpow2.f32 %v4266_v30  ;;  %v3387_v2 = vadd.f32 -1.135204, %v3335_v43  ;;  %v10195_v4 = vld [vmem:[#allocation61_spill] sm:$0xff]  ;;  %v10199_v43 = vld [vmem:[#allocation14_spill] sm:$0xff] }
 0x38f   :  { %v3233_v34 = vmul.f32 %v8608_v14, %v3181_v6  ;;  %v4539_v3 = vadd.f32 1.0, %v4487_v44  ;;  %v3130_v45 = vmul.f32 0.17087276, %v8628_v32  ;;  %5935 = vrcp.f32 %v2977_v13  ;;  %v8638_v20 = vpop.eup %5927  ;;  %v10197_v53 = vld [vmem:[#allocation25_spill] sm:$0xff]  ;;  %v10200_v6 = vld [vmem:[#allocation68_spill] sm:$0xff]  ;;  %v10209_v54 = vld [vmem:[#allocation19_spill] sm:$0xff] }
 0x390   :  { %v8634_v23 = vmul.f32 %v4538_v33, %v10192_v51  ;;  %v4280_v18 = vmul.f32 %v10195_v4, %v10194_v12  ;;  %10196 = vst [vmem:[#allocation30_spill] sm:$0xff] %v8638_v20  ;;  %v3439_v38 = vmul.f32 %v8579_v57, %v3387_v2  ;;  %v4281_v30 = vmul.f32 %v10200_v6, %v10199_v43  ;;  %v10201_v12 = vld [vmem:[#allocation18_spill] sm:$0xff] }
 0x391   :  { %v3285_v29 = vadd.f32 1.4885159, %v3233_v34  ;;  %v8642_v11 = vmul.f32 %v4539_v3, %v10197_v53  ;;  %v8646_v44 = vpop.eup %5929  ;;  %v3182_v13 = vadd.f32 -0.82215226, %v3130_v45  ;;  %v10202_v4 = vld [vmem:[#allocation70_spill] sm:$0xff]  ;;  %vm4336_vm6 = vcmp.ge.f32.partialorder %v10203_v55, 0.0 }
 0x392   :  { %10193 = vst [vmem:[#allocation59_spill] sm:$0xff] %v8634_v23  ;;  %4642 = vrot.lane.b32.xlu0 %v8634_v23, %s6001_s2  ;;  %v4384_v33 = vsub.f32 1.0, %v4280_v18  ;;  %v5133_v51 = vadd.f32 -1.0, %v4280_v18  ;;  %v4282_v31 = vmul.f32 %v10202_v4, %v10201_v12  ;;  %v3491_v2 = vadd.f32 0.27886808, %v3439_v38 }
 0x393   :  { %10198 = vst [vmem:[#allocation63_spill] sm:$0xff] %v8642_v11  ;;  %v3337_v34 = vmul.f32 %v8608_v14, %v3285_v29  ;;  %v3132_v3 = vmul.f32 0.17087276, %v8646_v44  ;;  %4668 = vrot.lane.b32.xlu1 %v8642_v11, %s6001_s2  ;;  %v4385_v53 = vsub.f32 1.0, %v4281_v30  ;;  %v8656_v43 = vpop.eup %5931  ;;  %v3234_v45 = vmul.f32 %v8628_v32, %v3182_v13 }
 0x394   :  { %v4488_v6 = vsel %vm4332_vm3, %v4384_v33, %v5133_v51  ;;  %v5134_v18 = vadd.f32 -1.0, %v4281_v30  ;;  %v4386_v23 = vsub.f32 1.0, %v4282_v31  ;;  %v3543_v12 = vmul.f32 %v8579_v57, %v3491_v2  ;;  %v10204_v2 = vld [vmem:[#allocation24_spill] sm:$0xff] }
 0x395   :  { %v3389_v38 = vadd.f32 -1.135204, %v3337_v34  ;;  %v3184_v4 = vadd.f32 -0.82215226, %v3132_v3  ;;  %v3131_v29 = vmul.f32 0.17087276, %v8656_v43 }
 0x396   :  { %v3286_v36 = vadd.f32 1.4885159, %v3234_v45  ;;  %v4540_v20 = vadd.f32 1.0, %v4488_v6  ;;  %v4489_v11 = vsel %vm4333_vm4, %v4385_v53, %v5134_v18  ;;  %v5135_v60 = vadd.f32 -1.0, %v4282_v31 }
 0x397   :  { %v3595_v13 = vadd.f32 -0.18628806, %v3543_v12  ;;  %v3441_v9 = vmul.f32 %v8608_v14, %v3389_v38  ;;  %v3236_v30 = vmul.f32 %v8646_v44, %v3184_v4  ;;  %v3183_v33 = vadd.f32 -0.82215226, %v3131_v29  ;;  %v10211_v4 = vld [vmem:[#allocation46_spill] sm:$0xff] }
 0x398   :  { %v3338_v51 = vmul.f32 %v8628_v32, %v3286_v36  ;;  %v8670_v34 = vmul.f32 %v4540_v20, %v10204_v2  ;;  %v4541_v3 = vadd.f32 1.0, %v4489_v11  ;;  %v4490_v45 = vsel %vm4334_vm5, %v4386_v23, %v5135_v60  ;;  %v8674_v26 = vpop.eup %5933  ;;  %v10207_v36 = vld [vmem:[#allocation38_spill] sm:$0xff]  ;;  %v10210_v60 = vld [vmem:[#allocation71_spill] sm:$0xff] }
 0x399   :  { %10206 = vst [vmem:[#allocation9_spill] sm:$0xff] %v8674_v26  ;;  %v3647_v31 = vmul.f32 %v8579_v57, %v3595_v13  ;;  %v3493_v53 = vadd.f32 0.27886808, %v3441_v9  ;;  %v3288_v6 = vadd.f32 1.4885159, %v3236_v30  ;;  %v3235_v18 = vmul.f32 %v8656_v43, %v3183_v33  ;;  %v8678_v12 = vpop.eup %5935  ;;  %v10212_v2 = vld [vmem:[#allocation26_spill] sm:$0xff] }
 0x39a   :  { %10205 = vst [vmem:[#allocation37_spill] sm:$0xff] %v8670_v34  ;;  %v3390_v38 = vadd.f32 -1.135204, %v3338_v51  ;;  %4694 = vrot.lane.b32.xlu0 %v8670_v34, %s6001_s2  ;;  %v8683_v20 = vmul.f32 %v4541_v3, %v10207_v36  ;;  %v4542_v11 = vadd.f32 1.0, %v4490_v45  ;;  %v4284_v23 = vmul.f32 %v10210_v60, %v10209_v54  ;;  %v10215_v34 = vld [vmem:[#allocation73_spill] sm:$0xff] }
 0x39b   :  { %vm4335_vm7 = vcmp.ge.f32.partialorder %v10211_v4, 0.0  ;;  %v3699_v29 = vadd.f32 0.09678418, %v3647_v31  ;;  %v3545_v13 = vmul.f32 %v8608_v14, %v3493_v53  ;;  %v3340_v9 = vmul.f32 %v8646_v44, %v3288_v6 }
 0x39c   :  { %10208 = vst [vmem:[#allocation39_spill] sm:$0xff] %v8683_v20  ;;  %v3287_v30 = vadd.f32 1.4885159, %v3235_v18  ;;  %v3442_v33 = vmul.f32 %v8628_v32, %v3390_v38  ;;  %v3133_v51 = vmul.f32 0.17087276, %v8678_v12  ;;  %4720 = vrot.lane.b32.xlu1 %v8683_v20, %s6001_s2  ;;  %v8695_v3 = vmul.f32 %v4542_v11, %v10212_v2  ;;  %v10214_v38 = vld [vmem:[#allocation20_spill] sm:$0xff] }
 0x39d   :  { %v4388_v45 = vsub.f32 1.0, %v4284_v23  ;;  %v3751_v36 = vmul.f32 %v8579_v57, %v3699_v29  ;;  %v3597_v54 = vadd.f32 -0.18628806, %v3545_v13  ;;  %v3392_v31 = vadd.f32 -1.135204, %v3340_v9 }
 0x39e   :  { %10213 = vst [vmem:[#allocation23_spill] sm:$0xff] %v8695_v3  ;;  %v3339_v53 = vmul.f32 %v8656_v43, %v3287_v30  ;;  %v3494_v60 = vadd.f32 0.27886808, %v3442_v33  ;;  %v3185_v6 = vadd.f32 -0.82215226, %v3133_v51  ;;  %4644 = vrot.lane.b32.xlu0 %v8695_v3, %s6001_s2  ;;  %v5137_v18 = vadd.f32 -1.0, %v4284_v23 }
 0x39f   :  { %v4283_v26 = vmul.f32 %v10215_v34, %v10214_v38  ;;  %v3803_v20 = vadd.f32 0.37409195, %v3751_v36  ;;  %v3649_v11 = vmul.f32 %v8608_v14, %v3597_v54  ;;  %v3444_v2 = vmul.f32 %v8646_v44, %v3392_v31  ;;  %v10216_v31 = vld [vmem:[#allocation16_spill] sm:$0xff] }
 0x3a0   :  { %v3391_v37 = vadd.f32 -1.135204, %v3339_v53  ;;  %v3546_v29 = vmul.f32 %v8628_v32, %v3494_v60  ;;  %v3237_v13 = vmul.f32 %v8678_v12, %v3185_v6  ;;  %v4492_v9 = vsel %vm4336_vm6, %v4388_v45, %v5137_v18  ;;  %v10217_v18 = vld [vmem:[#allocation41_spill] sm:$0xff] }
 0x3a1   :  { %v4387_v30 = vsub.f32 1.0, %v4283_v26  ;;  %v3855_v33 = vmul.f32 %v8579_v57, %v3803_v20  ;;  %v3701_v23 = vadd.f32 0.09678418, %v3649_v11  ;;  %v3496_v51 = vadd.f32 0.27886808, %v3444_v2 }
 0x3a2   :  { %v3443_v34 = vmul.f32 %v8656_v43, %v3391_v37  ;;  %v3598_v36 = vadd.f32 -0.18628806, %v3546_v29  ;;  %v3289_v38 = vadd.f32 1.4885159, %v3237_v13  ;;  %v4544_v54 = vadd.f32 1.0, %v4492_v9 }
 0x3a3   :  { %v5136_v3 = vadd.f32 -1.0, %v4283_v26  ;;  %vm4338_vm8 = vcmp.ge.f32.partialorder %v10216_v31, 0.0  ;;  %v3907_v53 = vadd.f32 1.0000237, %v3855_v33  ;;  %v3753_v60 = vmul.f32 %v8608_v14, %v3701_v23  ;;  %v10229_v31 = vld [vmem:[#allocation86_spill] sm:$0xff] }
 0x3a4   :  { %v3548_v6 = vmul.f32 %v8646_v44, %v3496_v51  ;;  %v3495_v55 = vadd.f32 0.27886808, %v3443_v34  ;;  %v3650_v45 = vmul.f32 %v8628_v32, %v3598_v36  ;;  %v3341_v20 = vmul.f32 %v8678_v12, %v3289_v38  ;;  %v10219_v51 = vld [vmem:[#allocation50_spill] sm:$0xff]  ;;  %v10220_v34 = vld [vmem:[#allocation81_spill] sm:$0xff]  ;;  %v10221_v38 = vld [vmem:[#allocation48_spill] sm:$0xff] }
 0x3a5   :  { %v8717_v11 = vmul.f32 %v4544_v54, %v10217_v18  ;;  %v4491_v37 = vsel %vm4335_vm7, %v4387_v30, %v5136_v3  ;;  %v3959_v26 = vmul.f32 %v8579_v57, %v3907_v53  ;;  %v3805_v2 = vadd.f32 0.37409195, %v3753_v60 }
 0x3a6   :  { %v3600_v29 = vadd.f32 -0.18628806, %v3548_v6  ;;  %v3547_v13 = vmul.f32 %v8656_v43, %v3495_v55  ;;  %v3702_v9 = vadd.f32 0.09678418, %v3650_v45  ;;  %v3393_v33 = vadd.f32 -1.135204, %v3341_v20 }
 0x3a7   :  { %10218 = vst [vmem:[#allocation13_spill] sm:$0xff] %v8717_v11  ;;  %4696 = vrot.lane.b32.xlu1 %v8717_v11, %s6001_s2  ;;  %v4543_v23 = vadd.f32 1.0, %v4491_v37  ;;  %v4286_v36 = vmul.f32 %v10220_v34, %v10219_v51  ;;  %vm4337_vm9 = vcmp.ge.f32.partialorder %v10221_v38, 0.0  ;;  %v4011_v54 = vadd.f32 -1.2655122, %v3959_v26  ;;  %v10222_v6 = vld [vmem:[#allocation44_spill] sm:$0xff] }
 0x3a8   :  { %v3857_v4 = vmul.f32 %v8608_v14, %v3805_v2  ;;  %v3652_v3 = vmul.f32 %v8646_v44, %v3600_v29  ;;  %v3599_v30 = vadd.f32 -0.18628806, %v3547_v13  ;;  %v3754_v53 = vmul.f32 %v8628_v32, %v3702_v9  ;;  %v10224_v29 = vld [vmem:[#allocation21_spill] sm:$0xff]  ;;  %v10225_v13 = vld [vmem:[#allocation74_spill] sm:$0xff]  ;;  %v10233_v38 = vld [vmem:[#allocation47_spill] sm:$0xff] }
 0x3a9   :  { %v3445_v60 = vmul.f32 %v8678_v12, %v3393_v33  ;;  %v8733_v55 = vmul.f32 %v4543_v23, %v10222_v6  ;;  %v4390_v45 = vsub.f32 1.0, %v4286_v36  ;;  %v4167_v20 = vadd.f32 %v8561_v24, %v4011_v54  ;;  %v10226_v33 = vld [vmem:[#allocation27_spill] sm:$0xff] }
 0x3aa   :  { %v3909_v18 = vadd.f32 1.0000237, %v3857_v4  ;;  %v3704_v37 = vadd.f32 0.09678418, %v3652_v3  ;;  %v3651_v51 = vmul.f32 %v8656_v43, %v3599_v30  ;;  %v3806_v26 = vadd.f32 0.37409195, %v3754_v53 }
 0x3ab   :  { %10223 = vst [vmem:[#allocation61_spill] sm:$0xff] %v8733_v55  ;;  %v3497_v34 = vadd.f32 0.27886808, %v3445_v60  ;;  %4670 = vrot.lane.b32.xlu0 %v8733_v55, %s6001_s2  ;;  %v5139_v2 = vadd.f32 -1.0, %v4286_v36  ;;  %v4285_v9 = vmul.f32 %v10225_v13, %v10224_v29  ;;  %vm4339_vm10 = vcmp.ge.f32.partialorder %v10226_v33, 0.0  ;;  %v10227_v55 = vld [vmem:[#allocation17_spill] sm:$0xff] }
 0x3ac   :  { %v4264_v23 = vmul.f32 1.442695, %v4167_v20  ;;  %v3961_v6 = vmul.f32 %v8608_v14, %v3909_v18  ;;  %v3756_v24 = vmul.f32 %v8646_v44, %v3704_v37  ;;  %v3703_v54 = vadd.f32 0.09678418, %v3651_v51 }
 0x3ad   :  { %v3858_v4 = vmul.f32 %v8628_v32, %v3806_v26  ;;  %v3549_v3 = vmul.f32 %v8678_v12, %v3497_v34  ;;  %v4494_v30 = vsel %vm4338_vm8, %v4390_v45, %v5139_v2  ;;  %v4389_v53 = vsub.f32 1.0, %v4285_v9  ;;  %v10228_v34 = vld [vmem:[#allocation42_spill] sm:$0xff] }
 0x3ae   :  { %5937 = vpow2.f32 %v4264_v23  ;;  %v4013_v36 = vadd.f32 -1.2655122, %v3961_v6  ;;  %v3808_v60 = vadd.f32 0.37409195, %v3756_v24  ;;  %v3755_v29 = vmul.f32 %v8656_v43, %v3703_v54  ;;  %v10230_v6 = vld [vmem:[#allocation56_spill] sm:$0xff]  ;;  %v10232_v54 = vld [vmem:[#allocation34_spill] sm:$0xff] }
 0x3af   :  { %v3910_v13 = vadd.f32 1.0000237, %v3858_v4  ;;  %v3601_v20 = vadd.f32 -0.18628806, %v3549_v3  ;;  %v4546_v11 = vadd.f32 1.0, %v4494_v30  ;;  %v5138_v18 = vadd.f32 -1.0, %v4285_v9 }
 0x3b0   :  { %vm4340_vm11 = vcmp.ge.f32.partialorder %v10227_v55, 0.0  ;;  %v4169_v37 = vadd.f32 %v8568_v50, %v4013_v36  ;;  %v3860_v51 = vmul.f32 %v8646_v44, %v3808_v60  ;;  %v3807_v26 = vadd.f32 0.37409195, %v3755_v29  ;;  %v10247_v55 = vld [vmem:[#allocation92_spill] sm:$0xff] }
 0x3b1   :  { %v4287_v45 = vmul.f32 %v10229_v31, %v10228_v34  ;;  %v3962_v2 = vmul.f32 %v8628_v32, %v3910_v13  ;;  %v3653_v23 = vmul.f32 %v8678_v12, %v3601_v20  ;;  %v8757_v24 = vmul.f32 %v4546_v11, %v10230_v6  ;;  %v10235_v34 = vld [vmem:[#allocation12_spill] sm:$0xff] }
 0x3b2   :  { %v4493_v9 = vsel %vm4337_vm9, %v4389_v53, %v5138_v18  ;;  %vm4341_vm12 = vcmp.ge.f32.partialorder %v10232_v54, 0.0  ;;  %v4268_v4 = vmul.f32 1.442695, %v4169_v37  ;;  %v3912_v50 = vadd.f32 1.0000237, %v3860_v51 }
 0x3b3   :  { %10231 = vst [vmem:[#allocation25_spill] sm:$0xff] %v8757_v24  ;;  %v3859_v3 = vmul.f32 %v8656_v43, %v3807_v26  ;;  %v4545_v30 = vadd.f32 1.0, %v4493_v9  ;;  %v4014_v36 = vadd.f32 -1.2655122, %v3962_v2  ;;  %v3705_v60 = vadd.f32 0.09678418, %v3653_v23  ;;  %4646 = vrot.lane.b32.xlu1 %v8757_v24, %s6001_s2 }
 0x3b4   :  { %v4391_v29 = vsub.f32 1.0, %v4287_v45  ;;  %v5140_v13 = vadd.f32 -1.0, %v4287_v45  ;;  %5939 = vpow2.f32 %v4268_v4  ;;  %v3964_v11 = vmul.f32 %v8646_v44, %v3912_v50  ;;  %v10234_v26 = vld [vmem:[#allocation53_spill] sm:$0xff]  ;;  %v10237_v9 = vld [vmem:[#allocation54_spill] sm:$0xff]  ;;  %v10238_v4 = vld [vmem:[#allocation87_spill] sm:$0xff] }
 0x3b5   :  { %v3911_v20 = vadd.f32 1.0000237, %v3859_v3  ;;  %v8767_v53 = vmul.f32 %v4545_v30, %v10233_v38  ;;  %v4170_v18 = vadd.f32 %v8591_v22, %v4014_v36  ;;  %v3757_v37 = vmul.f32 %v8678_v12, %v3705_v60  ;;  %v10236_v2 = vld [vmem:[#allocation45_spill] sm:$0xff]  ;;  %v10239_v50 = vld [vmem:[#allocation36_spill] sm:$0xff] }
 0x3b6   :  { %v4495_v51 = vsel %vm4339_vm10, %v4391_v29, %v5140_v13  ;;  %v4288_v31 = vmul.f32 %v10235_v34, %v10234_v26  ;;  %vm4343_vm13 = vcmp.ge.f32.partialorder %v10236_v2, 0.0  ;;  %v4016_v45 = vadd.f32 -1.2655122, %v3964_v11  ;;  %v10240_v29 = vld [vmem:[#allocation49_spill] sm:$0xff] }
 0x3b7   :  { %v3963_v23 = vmul.f32 %v8656_v43, %v3911_v20  ;;  %4722 = vrot.lane.b32.xlu0 %v8767_v53, %s6001_s2  ;;  %v4547_v6 = vadd.f32 1.0, %v4495_v51  ;;  %v4289_v22 = vmul.f32 %v10238_v4, %v10237_v9  ;;  %vm4342_vm14 = vcmp.ge.f32.partialorder %v10239_v50, 0.0  ;;  %v10241_v20 = vld [vmem:[#allocation31_spill] sm:$0xff] }
 0x3b8   :  { %v4270_v3 = vmul.f32 1.442695, %v4170_v18  ;;  %v3809_v33 = vadd.f32 0.37409195, %v3757_v37  ;;  %v4392_v30 = vsub.f32 1.0, %v4288_v31  ;;  %v5141_v36 = vadd.f32 -1.0, %v4288_v31  ;;  %v8782_v60 = vpop.eup %5937 }
 0x3b9   :  { %vm4345_vm15 = vcmp.ge.f32.partialorder %v10240_v29, 0.0  ;;  %v4172_v13 = vadd.f32 %v8604_v59, %v4016_v45  ;;  %v4015_v11 = vadd.f32 -1.2655122, %v3963_v23  ;;  %v8787_v38 = vmul.f32 %v4547_v6, %v10241_v20  ;;  %v10243_v59 = vld [vmem:[#allocation62_spill] sm:$0xff]  ;;  %v10244_v45 = vld [vmem:[#allocation96_spill] sm:$0xff]  ;;  %v10251_v20 = vld [vmem:[#allocation29_spill] sm:$0xff] }
 0x3ba   :  { %v4393_v51 = vsub.f32 1.0, %v4289_v22  ;;  %5941 = vpow2.f32 %v4270_v3  ;;  %v3861_v26 = vmul.f32 %v8678_v12, %v3809_v33  ;;  %v4496_v18 = vsel %vm4340_vm11, %v4392_v30, %v5141_v36  ;;  %v10245_v6 = vld [vmem:[#allocation40_spill] sm:$0xff]  ;;  %v10246_v33 = vld [vmem:[#allocation57_spill] sm:$0xff]  ;;  %v10268_v29 = vld [vmem:[#allocation83_spill] sm:$0xff] }
 0x3bb   :  { %10242 = vst [vmem:[#allocation14_spill] sm:$0xff] %v8787_v38  ;;  %v5142_v37 = vadd.f32 -1.0, %v4289_v22  ;;  %v4274_v34 = vmul.f32 1.442695, %v4172_v13  ;;  %v4171_v31 = vadd.f32 %v8610_v19, %v4015_v11  ;;  %4672 = vrot.lane.b32.xlu1 %v8787_v38, %s6001_s2  ;;  %v4548_v9 = vadd.f32 1.0, %v4496_v18  ;;  %v10248_v22 = vld [vmem:[#allocation67_spill] sm:$0xff] }
 0x3bc   :  { %v4291_v23 = vmul.f32 %v10244_v45, %v10243_v59  ;;  %vm4344_vm0 = vcmp.ge.f32.partialorder %v10245_v6, 0.0  ;;  %v3913_v4 = vadd.f32 1.0000237, %v3861_v26  ;;  %v4290_v30 = vmul.f32 %v10247_v55, %v10246_v33  ;;  %v10249_v36 = vld [vmem:[#allocation100_spill] sm:$0xff]  ;;  %v10250_v19 = vld [vmem:[#allocation51_spill] sm:$0xff]  ;;  %v10256_v55 = vld [vmem:[#allocation66_spill] sm:$0xff] }
 0x3bd   :  { %v4497_v3 = vsel %vm4341_vm12, %v4393_v51, %v5142_v37  ;;  %v4293_v13 = vmul.f32 %v10249_v36, %v10248_v22  ;;  %vm4346_vm1 = vcmp.ge.f32.partialorder %v10250_v19, 0.0  ;;  %5943 = vpow2.f32 %v4274_v34  ;;  %v10253_v45 = vld [vmem:[#allocation52_spill] sm:$0xff]  ;;  %v10258_v36 = vld [vmem:[#allocation94_spill] sm:$0xff] }
 0x3be   :  { %v4272_v11 = vmul.f32 1.442695, %v4171_v31  ;;  %v8806_v18 = vmul.f32 %v4548_v9, %v10251_v20  ;;  %v4549_v59 = vadd.f32 1.0, %v4497_v3  ;;  %vm4347_vm2 = vcmp.ge.f32.partialorder %v10253_v45, 0.0  ;;  %v8810_v24 = vpop.eup %5939  ;;  %v10254_v33 = vld [vmem:[#allocation64_spill] sm:$0xff]  ;;  %v10259_v38 = vld [vmem:[#allocation58_spill] sm:$0xff] }
 0x3bf   :  { %v3965_v26 = vmul.f32 %v8678_v12, %v3913_v4  ;;  %v4395_v54 = vsub.f32 1.0, %v4291_v23  ;;  %v5144_v51 = vadd.f32 -1.0, %v4291_v23  ;;  %v4394_v37 = vsub.f32 1.0, %v4290_v30  ;;  %v10257_v23 = vld [vmem:[#allocation60_spill] sm:$0xff] }
 0x3c0   :  { %10252 = vst [vmem:[#allocation68_spill] sm:$0xff] %v8806_v18  ;;  %5945 = vpow2.f32 %v4272_v11  ;;  %4698 = vrot.lane.b32.xlu0 %v8806_v18, %s6001_s2  ;;  %v8815_v34 = vmul.f32 %v4549_v59, %v10254_v33  ;;  %v5143_v31 = vadd.f32 -1.0, %v4290_v30  ;;  %v4397_v9 = vsub.f32 1.0, %v4293_v13  ;;  %v10260_v59 = vld [vmem:[#allocation72_spill] sm:$0xff]  ;;  %v10261_v33 = vld [vmem:[#allocation22_spill] sm:$0xff] }
 0x3c1   :  { %vm4348_vm3 = vcmp.ge.f32.partialorder %v10256_v55, 0.0  ;;  %v4017_v3 = vadd.f32 -1.2655122, %v3965_v26  ;;  %v4499_v4 = vsel %vm4343_vm13, %v4395_v54, %v5144_v51  ;;  %v5146_v22 = vadd.f32 -1.0, %v4293_v13  ;;  %v10284_v55 = vld [vmem:[#allocation97_spill] sm:$0xff] }
 0x3c2   :  { %10255 = vst [vmem:[#allocation18_spill] sm:$0xff] %v8815_v34  ;;  %v4292_v20 = vmul.f32 %v10258_v36, %v10257_v23  ;;  %vm4349_vm4 = vcmp.ge.f32.partialorder %v10259_v38, 0.0  ;;  %4724 = vrot.lane.b32.xlu1 %v8815_v34, %s6001_s2  ;;  %v4551_v11 = vadd.f32 1.0, %v4499_v4  ;;  %v4498_v30 = vsel %vm4342_vm14, %v4394_v37, %v5143_v31  ;;  %v10262_v23 = vld [vmem:[#allocation75_spill] sm:$0xff]  ;;  %v10289_v38 = vld [vmem:[#allocation82_spill] sm:$0xff] }
 0x3c3   :  { %v4294_v18 = vmul.f32 %v10261_v33, %v10260_v59  ;;  %v4295_v2 = vmul.f32 %v8017_v61, %v7631_v39  ;;  %v4173_v13 = vadd.f32 %v8624_v40, %v4017_v3  ;;  %v4550_v26 = vadd.f32 1.0, %v4498_v30  ;;  %v10264_v31 = vld [vmem:[#allocation11_spill] sm:$0xff]  ;;  %v10265_v33 = vld [vmem:[#allocation65_spill] sm:$0xff]  ;;  %v10267_v3 = vld [vmem:[#allocation78_spill] sm:$0xff] }
 0x3c4   :  { %v4501_v54 = vsel %vm4345_vm15, %v4397_v9, %v5146_v22  ;;  %v4396_v51 = vsub.f32 1.0, %v4292_v20  ;;  %v8835_v36 = vmul.f32 %v4551_v11, %v10262_v23  ;;  %v5145_v34 = vadd.f32 -1.0, %v4292_v20  ;;  %v8837_v37 = vpop.eup %5941  ;;  %v10269_v9 = vld [vmem:[#allocation77_spill] sm:$0xff]  ;;  %v10271_v30 = vld [vmem:[#allocation76_spill] sm:$0xff] }
 0x3c5   :  { %v4553_v4 = vadd.f32 1.0, %v4501_v54  ;;  %v4398_v50 = vsub.f32 1.0, %v4294_v18  ;;  %vm4351_vm5 = vcmp.ge.f32.partialorder %v10264_v31, 0.0  ;;  %v4276_v59 = vmul.f32 1.442695, %v4173_v13  ;;  %v10295_v31 = vld [vmem:[#allocation106_spill] sm:$0xff] }
 0x3c6   :  { %10263 = vst [vmem:[#allocation70_spill] sm:$0xff] %v8835_v36  ;;  %v8841_v39 = vmul.f32 %v4550_v26, %v10265_v33  ;;  %v5147_v61 = vadd.f32 -1.0, %v4294_v18  ;;  %v4399_v40 = vsub.f32 1.0, %v4295_v2  ;;  %vm4350_vm6 = vcmp.ge.f32.partialorder %v10267_v3, 0.0  ;;  %4674 = vrot.lane.b32.xlu0 %v8835_v36, %s6001_s2  ;;  %v10288_v36 = vld [vmem:[#allocation90_spill] sm:$0xff] }
 0x3c7   :  { %vm4353_vm7 = vcmp.ge.f32.partialorder %v10268_v29, 0.0  ;;  %v8848_v22 = vmul.f32 %v4553_v4, %v10269_v9  ;;  %v4500_v20 = vsel %vm4344_vm0, %v4396_v51, %v5145_v34  ;;  %v5148_v11 = vadd.f32 -1.0, %v4295_v2  ;;  %v8860_v23 = vpop.eup %5943  ;;  %v10273_v51 = vld [vmem:[#allocation69_spill] sm:$0xff] }
 0x3c8   :  { %10266 = vst [vmem:[#allocation43_spill] sm:$0xff] %v8841_v39  ;;  %v4296_v13 = vmul.f32 %v7964_v8, %v10271_v30  ;;  %5947 = vpow2.f32 %v4276_v59  ;;  %4648 = vrot.lane.b32.xlu1 %v8841_v39, %s6001_s2  ;;  %v4552_v18 = vadd.f32 1.0, %v4500_v20  ;;  %v4502_v26 = vsel %vm4346_vm1, %v4398_v50, %v5147_v61  ;;  %v10272_v8 = vld [vmem:[#allocation28_spill] sm:$0xff]  ;;  %v10275_v61 = vld [vmem:[#allocation85_spill] sm:$0xff]  ;;  %v10280_v30 = vld [vmem:[#allocation119_spill] sm:$0xff] }
 0x3c9   :  { %10270 = vst [vmem:[#allocation24_spill] sm:$0xff] %v8848_v22  ;;  %v4297_v54 = vmul.f32 %v8026_v35, %v7717_v58  ;;  %v4554_v4 = vadd.f32 1.0, %v4502_v26  ;;  %v4503_v6 = vsel %vm4347_vm2, %v4399_v40, %v5148_v11  ;;  %vm4352_vm8 = vcmp.ge.f32.partialorder %v10272_v8, 0.0  ;;  %v10276_v58 = vld [vmem:[#allocation55_spill] sm:$0xff]  ;;  %v10278_v40 = vld [vmem:[#allocation124_spill] sm:$0xff] }
 0x3ca   :  { %v4400_v34 = vsub.f32 1.0, %v4296_v13  ;;  %v5149_v2 = vadd.f32 -1.0, %v4296_v13  ;;  %v8866_v59 = vmul.f32 %v4552_v18, %v10273_v51  ;;  %v4555_v33 = vadd.f32 1.0, %v4503_v6  ;;  %v8868_v50 = vpop.eup %5945  ;;  %4726 = vrot.lane.b32.xlu0 %v8848_v22, %s6001_s2  ;;  %v10279_v11 = vld [vmem:[#allocation84_spill] sm:$0xff]  ;;  %v10281_v18 = vld [vmem:[#allocation91_spill] sm:$0xff] }
 0x3cb   :  { %v4401_v9 = vsub.f32 1.0, %v4297_v54  ;;  %v5150_v19 = vadd.f32 -1.0, %v4297_v54  ;;  %vm4354_vm9 = vcmp.ge.f32.partialorder %v10275_v61, 0.0  ;;  %v8874_v35 = vmul.f32 %v4554_v4, %v10276_v58  ;;  %v10282_v26 = vld [vmem:[#allocation80_spill] sm:$0xff]  ;;  %v10310_v61 = vld [vmem:[#allocation111_spill] sm:$0xff] }
 0x3cc   :  { %10274 = vst [vmem:[#allocation38_spill] sm:$0xff] %v8866_v59  ;;  %v4504_v45 = vsel %vm4348_vm3, %v4400_v34, %v5149_v2  ;;  %v4299_v20 = vmul.f32 %v10278_v40, %v7789_v27  ;;  %v4298_v13 = vmul.f32 %v10280_v30, %v10279_v11  ;;  %vm4355_vm10 = vcmp.ge.f32.partialorder %v10281_v18, 0.0  ;;  %4700 = vrot.lane.b32.xlu1 %v8866_v59, %s6001_s2  ;;  %v10285_v34 = vld [vmem:[#allocation127_spill] sm:$0xff] }
 0x3cd   :  { %10277 = vst [vmem:[#allocation19_spill] sm:$0xff] %v8874_v35  ;;  %v8886_v54 = vmul.f32 %v4555_v33, %v10282_v26  ;;  %v4556_v6 = vadd.f32 1.0, %v4504_v45  ;;  %v4505_v4 = vsel %vm4349_vm4, %v4401_v9, %v5150_v19  ;;  %v4301_v2 = vmul.f32 %v10285_v34, %v10284_v55  ;;  %v10286_v11 = vld [vmem:[#allocation79_spill] sm:$0xff]  ;;  %v10291_v45 = vld [vmem:[#allocation122_spill] sm:$0xff] }
 0x3ce   :  { %v4557_v51 = vadd.f32 1.0, %v4505_v4  ;;  %v4403_v27 = vsub.f32 1.0, %v4299_v20  ;;  %v5152_v58 = vadd.f32 -1.0, %v4299_v20  ;;  %v4402_v40 = vsub.f32 1.0, %v4298_v13  ;;  %4650 = vrot.lane.b32.xlu0 %v8874_v35, %s6001_s2  ;;  %v10290_v19 = vld [vmem:[#allocation35_spill] sm:$0xff]  ;;  %v10292_v26 = vld [vmem:[#allocation98_spill] sm:$0xff] }
 0x3cf   :  { %10283 = vst [vmem:[#allocation71_spill] sm:$0xff] %v8886_v54  ;;  %v8893_v30 = vmul.f32 %v4556_v6, %v10286_v11  ;;  %v5151_v22 = vadd.f32 -1.0, %v4298_v13  ;;  %v4405_v39 = vsub.f32 1.0, %v4301_v2  ;;  %v5154_v59 = vadd.f32 -1.0, %v4301_v2  ;;  %v10293_v6 = vld [vmem:[#allocation129_spill] sm:$0xff]  ;;  %v10314_v18 = vld [vmem:[#allocation103_spill] sm:$0xff] }
 0x3d0   :  { %vm4356_vm11 = vcmp.ge.f32.partialorder %v10288_v36, 0.0  ;;  %v8899_v33 = vmul.f32 %v4557_v51, %v10289_v38  ;;  %v4507_v9 = vsel %vm4351_vm5, %v4403_v27, %v5152_v58  ;;  %v4300_v20 = vmul.f32 %v10291_v45, %v10290_v19  ;;  %v10294_v13 = vld [vmem:[#allocation105_spill] sm:$0xff]  ;;  %4676 = vrot.lane.b32.xlu1 %v8886_v54, %s6001_s2  ;;  %v10318_v36 = vld [vmem:[#allocation99_spill] sm:$0xff] }
 0x3d1   :  { %10287 = vst [vmem:[#allocation46_spill] sm:$0xff] %v8893_v30  ;;  %v4302_v4 = vmul.f32 %v10293_v6, %v10292_v26  ;;  %vm4357_vm12 = vcmp.ge.f32.partialorder %v10294_v13, 0.0  ;;  %v4559_v55 = vadd.f32 1.0, %v4507_v9  ;;  %v4506_v34 = vsel %vm4350_vm6, %v4402_v40, %v5151_v22  ;;  %v10296_v51 = vld [vmem:[#allocation137_spill] sm:$0xff]  ;;  %v10322_v13 = vld [vmem:[#allocation107_spill] sm:$0xff] }
 0x3d2   :  { %v4509_v2 = vsel %vm4353_vm7, %v4405_v39, %v5154_v59  ;;  %v4303_v27 = vmul.f32 %v10296_v51, %v10295_v31  ;;  %v10297_v58 = vld [vmem:[#allocation113_spill] sm:$0xff]  ;;  %v4558_v11 = vadd.f32 1.0, %v4506_v34  ;;  %v4404_v19 = vsub.f32 1.0, %v4300_v20  ;;  %v8917_v26 = vpop.eup %5947  ;;  %4702 = vrot.lane.b32.xlu0 %v8893_v30, %s6001_s2  ;;  %v10301_v39 = vld [vmem:[#allocation15_spill] sm:$0xff]  ;;  %v10305_v31 = vld [vmem:[#allocation104_spill] sm:$0xff] }
 0x3d3   :  { %vm4359_vm13 = vcmp.ge.f32.partialorder %v10297_v58, 0.0  ;;  %v4561_v38 = vadd.f32 1.0, %v4509_v2  ;;  %v5153_v45 = vadd.f32 -1.0, %v4300_v20  ;;  %v10298_v6 = vld [vmem:[#allocation109_spill] sm:$0xff]  ;;  %v4406_v3 = vsub.f32 1.0, %v4302_v4  ;;  %v10306_v51 = vld [vmem:[#allocation136_spill] sm:$0xff] }
 0x3d4   :  { %vm4358_vm14 = vcmp.ge.f32.partialorder %v10298_v6, 0.0  ;;  %v10299_v9 = vld [vmem:[#allocation93_spill] sm:$0xff]  ;;  %v5155_v22 = vadd.f32 -1.0, %v4302_v4  ;;  %v4407_v29 = vsub.f32 1.0, %v4303_v27  ;;  %v8926_v59 = vmul.f32 %v4558_v11, %v10301_v39  ;;  %4728 = vrot.lane.b32.xlu1 %v8899_v33, %s6001_s2  ;;  %v10307_v30 = vld [vmem:[#allocation110_spill] sm:$0xff]  ;;  %v10326_v6 = vld [vmem:[#allocation115_spill] sm:$0xff] }
 0x3d5   :  { %v8921_v35 = vmul.f32 %v4559_v55, %v10299_v9  ;;  %v10303_v40 = vld [vmem:[#allocation101_spill] sm:$0xff]  ;;  %v4508_v20 = vsel %vm4352_vm8, %v4404_v19, %v5153_v45  ;;  %v5156_v2 = vadd.f32 -1.0, %v4303_v27  ;;  %v4304_v9 = vmul.f32 %v10306_v51, %v10305_v31  ;;  %v10308_v39 = vld [vmem:[#allocation114_spill] sm:$0xff]  ;;  %v10309_v19 = vld [vmem:[#allocation116_spill] sm:$0xff] }
 0x3d6   :  { %10302 = vst [vmem:[#allocation20_spill] sm:$0xff] %v8926_v59  ;;  %v8929_v34 = vmul.f32 %v4561_v38, %v10303_v40  ;;  %v4560_v55 = vadd.f32 1.0, %v4508_v20  ;;  %v4510_v4 = vsel %vm4354_vm9, %v4406_v3, %v5155_v22  ;;  %v4305_v11 = vmul.f32 %v8278_v47, %v10307_v30  ;;  %v10311_v3 = vld [vmem:[#allocation118_spill] sm:$0xff]  ;;  %v10312_v22 = vld [vmem:[#allocation32_spill] sm:$0xff] }
 0x3d7   :  { %10300 = vst [vmem:[#allocation26_spill] sm:$0xff] %v8921_v35  ;;  %vm4361_vm15 = vcmp.ge.f32.partialorder %v10308_v39, 0.0  ;;  %v4562_v38 = vadd.f32 1.0, %v4510_v4  ;;  %v4511_v8 = vsel %vm4355_vm10, %v4407_v29, %v5156_v2  ;;  %v4307_v27 = vmul.f32 %v8336_v49, %v8083_v7  ;;  %4678 = vrot.lane.b32.xlu0 %v8921_v35, %s6001_s2  ;;  %v10332_v39 = vld [vmem:[#allocation138_spill] sm:$0xff] }
 0x3d8   :  { %10304 = vst [vmem:[#allocation73_spill] sm:$0xff] %v8929_v34  ;;  %v4306_v45 = vmul.f32 %v8292_v10, %v10309_v19  ;;  %vm4360_vm0 = vcmp.ge.f32.partialorder %v10310_v61, 0.0  ;;  %vm4362_vm1 = vcmp.ge.f32.partialorder %v10311_v3, 0.0  ;;  %v8951_v40 = vmul.f32 %v4560_v55, %v10312_v22  ;;  %4652 = vrot.lane.b32.xlu1 %v8926_v59, %s6001_s2  ;;  %v10315_v10 = vld [vmem:[#allocation108_spill] sm:$0xff]  ;;  %v10317_v22 = vld [vmem:[#allocation121_spill] sm:$0xff] }
 0x3d9   :  { %v4563_v47 = vadd.f32 1.0, %v4511_v8  ;;  %v4408_v30 = vsub.f32 1.0, %v4304_v9  ;;  %v5157_v20 = vadd.f32 -1.0, %v4304_v9  ;;  %v8956_v29 = vmul.f32 %v4562_v38, %v10314_v18  ;;  %v10316_v9 = vld [vmem:[#allocation123_spill] sm:$0xff] }
 0x3da   :  { %10313 = vst [vmem:[#allocation16_spill] sm:$0xff] %v8951_v40  ;;  %v4409_v7 = vsub.f32 1.0, %v4305_v11  ;;  %v5158_v49 = vadd.f32 -1.0, %v4305_v11  ;;  %v4411_v2 = vsub.f32 1.0, %v4307_v27  ;;  %v5160_v31 = vadd.f32 -1.0, %v4307_v27 }
 0x3db   :  { %v8961_v4 = vmul.f32 %v4563_v47, %v10315_v10  ;;  %v4512_v55 = vsel %vm4356_vm11, %v4408_v30, %v5157_v20  ;;  %v4410_v51 = vsub.f32 1.0, %v4306_v45  ;;  %vm4363_vm2 = vcmp.ge.f32.partialorder %v10316_v9, 0.0  ;;  %v10319_v30 = vld [vmem:[#allocation130_spill] sm:$0xff]  ;;  %v10320_v20 = vld [vmem:[#allocation151_spill] sm:$0xff]  ;;  %4730 = vrot.lane.b32.xlu0 %v8929_v34, %s6001_s2 }
 0x3dc   :  { %v4564_v8 = vadd.f32 1.0, %v4512_v55  ;;  %v4513_v38 = vsel %vm4357_vm12, %v4409_v7, %v5158_v49  ;;  %v5159_v19 = vadd.f32 -1.0, %v4306_v45  ;;  %v4309_v11 = vmul.f32 %v8349_v0, %v8098_v48  ;;  %v10321_v55 = vld [vmem:[#allocation125_spill] sm:$0xff]  ;;  %4704 = vrot.lane.b32.xlu1 %v8951_v40, %s6001_s2  ;;  %v10331_v40 = vld [vmem:[#allocation135_spill] sm:$0xff] }
 0x3dd   :  { %vm4364_vm3 = vcmp.ge.f32.partialorder %v10317_v22, 0.0  ;;  %v4565_v18 = vadd.f32 1.0, %v4513_v38  ;;  %v4515_v47 = vsel %vm4359_vm13, %v4411_v2, %v5160_v31  ;;  %v4308_v27 = vmul.f32 %v10318_v36, %v8057_v25  ;;  %v10323_v25 = vld [vmem:[#allocation112_spill] sm:$0xff]  ;;  %v10341_v22 = vld [vmem:[#allocation95_spill] sm:$0xff] }
 0x3de   :  { %v4310_v10 = vmul.f32 %v10320_v20, %v10319_v30  ;;  %vm4365_vm4 = vcmp.ge.f32.partialorder %v10321_v55, 0.0  ;;  %v8981_v45 = vmul.f32 %v4564_v8, %v10322_v13  ;;  %v4567_v48 = vadd.f32 1.0, %v4515_v47  ;;  %v10324_v38 = vld [vmem:[#allocation120_spill] sm:$0xff]  ;;  %v10325_v47 = vld [vmem:[#allocation143_spill] sm:$0xff]  ;;  %v10327_v13 = vld [vmem:[#allocation133_spill] sm:$0xff] }
 0x3df   :  { %v4514_v0 = vsel %vm4358_vm14, %v4410_v51, %v5159_v19  ;;  %v4413_v58 = vsub.f32 1.0, %v4309_v11  ;;  %v8988_v7 = vmul.f32 %v4565_v18, %v10323_v25  ;;  %v5162_v2 = vadd.f32 -1.0, %v4309_v11  ;;  %v10328_v18 = vld [vmem:[#allocation156_spill] sm:$0xff]  ;;  %v10330_v11 = vld [vmem:[#allocation154_spill] sm:$0xff]  ;;  %4654 = vrot.lane.b32.xlu0 %v8956_v29, %s6001_s2 }
 0x3e0   :  { %v4566_v49 = vadd.f32 1.0, %v4514_v0  ;;  %v4412_v31 = vsub.f32 1.0, %v4308_v27  ;;  %v8991_v36 = vmul.f32 %v4567_v48, %v10324_v38  ;;  %v5161_v30 = vadd.f32 -1.0, %v4308_v27  ;;  %v10329_v0 = vld [vmem:[#allocation131_spill] sm:$0xff]  ;;  %4680 = vrot.lane.b32.xlu1 %v8961_v4, %s6001_s2 }
 0x3e1   :  { %v4414_v8 = vsub.f32 1.0, %v4310_v10  ;;  %v5163_v20 = vadd.f32 -1.0, %v4310_v10  ;;  %vm4367_vm5 = vcmp.ge.f32.partialorder %v10325_v47, 0.0  ;;  %v4517_v19 = vsel %vm4361_vm15, %v4413_v58, %v5162_v2  ;;  %v10333_v58 = vld [vmem:[#allocation160_spill] sm:$0xff] }
 0x3e2   :  { %v8995_v51 = vmul.f32 %v4566_v49, %v10326_v6  ;;  %v4311_v25 = vmul.f32 %v10328_v18, %v10327_v13  ;;  %v4312_v34 = vmul.f32 %v10330_v11, %v10329_v0  ;;  %vm4366_vm6 = vcmp.ge.f32.partialorder %v10331_v40, 0.0  ;;  %v10334_v2 = vld [vmem:[#allocation144_spill] sm:$0xff]  ;;  %v10335_v0 = vld [vmem:[#allocation141_spill] sm:$0xff]  ;;  %v10349_v40 = vld [vmem:[#allocation146_spill] sm:$0xff] }
 0x3e3   :  { %v4569_v27 = vadd.f32 1.0, %v4517_v19  ;;  %v4516_v10 = vsel %vm4360_vm0, %v4412_v31, %v5161_v30  ;;  %v4518_v48 = vsel %vm4362_vm1, %v4414_v8, %v5163_v20  ;;  %v4313_v49 = vmul.f32 %v10333_v58, %v10332_v39  ;;  %v10336_v19 = vld [vmem:[#allocation126_spill] sm:$0xff]  ;;  %v10337_v8 = vld [vmem:[#allocation117_spill] sm:$0xff]  ;;  %v10338_v11 = vld [vmem:[#allocation128_spill] sm:$0xff]  ;;  %4706 = vrot.lane.b32.xlu0 %v8981_v45, %s6001_s2 }
 0x3e4   :  { %vm4369_vm7 = vcmp.ge.f32.partialorder %v10334_v2, 0.0  ;;  %v4568_v38 = vadd.f32 1.0, %v4516_v10  ;;  %v4570_v6 = vadd.f32 1.0, %v4518_v48  ;;  %v4415_v13 = vsub.f32 1.0, %v4311_v25  ;;  %v10339_v58 = vld [vmem:[#allocation142_spill] sm:$0xff]  ;;  %4732 = vrot.lane.b32.xlu1 %v8988_v7, %s6001_s2  ;;  %v10350_v2 = vld [vmem:[#allocation140_spill] sm:$0xff] }
 0x3e5   :  { %v5164_v18 = vadd.f32 -1.0, %v4311_v25  ;;  %vm4368_vm8 = vcmp.ge.f32.partialorder %v10335_v0, 0.0  ;;  %v9017_v61 = vmul.f32 %v4569_v27, %v10336_v19  ;;  %v4416_v31 = vsub.f32 1.0, %v4312_v34  ;;  %v10340_v19 = vld [vmem:[#allocation89_spill] sm:$0xff] }
 0x3e6   :  { %v5165_v3 = vadd.f32 -1.0, %v4312_v34  ;;  %v4417_v30 = vsub.f32 1.0, %v4313_v49  ;;  %v9020_v20 = vmul.f32 %v4568_v38, %v10337_v8  ;;  %v9023_v39 = vmul.f32 %v4570_v6, %v10338_v11  ;;  %v10345_v11 = vld [vmem:[#allocation132_spill] sm:$0xff] }
 0x3e7   :  { %v4519_v10 = vsel %vm4363_vm2, %v4415_v13, %v5164_v18  ;;  %v5166_v48 = vadd.f32 -1.0, %v4313_v49  ;;  %v4315_v34 = vmul.f32 %v8558_v63, %v8354_v5  ;;  %v4314_v38 = vmul.f32 %v8539_v41, %v10339_v58  ;;  %v10342_v18 = vld [vmem:[#allocation145_spill] sm:$0xff]  ;;  %v10343_v5 = vld [vmem:[#allocation102_spill] sm:$0xff]  ;;  %4682 = vrot.lane.b32.xlu0 %v8991_v36, %s6001_s2 }
 0x3e8   :  { %v4571_v25 = vadd.f32 1.0, %v4519_v10  ;;  %v4520_v27 = vsel %vm4364_vm3, %v4416_v31, %v5165_v3  ;;  %vm4370_vm9 = vcmp.ge.f32.partialorder %v10340_v19, 0.0  ;;  %v4317_v6 = vmul.f32 %v8574_v28, %v8377_v15  ;;  %v10344_v41 = vld [vmem:[#allocation134_spill] sm:$0xff]  ;;  %v10346_v15 = vld [vmem:[#allocation139_spill] sm:$0xff]  ;;  %4656 = vrot.lane.b32.xlu1 %v8995_v51, %s6001_s2  ;;  %v10358_v19 = vld [vmem:[#allocation168_spill] sm:$0xff] }
 0x3e9   :  { %v4572_v9 = vadd.f32 1.0, %v4520_v27  ;;  %v4521_v49 = vsel %vm4365_vm4, %v4417_v30, %v5166_v48  ;;  %v4316_v13 = vmul.f32 %v8543_v17, %v10341_v22  ;;  %vm4372_vm10 = vcmp.ge.f32.partialorder %v10342_v18, 0.0  ;;  %v10347_v58 = vld [vmem:[#allocation150_spill] sm:$0xff] }
 0x3ea   :  { %vm4371_vm11 = vcmp.ge.f32.partialorder %v10343_v5, 0.0  ;;  %v9047_v63 = vmul.f32 %v4571_v25, %v10344_v41  ;;  %v4573_v31 = vadd.f32 1.0, %v4521_v49  ;;  %v4419_v3 = vsub.f32 1.0, %v4315_v34  ;;  %v10359_v5 = vld [vmem:[#allocation148_spill] sm:$0xff] }
 0x3eb   :  { %v5168_v8 = vadd.f32 -1.0, %v4315_v34  ;;  %v9050_v10 = vmul.f32 %v4572_v9, %v10345_v11  ;;  %v4418_v55 = vsub.f32 1.0, %v4314_v38  ;;  %v5167_v30 = vadd.f32 -1.0, %v4314_v38  ;;  %4734 = vrot.lane.b32.xlu0 %v9017_v61, %s6001_s2 }
 0x3ec   :  { %v4421_v48 = vsub.f32 1.0, %v4317_v6  ;;  %v9055_v17 = vmul.f32 %v4573_v31, %v10346_v15  ;;  %v5170_v25 = vadd.f32 -1.0, %v4317_v6  ;;  %v4420_v27 = vsub.f32 1.0, %v4316_v13  ;;  %v10348_v31 = vld [vmem:[#allocation153_spill] sm:$0xff]  ;;  %4708 = vrot.lane.b32.xlu1 %v9020_v20, %s6001_s2 }
 0x3ed   :  { %v4523_v28 = vsel %vm4367_vm5, %v4419_v3, %v5168_v8  ;;  %vm4373_vm12 = vcmp.ge.f32.partialorder %v10347_v58, 0.0  ;;  %v4522_v38 = vsel %vm4366_vm6, %v4418_v55, %v5167_v30  ;;  %v5169_v9 = vadd.f32 -1.0, %v4316_v13 }
 0x3ee   :  { %v4575_v34 = vadd.f32 1.0, %v4523_v28  ;;  %v4318_v49 = vmul.f32 %v8589_v16, %v8405_v52  ;;  %vm4375_vm13 = vcmp.ge.f32.partialorder %v8516_v56, 0.0  ;;  %v4574_v22 = vadd.f32 1.0, %v4522_v38 }
 0x3ef   :  { %v4525_v47 = vsel %vm4369_vm7, %v4421_v48, %v5170_v25  ;;  %v4319_v6 = vmul.f32 %v8613_v62, %v8430_v21  ;;  %v4320_v41 = vmul.f32 %v8596_v46, %v8408_v42  ;;  %vm4374_vm14 = vcmp.ge.f32.partialorder %v10348_v31, 0.0  ;;  %v10351_v42 = vld [vmem:[#allocation147_spill] sm:$0xff]  ;;  %v10352_v48 = vld [vmem:[#allocation88_spill] sm:$0xff]  ;;  %4658 = vrot.lane.b32.xlu0 %v9023_v39, %s6001_s2 }
 0x3f0   :  { %v9075_v3 = vmul.f32 %v4575_v34, %v10349_v40  ;;  %v4577_v13 = vadd.f32 1.0, %v4525_v47  ;;  %v4524_v52 = vsel %vm4368_vm8, %v4420_v27, %v5169_v9  ;;  %v4422_v16 = vsub.f32 1.0, %v4318_v49  ;;  %v10353_v25 = vld [vmem:[#allocation159_spill] sm:$0xff]  ;;  %v10354_v27 = vld [vmem:[#allocation10_spill] sm:$0xff]  ;;  %4684 = vrot.lane.b32.xlu1 %v9047_v63, %s6001_s2 }
 0x3f1   :  { %v9082_v8 = vmul.f32 %v4574_v22, %v10350_v2  ;;  %v4576_v21 = vadd.f32 1.0, %v4524_v52  ;;  %v5171_v62 = vadd.f32 -1.0, %v4318_v49  ;;  %v4423_v11 = vsub.f32 1.0, %v4319_v6  ;;  %v10355_v9 = vld [vmem:[#allocation158_spill] sm:$0xff] }
 0x3f2   :  { %v9087_v46 = vmul.f32 %v4577_v13, %v10351_v42  ;;  %v5172_v55 = vadd.f32 -1.0, %v4319_v6  ;;  %v4424_v30 = vsub.f32 1.0, %v4320_v41  ;;  %v5173_v0 = vadd.f32 -1.0, %v4320_v41  ;;  %v10356_v6 = vld [vmem:[#allocation162_spill] sm:$0xff]  ;;  %v10361_v42 = vld [vmem:[#allocation149_spill] sm:$0xff] }
 0x3f3   :  { %vm4378_vm15 = vcmp.ge.f32.partialorder %v8551_v1, 0.0  ;;  %v9091_v15 = vmul.f32 %v4576_v21, %v10352_v48  ;;  %v4526_v28 = vsel %vm4370_vm9, %v4422_v16, %v5171_v62  ;;  %v4321_v34 = vmul.f32 %v10354_v27, %v10353_v25  ;;  %v10357_v41 = vld [vmem:[#allocation30_spill] sm:$0xff]  ;;  %v10360_v62 = vld [vmem:[#allocation152_spill] sm:$0xff]  ;;  %v10362_v27 = vld [vmem:[#allocation163_spill] sm:$0xff]  ;;  %4710 = vrot.lane.b32.xlu0 %v9050_v10, %s6001_s2 }
 0x3f4   :  { %v4323_v38 = vmul.f32 %v8782_v60, %v8579_v57  ;;  %vm4376_vm0 = vcmp.ge.f32.partialorder %v10355_v9, 0.0  ;;  %v4578_v49 = vadd.f32 1.0, %v4526_v28  ;;  %v4527_v22 = vsel %vm4371_vm11, %v4423_v11, %v5172_v55  ;;  %4736 = vrot.lane.b32.xlu1 %v9055_v17, %s6001_s2 }
 0x3f5   :  { %v4528_v47 = vsel %vm4372_vm10, %v4424_v30, %v5173_v0  ;;  %v4322_v40 = vmul.f32 %v10357_v41, %v10356_v6  ;;  %vm4380_vm1 = vcmp.ge.f32.partialorder %v10358_v19, 0.0  ;;  %v4579_v13 = vadd.f32 1.0, %v4527_v22  ;;  %v10374_v19 = vld [vmem:[#allocation170_spill] sm:$0xff] }
 0x3f6   :  { %v4580_v52 = vadd.f32 1.0, %v4528_v47  ;;  %v4425_v57 = vsub.f32 1.0, %v4321_v34  ;;  %v5174_v60 = vadd.f32 -1.0, %v4321_v34  ;;  %v9112_v16 = vmul.f32 %v4578_v49, %v10359_v5  ;;  %v10363_v34 = vld [vmem:[#allocation9_spill] sm:$0xff] }
 0x3f7   :  { %v4427_v18 = vsub.f32 1.0, %v4323_v38  ;;  %v5176_v2 = vadd.f32 -1.0, %v4323_v38  ;;  %v4426_v21 = vsub.f32 1.0, %v4322_v40  ;;  %v9115_v11 = vmul.f32 %v4579_v13, %v10360_v62  ;;  %4686 = vrot.lane.b32.xlu0 %v9075_v3, %s6001_s2  ;;  %v10369_v62 = vld [vmem:[#allocation169_spill] sm:$0xff] }
 0x3f8   :  { %v9118_v55 = vmul.f32 %v4580_v52, %v10361_v42  ;;  %v4529_v30 = vsel %vm4373_vm12, %v4425_v57, %v5174_v60  ;;  %v5175_v0 = vadd.f32 -1.0, %v4322_v40  ;;  %v4326_v25 = vmul.f32 %v8837_v37, %v8628_v32  ;;  %v10364_v32 = vld [vmem:[#allocation155_spill] sm:$0xff]  ;;  %v10365_v40 = vld [vmem:[#allocation166_spill] sm:$0xff]  ;;  %v10367_v60 = vld [vmem:[#allocation157_spill] sm:$0xff]  ;;  %4660 = vrot.lane.b32.xlu1 %v9082_v8, %s6001_s2 }
 0x3f9   :  { %v4581_v48 = vadd.f32 1.0, %v4529_v30  ;;  %v4531_v28 = vsel %vm4375_vm13, %v4427_v18, %v5176_v2  ;;  %v4324_v38 = vmul.f32 %v10363_v34, %v10362_v27  ;;  %v4328_v58 = vmul.f32 %v8860_v23, %v8646_v44  ;;  %v10371_v27 = vld [vmem:[#allocation161_spill] sm:$0xff] }
 0x3fa   :  { %v4583_v49 = vadd.f32 1.0, %v4531_v28  ;;  %v4530_v22 = vsel %vm4374_vm14, %v4426_v21, %v5175_v0  ;;  %v4327_v56 = vmul.f32 %v8868_v50, %v8656_v43  ;;  %v4430_v6 = vsub.f32 1.0, %v4326_v25  ;;  %v10370_v0 = vld [vmem:[#allocation167_spill] sm:$0xff] }
 0x3fb   :  { %v9139_v37 = vmul.f32 %v4581_v48, %v10364_v32  ;;  %v4582_v47 = vadd.f32 1.0, %v4530_v22  ;;  %v5179_v41 = vadd.f32 -1.0, %v4326_v25  ;;  %v4428_v31 = vsub.f32 1.0, %v4324_v38  ;;  %4738 = vrot.lane.b32.xlu0 %v9087_v46, %s6001_s2 }
 0x3fc   :  { %v9142_v13 = vmul.f32 %v4583_v49, %v10365_v40  ;;  %v5177_v52 = vadd.f32 -1.0, %v4324_v38  ;;  %v4432_v57 = vsub.f32 1.0, %v4328_v58  ;;  %v5181_v23 = vadd.f32 -1.0, %v4328_v58  ;;  %v10373_v49 = vld [vmem:[#allocation165_spill] sm:$0xff]  ;;  %4712 = vrot.lane.b32.xlu1 %v9091_v15, %s6001_s2  ;;  %v10377_v58 = vld [vmem:[#allocation8_spill] sm:$0xff] }
 0x3fd   :  { %v9145_v44 = vmul.f32 %v4582_v47, %v10367_v60  ;;  %v4534_v43 = vsel %vm4378_vm15, %v4430_v6, %v5179_v41  ;;  %v4431_v50 = vsub.f32 1.0, %v4327_v56  ;;  %v5180_v2 = vadd.f32 -1.0, %v4327_v56  ;;  %v10378_v47 = vld [vmem:[#allocation164_spill] sm:$0xff] }
 0x3fe   :  { %10366 = vst [vmem:[#allocation41_spill] sm:$0xff] %v9142_v13  ;;  %v4586_v5 = vadd.f32 1.0, %v4534_v43  ;;  %v4532_v18 = vsel %vm4376_vm0, %v4428_v31, %v5177_v52  ;;  %v4325_v21 = vmul.f32 %v8810_v24, %v8608_v14  ;;  %vm4379_vm2 = vcmp.ge.f32.partialorder %v10369_v62, 0.0  ;;  %v10379_v31 = vld [vmem:[#allocation33_spill] sm:$0xff] }
 0x3ff   :  { %10368 = vst [vmem:[#allocation50_spill] sm:$0xff] %v9145_v44  ;;  %v4584_v1 = vadd.f32 1.0, %v4532_v18  ;;  %v4536_v42 = vsel %vm4380_vm1, %v4432_v57, %v5181_v23  ;;  %v4329_v30 = vmul.f32 %v8917_v26, %v8678_v12  ;;  %v4535_v28 = vsel %vm4379_vm2, %v4431_v50, %v5180_v2  ;;  %v10376_v26 = vld [vmem:[#allocation171_spill] sm:$0xff]  ;;  %4662 = vrot.lane.b32.xlu0 %v9112_v16, %s6001_s2 }
 0x400   :  { %v9163_v48 = vmul.f32 %v4586_v5, %v10370_v0  ;;  %v4588_v9 = vadd.f32 1.0, %v4536_v42  ;;  %v4429_v25 = vsub.f32 1.0, %v4325_v21  ;;  %v4587_v24 = vadd.f32 1.0, %v4535_v28  ;;  %4688 = vrot.lane.b32.xlu1 %v9115_v11, %s6001_s2 }
 0x401   :  { %v9166_v14 = vmul.f32 %v4584_v1, %v10371_v27  ;;  %v5178_v34 = vadd.f32 -1.0, %v4325_v21  ;;  %v4433_v38 = vsub.f32 1.0, %v4329_v30  ;;  %vm4377_vm3 = vcmp.ge.f32.partialorder %v10373_v49, 0.0  ;;  %v10382_v1 = vld [vmem:[#allocation63_spill] sm:$0xff] }
 0x402   :  { %v9172_v22 = vmul.f32 %v4588_v9, %v10374_v19  ;;  %v5182_v12 = vadd.f32 -1.0, %v4329_v30  ;;  %vm4381_vm4 = vcmp.ge.f32.partialorder %v10376_v26, 0.0  ;;  %v9178_v56 = vmul.f32 %v4587_v24, %v10377_v58  ;;  %v10383_v30 = vld [vmem:[#allocation37_spill] sm:$0xff]  ;;  %v10384_v27 = vld [vmem:[#allocation59_spill] sm:$0xff] }
 0x403   :  { %10372 = vst [vmem:[#allocation81_spill] sm:$0xff] %v9166_v14  ;;  %v4533_v32 = vsel %vm4377_vm3, %v4429_v25, %v5178_v34  ;;  %v2765_v6 = vmul.f32 0.5, %v10378_v47  ;;  %v2769_v52 = vmul.f32 0.5, %v10379_v31  ;;  %4714 = vrot.lane.b32.xlu0 %v9118_v55, %s6001_s2  ;;  %v10381_v23 = vlaneseq  ;;  %v10385_v34 = vld [vmem:[#allocation39_spill] sm:$0xff] }
 0x404   :  { %10375 = vst [vmem:[#allocation48_spill] sm:$0xff] %v9172_v22  ;;  %v4585_v41 = vadd.f32 1.0, %v4533_v32  ;;  %v4537_v40 = vsel %vm4381_vm4, %v4433_v38, %v5182_v12  ;;  %4740 = vrot.lane.b32.xlu1 %v9139_v37, %s6001_s2  ;;  %v4643_v5 = vpop.permute.xlu0 %4642 }
 0x405   :  { %v4589_v57 = vadd.f32 1.0, %v4537_v40  ;;  %v9197_v50 = vand.u32 127, %v10381_v23  ;;  %v4669_v18 = vpop.permute.xlu1 %4668 }
 0x406   :  { %v9184_v60 = vmul.f32 %v4585_v41, %v2765_v6 }
 0x407   :  { %v9188_v43 = vmul.f32 %v4589_v57, %v2769_v52  ;;  %4690 = vrot.lane.b32.xlu0 %v9142_v13, %s6001_s2  ;;  %vm4748_vm5 = vcmp.lt.s32.totalorder %v9197_v50, 64  ;;  %v10386_v57 = vld [vmem:[#allocation61_spill] sm:$0xff]  ;;  %vm4983_vm6 = vcmp.lt.s32.totalorder %v9197_v50, 32 }
 0x408   :  { %10380 = vst [vmem:[#allocation44_spill] sm:$0xff] %v9184_v60  ;;  %4664 = vrot.lane.b32.xlu1 %v9145_v44, %s6001_s2  ;;  %v4775_v2 = vsel %vm4748_vm5, %v4643_v5, %v4669_v18 }
 0x409   :  { %v4802_v42 = vmax.f32 %v10382_v1, %v4775_v2 }
 0x40b   :  { %4666 = vrot.lane.b32.xlu0 %v9163_v48, %s6001_s2 }
 0x40c   :  { %4716 = vrot.lane.b32.xlu1 %v9166_v14, %s6001_s2  ;;  %v4695_v21 = vpop.permute.xlu0 %4694 }
 0x40d   :  { %v4762_v62 = vsel %vm4748_vm5, %v4669_v18, %v4695_v21 }
 0x40e   :  { %v4803_v0 = vmax.f32 %v10383_v30, %v4762_v62  ;;  %v4721_v9 = vpop.permute.xlu1 %4720 }
 0x40f   :  { %4718 = vrot.lane.b32.xlu0 %v9172_v22, %s6001_s2  ;;  %v4749_v28 = vsel %vm4748_vm5, %v4695_v21, %v4721_v9  ;;  %v4788_v25 = vsel %vm4748_vm5, %v4721_v9, %v4643_v5  ;;  %v10387_v5 = vld [vmem:[#allocation13_spill] sm:$0xff] }
 0x410   :  { %4692 = vrot.lane.b32.xlu1 %v9178_v56, %s6001_s2  ;;  %v4801_v24 = vmax.f32 %v10384_v27, %v4788_v25  ;;  %v4804_v38 = vmax.f32 %v10385_v34, %v4749_v28  ;;  %v4855_v49 = vmax.f32 %v4803_v0, %v4802_v42  ;;  %v4645_v47 = vpop.permute.xlu0 %4644 }
 0x412   :  { %v4854_v19 = vmax.f32 %v4802_v42, %v4801_v24  ;;  %v4856_v12 = vmax.f32 %v4804_v38, %v4803_v0  ;;  %v4853_v26 = vmax.f32 %v4801_v24, %v4804_v38  ;;  %v10388_v42 = vld [vmem:[#allocation23_spill] sm:$0xff] }
 0x413   :  { %4742 = vrot.lane.b32.xlu0 %v9184_v60, %s6001_s2 }
 0x414   :  { %4744 = vrot.lane.b32.xlu1 %v9188_v43, %s6001_s2  ;;  %v4906_v58 = vmax.f32 %v4854_v19, %v4856_v12  ;;  %v4905_v32 = vmax.f32 %v4853_v26, %v4855_v49 }
 0x417   :  { %4931 = vrot.lane.b32.xlu0 %v4905_v32, %s5999_s23 }
 0x418   :  { %4957 = vrot.lane.b32.xlu1 %v4906_v58, %s5999_s23 }
 0x419   :  { %v4697_v6 = vpop.permute.xlu1 %4696 }
 0x41d   :  { %v4671_v41 = vpop.permute.xlu0 %4670 }
 0x41e   :  { %v4763_v40 = vsel %vm4748_vm5, %v4671_v41, %v4697_v6  ;;  %v4776_v31 = vsel %vm4748_vm5, %v4645_v47, %v4671_v41  ;;  %v10390_v41 = vld [vmem:[#allocation68_spill] sm:$0xff] }
 0x41f   :  { %v4806_v23 = vmax.f32 %v10386_v57, %v4776_v31  ;;  %v4807_v18 = vmax.f32 %v10387_v5, %v4763_v40 }
 0x421   :  { %v4859_v49 = vmax.f32 %v4807_v18, %v4806_v23 }
 0x425   :  { %v4647_v52 = vpop.permute.xlu1 %4646 }
 0x429   :  { %v4723_v2 = vpop.permute.xlu0 %4722 }
 0x42a   :  { %v4750_v21 = vsel %vm4748_vm5, %v4697_v6, %v4723_v2  ;;  %v4789_v62 = vsel %vm4748_vm5, %v4723_v2, %v4645_v47  ;;  %v10389_v47 = vld [vmem:[#allocation14_spill] sm:$0xff]  ;;  %v10391_v2 = vld [vmem:[#allocation25_spill] sm:$0xff] }
 0x42b   :  { %v4805_v0 = vmax.f32 %v10388_v42, %v4789_v62  ;;  %v4808_v9 = vmax.f32 %v8767_v53, %v4750_v21  ;;  %v10392_v62 = vld [vmem:[#allocation18_spill] sm:$0xff] }
 0x42d   :  { %v4673_v28 = vpop.permute.xlu1 %4672  ;;  %v4858_v25 = vmax.f32 %v4806_v23, %v4805_v0  ;;  %v4860_v24 = vmax.f32 %v4808_v9, %v4807_v18  ;;  %v4857_v38 = vmax.f32 %v4805_v0, %v4808_v9 }
 0x42e   :  { %v4777_v26 = vsel %vm4748_vm5, %v4647_v52, %v4673_v28 }
 0x42f   :  { %v4908_v19 = vmax.f32 %v4858_v25, %v4860_v24  ;;  %v4907_v12 = vmax.f32 %v4857_v38, %v4859_v49  ;;  %v4810_v6 = vmax.f32 %v10389_v47, %v4777_v26 }
 0x431   :  { %4959 = vrot.lane.b32.xlu0 %v4908_v19, %s5999_s23  ;;  %4933 = vrot.lane.b32.xlu1 %v4907_v12, %s5999_s23 }
 0x432   :  { %v4699_v58 = vpop.permute.xlu0 %4698 }
 0x433   :  { %v4764_v32 = vsel %vm4748_vm5, %v4673_v28, %v4699_v58 }
 0x434   :  { %v4811_v40 = vmax.f32 %v10390_v41, %v4764_v32  ;;  %v4725_v31 = vpop.permute.xlu1 %4724 }
 0x435   :  { %v4751_v23 = vsel %vm4748_vm5, %v4699_v58, %v4725_v31  ;;  %v4790_v18 = vsel %vm4748_vm5, %v4725_v31, %v4647_v52  ;;  %v10393_v31 = vld [vmem:[#allocation70_spill] sm:$0xff] }
 0x436   :  { %v4809_v21 = vmax.f32 %v10391_v2, %v4790_v18  ;;  %v4812_v0 = vmax.f32 %v10392_v62, %v4751_v23  ;;  %v4863_v9 = vmax.f32 %v4811_v40, %v4810_v6 }
 0x438   :  { %v4675_v25 = vpop.permute.xlu0 %4674  ;;  %v4862_v24 = vmax.f32 %v4810_v6, %v4809_v21  ;;  %v4864_v38 = vmax.f32 %v4812_v0, %v4811_v40  ;;  %v4861_v28 = vmax.f32 %v4809_v21, %v4812_v0  ;;  %v10394_v6 = vld [vmem:[#allocation43_spill] sm:$0xff]  ;;  %v10395_v0 = vld [vmem:[#allocation38_spill] sm:$0xff] }
 0x43a   :  { %v4649_v49 = vpop.permute.xlu1 %4648  ;;  %v4910_v19 = vmax.f32 %v4862_v24, %v4864_v38  ;;  %v4909_v12 = vmax.f32 %v4861_v28, %v4863_v9  ;;  %v10396_v24 = vld [vmem:[#allocation24_spill] sm:$0xff] }
 0x43b   :  { %v4778_v26 = vsel %vm4748_vm5, %v4649_v49, %v4675_v25 }
 0x43c   :  { %v4727_v32 = vpop.permute.xlu0 %4726  ;;  %4961 = vrot.lane.b32.xlu1 %v4910_v19, %s5999_s23  ;;  %4935 = vrot.lane.b32.xlu0 %v4909_v12, %s5999_s23  ;;  %v4814_v23 = vmax.f32 %v10393_v31, %v4778_v26 }
 0x43d   :  { %v4791_v52 = vsel %vm4748_vm5, %v4727_v32, %v4649_v49 }
 0x43e   :  { %v4701_v58 = vpop.permute.xlu1 %4700  ;;  %v4813_v40 = vmax.f32 %v10394_v6, %v4791_v52 }
 0x43f   :  { %v4752_v18 = vsel %vm4748_vm5, %v4701_v58, %v4727_v32  ;;  %v4765_v21 = vsel %vm4748_vm5, %v4675_v25, %v4701_v58 }
 0x440   :  { %v4815_v9 = vmax.f32 %v10395_v0, %v4765_v21  ;;  %v4816_v38 = vmax.f32 %v10396_v24, %v4752_v18  ;;  %v4651_v28 = vpop.permute.xlu0 %4650  ;;  %v4866_v19 = vmax.f32 %v4814_v23, %v4813_v40  ;;  %v10397_v18 = vld [vmem:[#allocation46_spill] sm:$0xff] }
 0x442   :  { %v4677_v12 = vpop.permute.xlu1 %4676  ;;  %v4868_v62 = vmax.f32 %v4816_v38, %v4815_v9  ;;  %v4865_v49 = vmax.f32 %v4813_v40, %v4816_v38  ;;  %v4867_v41 = vmax.f32 %v4815_v9, %v4814_v23 }
 0x443   :  { %v4779_v26 = vsel %vm4748_vm5, %v4651_v28, %v4677_v12 }
 0x444   :  { %v4912_v52 = vmax.f32 %v4866_v19, %v4868_v62  ;;  %v4911_v31 = vmax.f32 %v4865_v49, %v4867_v41  ;;  %v4703_v6 = vpop.permute.xlu0 %4702  ;;  %v4818_v58 = vmax.f32 %v8886_v54, %v4779_v26  ;;  %v10398_v41 = vld [vmem:[#allocation19_spill] sm:$0xff] }
 0x445   :  { %v4766_v32 = vsel %vm4748_vm5, %v4677_v12, %v4703_v6 }
 0x446   :  { %v4729_v25 = vpop.permute.xlu1 %4728  ;;  %4963 = vrot.lane.b32.xlu0 %v4912_v52, %s5999_s23  ;;  %4937 = vrot.lane.b32.xlu1 %v4911_v31, %s5999_s23  ;;  %v4819_v21 = vmax.f32 %v10397_v18, %v4766_v32 }
 0x447   :  { %v4753_v23 = vsel %vm4748_vm5, %v4703_v6, %v4729_v25  ;;  %v4792_v62 = vsel %vm4748_vm5, %v4729_v25, %v4651_v28 }
 0x448   :  { %v4817_v40 = vmax.f32 %v10398_v41, %v4792_v62  ;;  %v4820_v9 = vmax.f32 %v8899_v33, %v4753_v23  ;;  %v4871_v19 = vmax.f32 %v4819_v21, %v4818_v58  ;;  %v10399_v62 = vld [vmem:[#allocation16_spill] sm:$0xff] }
 0x449   :  { %v4679_v38 = vpop.permute.xlu0 %4678 }
 0x44a   :  { %v4653_v12 = vpop.permute.xlu1 %4652  ;;  %v4870_v49 = vmax.f32 %v4818_v58, %v4817_v40  ;;  %v4872_v52 = vmax.f32 %v4820_v9, %v4819_v21  ;;  %v4869_v31 = vmax.f32 %v4817_v40, %v4820_v9  ;;  %v10400_v9 = vld [vmem:[#allocation73_spill] sm:$0xff] }
 0x44b   :  { %v4780_v26 = vsel %vm4748_vm5, %v4653_v12, %v4679_v38 }
 0x44c   :  { %v4914_v32 = vmax.f32 %v4870_v49, %v4872_v52  ;;  %v4913_v18 = vmax.f32 %v4869_v31, %v4871_v19  ;;  %v4822_v25 = vmax.f32 %v8921_v35, %v4780_v26 }
 0x44d   :  { %v4731_v54 = vpop.permute.xlu0 %4730 }
 0x44e   :  { %v4793_v6 = vsel %vm4748_vm5, %v4731_v54, %v4653_v12  ;;  %v4705_v28 = vpop.permute.xlu1 %4704  ;;  %4965 = vrot.lane.b32.xlu1 %v4914_v32, %s5999_s23  ;;  %4939 = vrot.lane.b32.xlu0 %v4913_v18, %s5999_s23 }
 0x44f   :  { %v4821_v58 = vmax.f32 %v8926_v59, %v4793_v6  ;;  %v4754_v21 = vsel %vm4748_vm5, %v4705_v28, %v4731_v54  ;;  %v4767_v23 = vsel %vm4748_vm5, %v4679_v38, %v4705_v28 }
 0x450   :  { %v4823_v40 = vmax.f32 %v10399_v62, %v4767_v23  ;;  %v4824_v19 = vmax.f32 %v10400_v9, %v4754_v21 }
 0x451   :  { %v4655_v12 = vpop.permute.xlu0 %4654  ;;  %v4874_v49 = vmax.f32 %v4822_v25, %v4821_v58 }
 0x452   :  { %v4681_v52 = vpop.permute.xlu1 %4680  ;;  %v4876_v31 = vmax.f32 %v4824_v19, %v4823_v40  ;;  %v4873_v32 = vmax.f32 %v4821_v58, %v4824_v19  ;;  %v4875_v18 = vmax.f32 %v4823_v40, %v4822_v25 }
 0x453   :  { %v4781_v26 = vsel %vm4748_vm5, %v4655_v12, %v4681_v52 }
 0x454   :  { %v4916_v6 = vmax.f32 %v4874_v49, %v4876_v31  ;;  %v4915_v35 = vmax.f32 %v4873_v32, %v4875_v18  ;;  %v4826_v28 = vmax.f32 %v8961_v4, %v4781_v26 }
 0x455   :  { %v4707_v59 = vpop.permute.xlu0 %4706 }
 0x456   :  { %v4768_v54 = vsel %vm4748_vm5, %v4681_v52, %v4707_v59  ;;  %v4733_v38 = vpop.permute.xlu1 %4732  ;;  %4967 = vrot.lane.b32.xlu0 %v4916_v6, %s5999_s23  ;;  %4941 = vrot.lane.b32.xlu1 %v4915_v35, %s5999_s23 }
 0x457   :  { %v4827_v21 = vmax.f32 %v8981_v45, %v4768_v54  ;;  %v4755_v25 = vsel %vm4748_vm5, %v4707_v59, %v4733_v38  ;;  %v4794_v58 = vsel %vm4748_vm5, %v4733_v38, %v4655_v12 }
 0x458   :  { %v4825_v23 = vmax.f32 %v8956_v29, %v4794_v58  ;;  %v4828_v40 = vmax.f32 %v8988_v7, %v4755_v25 }
 0x459   :  { %v4683_v19 = vpop.permute.xlu0 %4682  ;;  %v4879_v49 = vmax.f32 %v4827_v21, %v4826_v28 }
 0x45a   :  { %v4657_v52 = vpop.permute.xlu1 %4656  ;;  %v4878_v31 = vmax.f32 %v4826_v28, %v4825_v23  ;;  %v4880_v32 = vmax.f32 %v4828_v40, %v4827_v21  ;;  %v4877_v35 = vmax.f32 %v4825_v23, %v4828_v40 }
 0x45b   :  { %v4782_v18 = vsel %vm4748_vm5, %v4657_v52, %v4683_v19 }
 0x45c   :  { %v4918_v26 = vmax.f32 %v4878_v31, %v4880_v32  ;;  %v4917_v6 = vmax.f32 %v4877_v35, %v4879_v49  ;;  %v4830_v38 = vmax.f32 %v8991_v36, %v4782_v18 }
 0x45d   :  { %v4735_v54 = vpop.permute.xlu0 %4734 }
 0x45e   :  { %v4795_v59 = vsel %vm4748_vm5, %v4735_v54, %v4657_v52  ;;  %v4709_v12 = vpop.permute.xlu1 %4708  ;;  %4969 = vrot.lane.b32.xlu1 %v4918_v26, %s5999_s23  ;;  %4943 = vrot.lane.b32.xlu0 %v4917_v6, %s5999_s23 }
 0x45f   :  { %v4829_v28 = vmax.f32 %v8995_v51, %v4795_v59  ;;  %v4756_v21 = vsel %vm4748_vm5, %v4709_v12, %v4735_v54  ;;  %v4769_v25 = vsel %vm4748_vm5, %v4683_v19, %v4709_v12 }
 0x460   :  { %v4831_v58 = vmax.f32 %v9020_v20, %v4769_v25  ;;  %v4832_v23 = vmax.f32 %v9017_v61, %v4756_v21 }
 0x461   :  { %v4659_v40 = vpop.permute.xlu0 %4658  ;;  %v4882_v49 = vmax.f32 %v4830_v38, %v4829_v28 }
 0x462   :  { %v4685_v52 = vpop.permute.xlu1 %4684  ;;  %v4884_v31 = vmax.f32 %v4832_v23, %v4831_v58  ;;  %v4881_v32 = vmax.f32 %v4829_v28, %v4832_v23  ;;  %v4883_v35 = vmax.f32 %v4831_v58, %v4830_v38 }
 0x463   :  { %v4783_v18 = vsel %vm4748_vm5, %v4659_v40, %v4685_v52 }
 0x464   :  { %v4920_v26 = vmax.f32 %v4882_v49, %v4884_v31  ;;  %v4919_v6 = vmax.f32 %v4881_v32, %v4883_v35  ;;  %v4834_v12 = vmax.f32 %v9047_v63, %v4783_v18 }
 0x465   :  { %v4711_v59 = vpop.permute.xlu0 %4710 }
 0x466   :  { %v4770_v54 = vsel %vm4748_vm5, %v4685_v52, %v4711_v59  ;;  %v4737_v19 = vpop.permute.xlu1 %4736  ;;  %4971 = vrot.lane.b32.xlu0 %v4920_v26, %s5999_s23  ;;  %4945 = vrot.lane.b32.xlu1 %v4919_v6, %s5999_s23 }
 0x467   :  { %v4835_v21 = vmax.f32 %v9050_v10, %v4770_v54  ;;  %v4757_v38 = vsel %vm4748_vm5, %v4711_v59, %v4737_v19  ;;  %v4796_v28 = vsel %vm4748_vm5, %v4737_v19, %v4659_v40 }
 0x468   :  { %v4833_v25 = vmax.f32 %v9023_v39, %v4796_v28  ;;  %v4836_v58 = vmax.f32 %v9055_v17, %v4757_v38 }
 0x469   :  { %v4687_v23 = vpop.permute.xlu0 %4686  ;;  %v4887_v49 = vmax.f32 %v4835_v21, %v4834_v12 }
 0x46a   :  { %v4661_v52 = vpop.permute.xlu1 %4660  ;;  %v4886_v31 = vmax.f32 %v4834_v12, %v4833_v25  ;;  %v4888_v32 = vmax.f32 %v4836_v58, %v4835_v21  ;;  %v4885_v35 = vmax.f32 %v4833_v25, %v4836_v58 }
 0x46b   :  { %v4784_v18 = vsel %vm4748_vm5, %v4661_v52, %v4687_v23 }
 0x46c   :  { %v4922_v26 = vmax.f32 %v4886_v31, %v4888_v32  ;;  %v4921_v6 = vmax.f32 %v4885_v35, %v4887_v49  ;;  %v4838_v19 = vmax.f32 %v9075_v3, %v4784_v18 }
 0x46d   :  { %v4739_v54 = vpop.permute.xlu0 %4738 }
 0x46e   :  { %v4797_v59 = vsel %vm4748_vm5, %v4739_v54, %v4661_v52  ;;  %v4713_v40 = vpop.permute.xlu1 %4712  ;;  %4973 = vrot.lane.b32.xlu1 %v4922_v26, %s5999_s23  ;;  %4947 = vrot.lane.b32.xlu0 %v4921_v6, %s5999_s23 }
 0x46f   :  { %v4837_v12 = vmax.f32 %v9082_v8, %v4797_v59  ;;  %v4758_v21 = vsel %vm4748_vm5, %v4713_v40, %v4739_v54  ;;  %v4771_v38 = vsel %vm4748_vm5, %v4687_v23, %v4713_v40 }
 0x470   :  { %v4839_v28 = vmax.f32 %v9091_v15, %v4771_v38  ;;  %v4840_v25 = vmax.f32 %v9087_v46, %v4758_v21 }
 0x471   :  { %v4663_v58 = vpop.permute.xlu0 %4662  ;;  %v4890_v49 = vmax.f32 %v4838_v19, %v4837_v12 }
 0x472   :  { %v4689_v52 = vpop.permute.xlu1 %4688  ;;  %v4892_v31 = vmax.f32 %v4840_v25, %v4839_v28  ;;  %v4889_v32 = vmax.f32 %v4837_v12, %v4840_v25  ;;  %v4891_v35 = vmax.f32 %v4839_v28, %v4838_v19 }
 0x473   :  { %v4785_v18 = vsel %vm4748_vm5, %v4663_v58, %v4689_v52 }
 0x474   :  { %v4924_v26 = vmax.f32 %v4890_v49, %v4892_v31  ;;  %v4923_v6 = vmax.f32 %v4889_v32, %v4891_v35  ;;  %v4842_v40 = vmax.f32 %v9115_v11, %v4785_v18 }
 0x475   :  { %v4715_v59 = vpop.permute.xlu0 %4714 }
 0x476   :  { %v4772_v54 = vsel %vm4748_vm5, %v4689_v52, %v4715_v59  ;;  %v4741_v23 = vpop.permute.xlu1 %4740  ;;  %4975 = vrot.lane.b32.xlu0 %v4924_v26, %s5999_s23  ;;  %4949 = vrot.lane.b32.xlu1 %v4923_v6, %s5999_s23 }
 0x477   :  { %v4843_v21 = vmax.f32 %v9118_v55, %v4772_v54  ;;  %v4759_v19 = vsel %vm4748_vm5, %v4715_v59, %v4741_v23  ;;  %v4798_v12 = vsel %vm4748_vm5, %v4741_v23, %v4663_v58 }
 0x478   :  { %v4841_v38 = vmax.f32 %v9112_v16, %v4798_v12  ;;  %v4844_v28 = vmax.f32 %v9139_v37, %v4759_v19 }
 0x479   :  { %v4691_v25 = vpop.permute.xlu0 %4690  ;;  %v4895_v49 = vmax.f32 %v4843_v21, %v4842_v40 }
 0x47a   :  { %v4665_v52 = vpop.permute.xlu1 %4664  ;;  %v4894_v31 = vmax.f32 %v4842_v40, %v4841_v38  ;;  %v4896_v32 = vmax.f32 %v4844_v28, %v4843_v21  ;;  %v4893_v35 = vmax.f32 %v4841_v38, %v4844_v28 }
 0x47b   :  { %v4786_v58 = vsel %vm4748_vm5, %v4665_v52, %v4691_v25 }
 0x47c   :  { %v4926_v26 = vmax.f32 %v4894_v31, %v4896_v32  ;;  %v4925_v18 = vmax.f32 %v4893_v35, %v4895_v49  ;;  %v4846_v12 = vmax.f32 %v9142_v13, %v4786_v58 }
 0x47d   :  { %v4667_v6 = vpop.permute.xlu0 %4666 }
 0x47e   :  { %v4717_v54 = vpop.permute.xlu1 %4716  ;;  %4977 = vrot.lane.b32.xlu1 %v4926_v26, %s5999_s23  ;;  %4951 = vrot.lane.b32.xlu0 %v4925_v18, %s5999_s23 }
 0x47f   :  { %v4773_v23 = vsel %vm4748_vm5, %v4691_v25, %v4717_v54 }
 0x480   :  { %v4847_v38 = vmax.f32 %v9166_v14, %v4773_v23 }
 0x481   :  { %v4719_v59 = vpop.permute.xlu0 %4718 }
 0x482   :  { %v4693_v19 = vpop.permute.xlu1 %4692 }
 0x483   :  { %v4774_v40 = vsel %vm4748_vm5, %v4693_v19, %v4719_v59  ;;  %v4787_v21 = vsel %vm4748_vm5, %v4667_v6, %v4693_v19 }
 0x484   :  { %v4850_v49 = vmax.f32 %v9178_v56, %v4787_v21  ;;  %v4851_v31 = vmax.f32 %v9172_v22, %v4774_v40 }
 0x485   :  { %v4743_v28 = vpop.permute.xlu0 %4742 }
 0x486   :  { %v4760_v32 = vsel %vm4748_vm5, %v4717_v54, %v4743_v28  ;;  %v4799_v25 = vsel %vm4748_vm5, %v4743_v28, %v4665_v52  ;;  %v4745_v35 = vpop.permute.xlu1 %4744  ;;  %v4899_v54 = vmax.f32 %v4847_v38, %v4846_v12  ;;  %v4903_v28 = vmax.f32 %v4851_v31, %v4850_v49 }
 0x487   :  { %v4845_v26 = vmax.f32 %v9145_v44, %v4799_v25  ;;  %v4848_v18 = vmax.f32 %v9184_v60, %v4760_v32  ;;  %v4761_v58 = vsel %vm4748_vm5, %v4719_v59, %v4745_v35  ;;  %v4800_v23 = vsel %vm4748_vm5, %v4745_v35, %v4667_v6 }
 0x488   :  { %v4849_v19 = vmax.f32 %v9163_v48, %v4800_v23  ;;  %v4852_v40 = vmax.f32 %v9188_v43, %v4761_v58 }
 0x489   :  { %v4897_v21 = vmax.f32 %v4845_v26, %v4848_v18  ;;  %v4898_v60 = vmax.f32 %v4846_v12, %v4845_v26  ;;  %v4900_v44 = vmax.f32 %v4848_v18, %v4847_v38  ;;  %v4932_v22 = vpop.permute.xlu0 %4931 }
 0x48a   :  { %v4901_v52 = vmax.f32 %v4849_v19, %v4852_v40  ;;  %v4902_v25 = vmax.f32 %v4850_v49, %v4849_v19  ;;  %v4904_v13 = vmax.f32 %v4852_v40, %v4851_v31  ;;  %v4958_v59 = vpop.permute.xlu1 %4957  ;;  %v10401_v40 = vld [vmem:[#allocation68_spill] sm:$0xff] }
 0x48b   :  { %v4927_v14 = vmax.f32 %v4897_v21, %v4899_v54  ;;  %v4984_v6 = vsel %vm4983_vm6, %v4932_v22, %v4958_v59  ;;  %v4997_v35 = vsel %vm4983_vm6, %v4958_v59, %v4932_v22  ;;  %v4928_v26 = vmax.f32 %v4898_v60, %v4900_v44  ;;  %v10402_v21 = vld [vmem:[#allocation18_spill] sm:$0xff] }
 0x48c   :  { %v4929_v32 = vmax.f32 %v4901_v52, %v4903_v28  ;;  %v5010_v58 = vadd.f32 %v4997_v35, %v10384_v27  ;;  %v5011_v49 = vadd.f32 %v4984_v6, %v10382_v1  ;;  %v5012_v31 = vadd.f32 %v4997_v35, %v10383_v30  ;;  %v10404_v59 = vld [vmem:[#allocation70_spill] sm:$0xff] }
 0x48d   :  { %4953 = vrot.lane.b32.xlu1 %v4927_v14, %s5999_s23  ;;  %v5013_v12 = vadd.f32 %v4984_v6, %v10385_v34  ;;  %v4930_v38 = vmax.f32 %v4902_v25, %v4904_v13 }
 0x48e   :  { %4955 = vrot.lane.b32.xlu0 %v4929_v32, %s5999_s23  ;;  %5062 = vst [vmem:[#allocation5] sm:$0xff] %v5010_v58  ;;  %5063 = vst [vmem:[#allocation5 + $0x8] sm:$0xff] %v5011_v49  ;;  %v10403_v32 = vld [vmem:[#allocation43_spill] sm:$0xff] }
 0x48f   :  { %5064 = vst [vmem:[#allocation5 + $0x10] sm:$0xff] %v5012_v31  ;;  %5065 = vst [vmem:[#allocation5 + $0x18] sm:$0xff] %v5013_v12 }
 0x491   :  { %4981 = vrot.lane.b32.xlu1 %v4930_v38, %s5999_s23 }
 0x492   :  { %4979 = vrot.lane.b32.xlu0 %v4928_v26, %s5999_s23  ;;  %v10405_v26 = vld [vmem:[#allocation71_spill] sm:$0xff] }
 0x4a3   :  { %v4934_v14 = vpop.permute.xlu1 %4933  ;;  %v4960_v22 = vpop.permute.xlu0 %4959 }
 0x4a4   :  { %v4985_v27 = vsel %vm4983_vm6, %v4934_v14, %v4960_v22  ;;  %v4998_v1 = vsel %vm4983_vm6, %v4960_v22, %v4934_v14  ;;  %v10406_v22 = vld [vmem:[#allocation46_spill] sm:$0xff] }
 0x4a5   :  { %v5014_v30 = vadd.f32 %v4998_v1, %v10388_v42  ;;  %v5015_v13 = vadd.f32 %v4985_v27, %v10386_v57  ;;  %v5016_v44 = vadd.f32 %v4998_v1, %v10387_v5  ;;  %v5017_v60 = vadd.f32 %v4985_v27, %v8767_v53 }
 0x4a7   :  { %5066 = vst [vmem:[#allocation5 + $0x20] sm:$0xff] %v5014_v30  ;;  %5067 = vst [vmem:[#allocation5 + $0x28] sm:$0xff] %v5015_v13 }
 0x4a8   :  { %5068 = vst [vmem:[#allocation5 + $0x30] sm:$0xff] %v5016_v44  ;;  %5069 = vst [vmem:[#allocation5 + $0x38] sm:$0xff] %v5017_v60  ;;  %v10407_v44 = vld [vmem:[#allocation20_spill] sm:$0xff]  ;;  %v10408_v60 = vld [vmem:[#allocation26_spill] sm:$0xff] }
 0x4ae   :  { %v4962_v34 = vpop.permute.xlu1 %4961  ;;  %v4936_v18 = vpop.permute.xlu0 %4935 }
 0x4af   :  { %v4986_v23 = vsel %vm4983_vm6, %v4936_v18, %v4962_v34  ;;  %v4999_v19 = vsel %vm4983_vm6, %v4962_v34, %v4936_v18 }
 0x4b0   :  { %v5018_v42 = vadd.f32 %v4999_v19, %v10391_v2  ;;  %v5019_v57 = vadd.f32 %v4986_v23, %v10389_v47  ;;  %v5020_v5 = vadd.f32 %v4999_v19, %v10401_v40  ;;  %v5021_v53 = vadd.f32 %v4986_v23, %v10402_v21 }
 0x4b2   :  { %5070 = vst [vmem:[#allocation5 + $0x40] sm:$0xff] %v5018_v42  ;;  %5071 = vst [vmem:[#allocation5 + $0x48] sm:$0xff] %v5019_v57 }
 0x4b3   :  { %5072 = vst [vmem:[#allocation5 + $0x50] sm:$0xff] %v5020_v5  ;;  %5073 = vst [vmem:[#allocation5 + $0x58] sm:$0xff] %v5021_v53 }
 0x4b8   :  { %v4938_v54 = vpop.permute.xlu1 %4937  ;;  %v4964_v52 = vpop.permute.xlu0 %4963 }
 0x4b9   :  { %v4987_v28 = vsel %vm4983_vm6, %v4938_v54, %v4964_v52  ;;  %v5000_v25 = vsel %vm4983_vm6, %v4964_v52, %v4938_v54 }
 0x4ba   :  { %v5022_v2 = vadd.f32 %v5000_v25, %v10403_v32  ;;  %v5023_v47 = vadd.f32 %v4987_v28, %v10404_v59  ;;  %v5024_v6 = vadd.f32 %v5000_v25, %v10395_v0  ;;  %v5025_v35 = vadd.f32 %v4987_v28, %v10396_v24 }
 0x4bc   :  { %5074 = vst [vmem:[#allocation5 + $0x60] sm:$0xff] %v5022_v2  ;;  %5075 = vst [vmem:[#allocation5 + $0x68] sm:$0xff] %v5023_v47 }
 0x4bd   :  { %5076 = vst [vmem:[#allocation5 + $0x70] sm:$0xff] %v5024_v6  ;;  %5077 = vst [vmem:[#allocation5 + $0x78] sm:$0xff] %v5025_v35 }
 0x4c0   :  { %v4966_v58 = vpop.permute.xlu1 %4965  ;;  %v4940_v49 = vpop.permute.xlu0 %4939 }
 0x4c1   :  { %v4988_v31 = vsel %vm4983_vm6, %v4940_v49, %v4966_v58  ;;  %v5001_v12 = vsel %vm4983_vm6, %v4966_v58, %v4940_v49 }
 0x4c2   :  { %v5026_v38 = vadd.f32 %v5001_v12, %v10398_v41  ;;  %v5027_v14 = vadd.f32 %v4988_v31, %v10405_v26  ;;  %v5028_v0 = vadd.f32 %v5001_v12, %v10406_v22  ;;  %v5029_v24 = vadd.f32 %v4988_v31, %v8899_v33 }
 0x4c4   :  { %5078 = vst [vmem:[#allocation5 + $0x80] sm:$0xff] %v5026_v38  ;;  %5079 = vst [vmem:[#allocation5 + $0x88] sm:$0xff] %v5027_v14 }
 0x4c5   :  { %5080 = vst [vmem:[#allocation5 + $0x90] sm:$0xff] %v5028_v0  ;;  %5081 = vst [vmem:[#allocation5 + $0x98] sm:$0xff] %v5029_v24 }
 0x4c8   :  { %v4942_v27 = vpop.permute.xlu1 %4941  ;;  %v4968_v1 = vpop.permute.xlu0 %4967 }
 0x4c9   :  { %v4989_v30 = vsel %vm4983_vm6, %v4942_v27, %v4968_v1  ;;  %v5002_v13 = vsel %vm4983_vm6, %v4968_v1, %v4942_v27 }
 0x4ca   :  { %v5030_v41 = vadd.f32 %v5002_v13, %v10407_v44  ;;  %v5031_v34 = vadd.f32 %v4989_v30, %v10408_v60  ;;  %v5032_v18 = vadd.f32 %v5002_v13, %v10399_v62  ;;  %v5033_v33 = vadd.f32 %v4989_v30, %v10400_v9  ;;  %v10410_v13 = vld [vmem:[#allocation50_spill] sm:$0xff]  ;;  %v10412_v60 = vld [vmem:[#allocation81_spill] sm:$0xff] }
 0x4cc   :  { %5082 = vst [vmem:[#allocation5 + $0xa0] sm:$0xff] %v5030_v41  ;;  %5083 = vst [vmem:[#allocation5 + $0xa8] sm:$0xff] %v5031_v34  ;;  %v10411_v41 = vld [vmem:[#allocation41_spill] sm:$0xff]  ;;  %v10413_v34 = vld [vmem:[#allocation44_spill] sm:$0xff] }
 0x4cd   :  { %5084 = vst [vmem:[#allocation5 + $0xb0] sm:$0xff] %v5032_v18  ;;  %5085 = vst [vmem:[#allocation5 + $0xb8] sm:$0xff] %v5033_v33 }
 0x4d0   :  { %v4970_v23 = vpop.permute.xlu1 %4969  ;;  %v4944_v19 = vpop.permute.xlu0 %4943 }
 0x4d1   :  { %v4990_v42 = vsel %vm4983_vm6, %v4944_v19, %v4970_v23  ;;  %v5003_v57 = vsel %vm4983_vm6, %v4970_v23, %v4944_v19 }
 0x4d2   :  { %v5034_v40 = vadd.f32 %v5003_v57, %v8956_v29  ;;  %v5035_v5 = vadd.f32 %v4990_v42, %v8961_v4  ;;  %v5036_v62 = vadd.f32 %v5003_v57, %v8981_v45  ;;  %v5037_v9 = vadd.f32 %v4990_v42, %v8988_v7 }
 0x4d4   :  { %5086 = vst [vmem:[#allocation5 + $0xc0] sm:$0xff] %v5034_v40  ;;  %5087 = vst [vmem:[#allocation5 + $0xc8] sm:$0xff] %v5035_v5 }
 0x4d5   :  { %5088 = vst [vmem:[#allocation5 + $0xd0] sm:$0xff] %v5036_v62  ;;  %5089 = vst [vmem:[#allocation5 + $0xd8] sm:$0xff] %v5037_v9 }
 0x4d8   :  { %v4946_v21 = vpop.permute.xlu1 %4945  ;;  %v4972_v53 = vpop.permute.xlu0 %4971 }
 0x4d9   :  { %v4991_v54 = vsel %vm4983_vm6, %v4946_v21, %v4972_v53  ;;  %v5004_v52 = vsel %vm4983_vm6, %v4972_v53, %v4946_v21 }
 0x4da   :  { %v5038_v29 = vadd.f32 %v5004_v52, %v8995_v51  ;;  %v5039_v4 = vadd.f32 %v4991_v54, %v8991_v36  ;;  %v5040_v45 = vadd.f32 %v5004_v52, %v9020_v20  ;;  %v5041_v7 = vadd.f32 %v4991_v54, %v9017_v61 }
 0x4dc   :  { %5090 = vst [vmem:[#allocation5 + $0xe0] sm:$0xff] %v5038_v29  ;;  %5091 = vst [vmem:[#allocation5 + $0xe8] sm:$0xff] %v5039_v4 }
 0x4dd   :  { %5092 = vst [vmem:[#allocation5 + $0xf0] sm:$0xff] %v5040_v45  ;;  %5093 = vst [vmem:[#allocation5 + $0xf8] sm:$0xff] %v5041_v7 }
 0x4e0   :  { %v4974_v28 = vpop.permute.xlu1 %4973  ;;  %v4948_v25 = vpop.permute.xlu0 %4947 }
 0x4e1   :  { %v4992_v32 = vsel %vm4983_vm6, %v4948_v25, %v4974_v28  ;;  %v5005_v2 = vsel %vm4983_vm6, %v4974_v28, %v4948_v25 }
 0x4e2   :  { %v5042_v51 = vadd.f32 %v5005_v2, %v9023_v39  ;;  %v5043_v36 = vadd.f32 %v4992_v32, %v9047_v63  ;;  %v5044_v20 = vadd.f32 %v5005_v2, %v9050_v10  ;;  %v5045_v61 = vadd.f32 %v4992_v32, %v9055_v17 }
 0x4e4   :  { %5094 = vst [vmem:[#allocation5 + $0x100] sm:$0xff] %v5042_v51  ;;  %5095 = vst [vmem:[#allocation5 + $0x108] sm:$0xff] %v5043_v36 }
 0x4e5   :  { %5096 = vst [vmem:[#allocation5 + $0x110] sm:$0xff] %v5044_v20  ;;  %5097 = vst [vmem:[#allocation5 + $0x118] sm:$0xff] %v5045_v61 }
 0x4e8   :  { %v4950_v59 = vpop.permute.xlu1 %4949  ;;  %v4976_v47 = vpop.permute.xlu0 %4975 }
 0x4e9   :  { %v4993_v6 = vsel %vm4983_vm6, %v4950_v59, %v4976_v47  ;;  %v5006_v35 = vsel %vm4983_vm6, %v4976_v47, %v4950_v59 }
 0x4ea   :  { %v5046_v39 = vadd.f32 %v5006_v35, %v9082_v8  ;;  %v5047_v63 = vadd.f32 %v4993_v6, %v9075_v3  ;;  %v5048_v10 = vadd.f32 %v5006_v35, %v9091_v15  ;;  %v5049_v17 = vadd.f32 %v4993_v6, %v9087_v46 }
 0x4ec   :  { %5098 = vst [vmem:[#allocation5 + $0x120] sm:$0xff] %v5046_v39  ;;  %5099 = vst [vmem:[#allocation5 + $0x128] sm:$0xff] %v5047_v63 }
 0x4ed   :  { %5100 = vst [vmem:[#allocation5 + $0x130] sm:$0xff] %v5048_v10  ;;  %5101 = vst [vmem:[#allocation5 + $0x138] sm:$0xff] %v5049_v17 }
 0x4f0   :  { %v4978_v58 = vpop.permute.xlu1 %4977  ;;  %v4952_v49 = vpop.permute.xlu0 %4951 }
 0x4f1   :  { %v4994_v31 = vsel %vm4983_vm6, %v4952_v49, %v4978_v58  ;;  %v5007_v12 = vsel %vm4983_vm6, %v4978_v58, %v4952_v49 }
 0x4f2   :  { %v5050_v8 = vadd.f32 %v5007_v12, %v9112_v16  ;;  %v5051_v3 = vadd.f32 %v4994_v31, %v9115_v11  ;;  %v5052_v15 = vadd.f32 %v5007_v12, %v9118_v55  ;;  %v5053_v46 = vadd.f32 %v4994_v31, %v9139_v37  ;;  %v10409_v37 = vld [vmem:[#allocation48_spill] sm:$0xff] }
 0x4f4   :  { %5102 = vst [vmem:[#allocation5 + $0x140] sm:$0xff] %v5050_v8  ;;  %5103 = vst [vmem:[#allocation5 + $0x148] sm:$0xff] %v5051_v3 }
 0x4f5   :  { %5104 = vst [vmem:[#allocation5 + $0x150] sm:$0xff] %v5052_v15  ;;  %5105 = vst [vmem:[#allocation5 + $0x158] sm:$0xff] %v5053_v46 }
 0x4ff   :  { %v4954_v38 = vpop.permute.xlu1 %4953 }
 0x500   :  { %v4956_v26 = vpop.permute.xlu0 %4955 }
 0x503   :  { %v4982_v14 = vpop.permute.xlu1 %4981 }
 0x504   :  { %v4996_v22 = vsel %vm4983_vm6, %v4956_v26, %v4982_v14  ;;  %v5009_v0 = vsel %vm4983_vm6, %v4982_v14, %v4956_v26  ;;  %v4980_v16 = vpop.permute.xlu0 %4979 }
 0x505   :  { %v5058_v11 = vadd.f32 %v5009_v0, %v9163_v48  ;;  %v5059_v55 = vadd.f32 %v4996_v22, %v9178_v56  ;;  %v5060_v24 = vadd.f32 %v5009_v0, %v10409_v37  ;;  %v5061_v27 = vadd.f32 %v4996_v22, %v9188_v43 }
 0x506   :  { %v4995_v1 = vsel %vm4983_vm6, %v4954_v38, %v4980_v16  ;;  %v5008_v30 = vsel %vm4983_vm6, %v4980_v16, %v4954_v38 }
 0x507   :  { %5110 = vst [vmem:[#allocation5 + $0x180] sm:$0xff] %v5058_v11  ;;  %5111 = vst [vmem:[#allocation5 + $0x188] sm:$0xff] %v5059_v55  ;;  %v5054_v44 = vadd.f32 %v5008_v30, %v10410_v13  ;;  %v5055_v48 = vadd.f32 %v4995_v1, %v10411_v41  ;;  %v5056_v56 = vadd.f32 %v5008_v30, %v10412_v60 }
 0x508   :  { %5112 = vst [vmem:[#allocation5 + $0x190] sm:$0xff] %v5060_v24  ;;  %5113 = vst [vmem:[#allocation5 + $0x198] sm:$0xff] %v5061_v27  ;;  %v5057_v18 = vadd.f32 %v4995_v1, %v10413_v34 }
 0x509   :  { %5106 = vst [vmem:[#allocation5 + $0x160] sm:$0xff] %v5054_v44  ;;  %5107 = vst [vmem:[#allocation5 + $0x168] sm:$0xff] %v5055_v48 }
 0x50a   :  { %5108 = vst [vmem:[#allocation5 + $0x170] sm:$0xff] %v5056_v56  ;;  %5109 = vst [vmem:[#allocation5 + $0x178] sm:$0xff] %v5057_v18 }
 0x50b   :  { %5982 = shalt.err (!%p5979_p12)
}
 0x50c   :  { %s5983_s4 = scalar_lea.hbm %s9519_s3, 6656 }
 0x50d   :  { %p5984_p13 = scmp.ne.s32.totalorder %s9519_s3, %s5983_s4  ;;  %p5987_p0 = scmp.lt.u32.totalorder %s5983_s4, %s9519_s3 }
 0x50f   :  { %p5989_p1 = pnand %p5987_p0, %p5984_p13 }
 0x511   :  { %5992 = shalt.err (!%p5989_p1)
}
 0x512   :  { %5125 = dma.vmem_to_hbm [thread:$0]  %s5120_s27, 6656, %s9519_s3, [#allocation4], %s5998_s22, %s5998_s22, %s5999_s23  }
 0x513   :  { %5995 = dma.done.wait [#allocation4], 6656  }
 0x514   :  { %5996 = vsyncadd [#allocation4], 4294960640 }
 0x515   :  { %5129 = vsyncpa [#allocation3], 1 }
 0x516   :  { %5130 = vsyncpa [#allocation4], 1 }

</bundles_post_ra>
